<compile_context>
chip_gen: v6e
topology: v6e:2x2x1
jax: 0.10.0
libtpu: 0.0.40
codegen_flags: <defaults>
</compile_context>

<pallas_src>
import functools

import jax
import jax.numpy as jnp
from jax.experimental import pallas as pl
from jax.experimental.pallas import tpu as pltpu

LANE = 128
SUBLANE = 8


def _round_up(n, m):
    return ((n + m - 1) // m) * m


# ----------------------------------------------------------------------------
# Fused Pallas kernel: all GRU layers + fc head, single invocation (no grid).
# ----------------------------------------------------------------------------
def _fused_gru_net_kernel(*refs, n_layers, seq_len, batch_pad, hidden_pad,
                          apply_tanh):
    """
    refs (inputs, outputs, scratch):
      x_flat   : (S*Bp, D_in)  time-major flattened, batch zero-padded to Bp
      h0       : (L, Bp, Hp)   zero-padded initial hidden
      per layer l:
        w_ih_t : (D_l, 3*Hp)   input->gate weights, gate order [r|z|n],
                               each gate block zero-padded to Hp lanes
        w_hh_t : (Hp, 3*Hp)    hidden->gate weights (same layout)
        b_comb : (1, 3*Hp)     r,z slots: b_ih+b_hh folded; n slot: b_ih_n
        b_hn   : (1, Hp)       b_hh of the n gate (lives inside r*(...))
      w_fc_t   : (Hp, Op)
      b_fc     : (1, Op)
    outputs:
      out      : (Bp, Op)
      h_out    : (L, Bp, Hp)
    scratch:
      gi_a, gi_b : (S*Bp, 3*Hp) ping-pong buffers holding a layer's full
                   sequence of input-projection gate pre-activations.
    """
    Hp = hidden_pad
    Bp = batch_pad
    it = iter(refs)
    x_flat_ref = next(it)
    h0_ref = next(it)
    layer_refs = [(next(it), next(it), next(it), next(it)) for _ in range(n_layers)]
    w_fc_ref = next(it)
    b_fc_ref = next(it)
    out_ref = next(it)
    h_out_ref = next(it)
    gi_scratch = [next(it), next(it)]

    # Layer 0 input projection hoisted off the recurrence: one big MXU call
    # over the whole sequence, folded biases added once, result stored into
    # aligned VMEM scratch so every per-step slice is a plain (8,128) load.
    w_ih0_ref, _, b_comb0_ref, _ = layer_refs[0]
    gi_scratch[0][...] = (
        jnp.dot(x_flat_ref[...], w_ih0_ref[...],
                preferred_element_type=jnp.float32) + b_comb0_ref[...])

    h = None
    for l in range(n_layers):
        _, w_hh_ref, _, b_hn_ref = layer_refs[l]
        gi_cur = gi_scratch[l % 2]
        w_hh = w_hh_ref[...]
        # Hoisted loop-invariant broadcast (JAX does not CSE broadcast_in_dim).
        b_hn = jnp.broadcast_to(b_hn_ref[...], (Bp, Hp))

        h = h0_ref[l]                                        # (Bp, Hp)
        # t=0 hidden matmul hoisted off the serial critical path (h0 is known
        # up front, so this overlaps with the preceding big matmuls).
        gh = jnp.dot(h, w_hh, preferred_element_type=jnp.float32)

        last_layer = (l == n_layers - 1)
        if not last_layer:
            w_ih_nx_ref, _, b_comb_nx_ref, _ = layer_refs[l + 1]
            w_ih_nx = w_ih_nx_ref[...]
            b_comb_nx = jnp.broadcast_to(b_comb_nx_ref[...], (Bp, 3 * Hp))
            gi_nxt = gi_scratch[(l + 1) % 2]

        # Fully unrolled static time loop (S small & fixed): every slice/store
        # is a static, tile-aligned access; the scheduler interleaves MXU
        # (W_hh / wavefront W_ih matmuls), EUP (sigmoid/tanh) and VPU blends.
        for t in range(seq_len):
            gi = gi_cur[t * Bp:(t + 1) * Bp, :]              # (Bp, 3*Hp)
            r = jax.nn.sigmoid(gi[:, 0:Hp] + gh[:, 0:Hp])
            z = jax.nn.sigmoid(gi[:, Hp:2 * Hp] + gh[:, Hp:2 * Hp])
            n = jnp.tanh(gi[:, 2 * Hp:3 * Hp] + r * (gh[:, 2 * Hp:3 * Hp] + b_hn))
            h = (1.0 - z) * n + z * h
            if t + 1 < seq_len:
                # Serial-path matmul for the next step.
                gh = jnp.dot(h, w_hh, preferred_element_type=jnp.float32)
            if not last_layer:
                # Wavefront: next layer's input projection for this timestep.
                # Not on this layer's serial chain -> free MXU slack filler.
                gi_nxt[t * Bp:(t + 1) * Bp, :] = (
                    jnp.dot(h, w_ih_nx, preferred_element_type=jnp.float32)
                    + b_comb_nx)

        h_out_ref[l] = h.astype(h_out_ref.dtype)             # aligned (8,128) store
        # TODO(synk): nn.GRU inter-layer dropout (drop_prob) is train-mode only;
        #             eval-mode forward (no dropout) is what is implemented.

    # fc head: out[:, -1] of the batch-first GRU == top layer's final hidden.
    y = jnp.dot(jnp.maximum(h, 0.0), w_fc_ref[...],
                preferred_element_type=jnp.float32) + b_fc_ref[...]
    if apply_tanh:
        y = jnp.tanh(y)
    out_ref[...] = y.astype(out_ref.dtype)                   # lane-dense store


# ----------------------------------------------------------------------------
# Wrapper
# ----------------------------------------------------------------------------
def gru_net_forward(x, h0, params, network_type="aa"):
    """x: (B, S, D_in) batch-first; h0: (L, B, H). Returns (out (B,O), h (L,B,H))."""
    B, S, D_in = x.shape
    L, _, H = h0.shape
    Hp = params["hidden_pad"]
    O = params["output_dim"]
    Op = params["w_fc_t"].shape[-1]
    Bp = _round_up(B, SUBLANE)

    # layout: batch-first -> time-major, batch zero-padded to a sublane
    # multiple, flattened over (S, Bp) so every per-step row slice is aligned.
    x_tm = jnp.transpose(x, (1, 0, 2)).astype(jnp.float32)       # (S, B, D_in)
    x_tm = jnp.pad(x_tm, ((0, 0), (0, Bp - B), (0, 0)))          # (S, Bp, D_in)
    x_flat = x_tm.reshape(S * Bp, D_in)
    # NOTE: zero-padding h0 (batch AND hidden lanes) is required for the
    # "padded lanes stay identically zero" invariant inside the kernel.
    h0_pad = jnp.pad(h0.astype(jnp.float32),
                     ((0, 0), (0, Bp - B), (0, Hp - H)))

    args = [x_flat, h0_pad]
    for p in params["gru_layers"]:
        args += [p["w_ih_t"], p["w_hh_t"], p["b_comb"], p["b_hn"]]
    args += [params["w_fc_t"], params["b_fc"]]

    vmem_spec = pl.BlockSpec(memory_space=pltpu.MemorySpace.VMEM)
    kernel = functools.partial(
        _fused_gru_net_kernel, n_layers=L, seq_len=S, batch_pad=Bp,
        hidden_pad=Hp, apply_tanh=(network_type == "q"))

    # TODO(synk): for large Bp on v7x, add a batch grid axis with
    #             dimension_semantics=("parallel",) to use both TensorCores;
    #             at Bp=8 (one sublane tile) there is nothing to shard.
    out, h_pad = pl.pallas_call(
        kernel,
        out_shape=(jax.ShapeDtypeStruct((Bp, Op), jnp.float32),
                   jax.ShapeDtypeStruct((L, Bp, Hp), jnp.float32)),
        in_specs=[vmem_spec] * len(args),
        out_specs=(vmem_spec, vmem_spec),
        scratch_shapes=[pltpu.VMEM((S * Bp, 3 * Hp), jnp.float32),
                        pltpu.VMEM((S * Bp, 3 * Hp), jnp.float32)],
    )(*args)
    return out[:B, :O], h_pad[:, :B, :H]


# ----------------------------------------------------------------------------
# Parameters: PyTorch-style raw init + host-side padding / bias folding.
# ----------------------------------------------------------------------------
def init_raw_params(key, input_dim, hidden_dim, output_dim, n_layers):
    """PyTorch-style U(-1/sqrt(H), 1/sqrt(H)) init; unpadded reference layout."""
    bound = 1.0 / float(hidden_dim) ** 0.5
    layers = []
    for l in range(n_layers):
        d_in = input_dim if l == 0 else hidden_dim
        key, k1, k2, k3, k4 = jax.random.split(key, 5)
        layers.append(dict(
            w_ih_t=jax.random.uniform(k1, (d_in, 3 * hidden_dim), jnp.float32, -bound, bound),
            w_hh_t=jax.random.uniform(k2, (hidden_dim, 3 * hidden_dim), jnp.float32, -bound, bound),
            b_ih=jax.random.uniform(k3, (3 * hidden_dim,), jnp.float32, -bound, bound),
            b_hh=jax.random.uniform(k4, (3 * hidden_dim,), jnp.float32, -bound, bound)))
    key, k5, k6 = jax.random.split(key, 3)
    w_fc_t = jax.random.uniform(k5, (hidden_dim, output_dim), jnp.float32, -bound, bound)
    b_fc = jax.random.uniform(k6, (output_dim,), jnp.float32, -bound, bound)
    return dict(gru_layers=layers, w_fc_t=w_fc_t, b_fc=b_fc)


def _pad_gate_cols(w_t, H, Hp):
    """(rows, 3H) gate-blocked [r|z|n] -> (rows, 3*Hp), each gate zero-padded to Hp."""
    return jnp.concatenate(
        [jnp.pad(w_t[:, g * H:(g + 1) * H], ((0, 0), (0, Hp - H))) for g in range(3)],
        axis=1)


def prepare_params(raw, hidden_dim, output_dim, lane=LANE):
    """Fold r/z biases; zero-pad H and O to lane multiples (exact: padded lanes stay 0)."""
    H = hidden_dim
    Hp = _round_up(H, lane)
    O = output_dim
    Op = _round_up(O, lane)
    layers = []
    for l, p in enumerate(raw["gru_layers"]):
        w_ih_t = p["w_ih_t"]
        if l > 0:  # input of layers > 0 is the (padded) hidden state
            w_ih_t = jnp.pad(w_ih_t, ((0, Hp - H), (0, 0)))
        w_ih_t = _pad_gate_cols(w_ih_t, H, Hp)
        w_hh_t = _pad_gate_cols(jnp.pad(p["w_hh_t"], ((0, Hp - H), (0, 0))), H, Hp)
        b_ih, b_hh = p["b_ih"], p["b_hh"]
        b_comb = jnp.concatenate([
            jnp.pad(b_ih[0:H] + b_hh[0:H], (0, Hp - H)),           # r (folded)
            jnp.pad(b_ih[H:2 * H] + b_hh[H:2 * H], (0, Hp - H)),   # z (folded)
            jnp.pad(b_ih[2 * H:3 * H], (0, Hp - H)),               # n (ih part only)
        ]).reshape(1, 3 * Hp)
        b_hn = jnp.pad(b_hh[2 * H:3 * H], (0, Hp - H)).reshape(1, Hp)
        layers.append(dict(w_ih_t=w_ih_t, w_hh_t=w_hh_t, b_comb=b_comb, b_hn=b_hn))
    w_fc_t = jnp.pad(raw["w_fc_t"], ((0, Hp - H), (0, Op - O)))
    b_fc = jnp.pad(raw["b_fc"], (0, Op - O)).reshape(1, Op)
    return dict(gru_layers=layers, w_fc_t=w_fc_t, b_fc=b_fc,
                hidden_pad=Hp, output_dim=O)


# ----------------------------------------------------------------------------
# Pure-JAX reference (unpadded, PyTorch GRU math) for correctness check.
# ----------------------------------------------------------------------------
def _reference_forward(x, h0, raw, network_type="aa"):
    B, S, _ = x.shape
    H = h0.shape[-1]
    layer_in = x
    h_finals = []
    for li, p in enumerate(raw["gru_layers"]):
        h = h0[li]
        outs = []
        for t in range(S):
            x_t = layer_in[:, t]
            gi = x_t @ p["w_ih_t"] + p["b_ih"]
            gh = h @ p["w_hh_t"] + p["b_hh"]
            r = jax.nn.sigmoid(gi[:, :H] + gh[:, :H])
            z = jax.nn.sigmoid(gi[:, H:2 * H] + gh[:, H:2 * H])
            n = jnp.tanh(gi[:, 2 * H:] + r * gh[:, 2 * H:])
            h = (1 - z) * n + z * h
            outs.append(h)
        layer_in = jnp.stack(outs, axis=1)
        h_finals.append(h)
    out = jnp.maximum(layer_in[:, -1], 0.0) @ raw["w_fc_t"] + raw["b_fc"]
    if network_type == "q":
        out = jnp.tanh(out)
    return out, jnp.stack(h_finals, axis=0)


# ----------------------------------------------------------------------------
if __name__ == "__main__":
    B, S, D_IN, H, O, L = 2, 8, 16, 32, 8, 2
    NETWORK_TYPE = "aa"

    key = jax.random.PRNGKey(0)
    key, kx, kh, kp = jax.random.split(key, 4)
    x = jax.random.normal(kx, (B, S, D_IN), jnp.float32)
    h0 = jax.random.normal(kh, (L, B, H), jnp.float32)

    raw = init_raw_params(kp, D_IN, H, O, L)
    params = prepare_params(raw, H, O)

    out, h = gru_net_forward(x, h0, params, NETWORK_TYPE)
    out = jax.block_until_ready(out)
    h = jax.block_until_ready(h)

    ref_out, ref_h = _reference_forward(x, h0, raw, NETWORK_TYPE)
    assert out.shape == (B, O) and h.shape == (L, B, H)
    assert jnp.allclose(out, ref_out, rtol=2e-5, atol=2e-5)
    assert jnp.allclose(h, ref_h, rtol=2e-5, atol=2e-5)

    print("KERNEL_OK")
</pallas_src>

<mosaic_0001>
module attributes {stable_mosaic.version = 11 : i64} {
  func.func @_fused_gru_net_kernel(%arg0: memref<64x16xf32, #tpu.memory_space<vmem>>, %arg1: memref<2x8x128xf32, #tpu.memory_space<vmem>>, %arg2: memref<16x384xf32, #tpu.memory_space<vmem>>, %arg3: memref<128x384xf32, #tpu.memory_space<vmem>>, %arg4: memref<1x384xf32, #tpu.memory_space<vmem>>, %arg5: memref<1x128xf32, #tpu.memory_space<vmem>>, %arg6: memref<128x384xf32, #tpu.memory_space<vmem>>, %arg7: memref<128x384xf32, #tpu.memory_space<vmem>>, %arg8: memref<1x384xf32, #tpu.memory_space<vmem>>, %arg9: memref<1x128xf32, #tpu.memory_space<vmem>>, %arg10: memref<128x128xf32, #tpu.memory_space<vmem>>, %arg11: memref<1x128xf32, #tpu.memory_space<vmem>>, %arg12: memref<8x128xf32, #tpu.memory_space<vmem>>, %arg13: memref<2x8x128xf32, #tpu.memory_space<vmem>>, %arg14: memref<64x384xf32, #tpu.memory_space<vmem>>, %arg15: memref<64x384xf32, #tpu.memory_space<vmem>>) attributes {dimension_semantics = [], scalar_prefetch = 0 : i64, scratch_operands = 2 : i64, tpu.core_type = #tpu.core_type<tc>} {
    %c0 = arith.constant 0 : index
    %c0_0 = arith.constant 0 : index
    %0 = vector.load %arg0[%c0, %c0_0] : memref<64x16xf32, #tpu.memory_space<vmem>>, vector<64x16xf32>
    %c0_1 = arith.constant 0 : index
    %c0_2 = arith.constant 0 : index
    %1 = vector.load %arg2[%c0_1, %c0_2] : memref<16x384xf32, #tpu.memory_space<vmem>>, vector<16x384xf32>
    %cst = arith.constant dense<0.000000e+00> : vector<64x384xf32>
    %2 = tpu.matmul %0, %1, %cst {dimension_numbers = #tpu.dot_dimension_numbers<[1], [0], [0], [1], [0, 0, 1, 1], [], []>} : vector<64x16xf32>, vector<16x384xf32>, vector<64x384xf32> -> vector<64x384xf32>
    %c0_3 = arith.constant 0 : index
    %c0_4 = arith.constant 0 : index
    %3 = vector.load %arg4[%c0_3, %c0_4] : memref<1x384xf32, #tpu.memory_space<vmem>>, vector<1x384xf32>
    %4 = vector.broadcast %3 : vector<1x384xf32> to vector<64x384xf32>
    %5 = arith.addf %2, %4 : vector<64x384xf32>
    %c0_5 = arith.constant 0 : index
    %c0_6 = arith.constant 0 : index
    %6 = vector.load %arg14[%c0_5, %c0_6] : memref<64x384xf32, #tpu.memory_space<vmem>>, vector<64x384xf32>
    tpu.vector_store %arg14[%c0_5, %c0_6], %5 {strides = array<i32>} : memref<64x384xf32, #tpu.memory_space<vmem>>, vector<64x384xf32>,
    %c0_7 = arith.constant 0 : index
    %c0_8 = arith.constant 0 : index
    %7 = vector.load %arg3[%c0_7, %c0_8] : memref<128x384xf32, #tpu.memory_space<vmem>>, vector<128x384xf32>
    %c0_9 = arith.constant 0 : index
    %c0_10 = arith.constant 0 : index
    %8 = vector.load %arg5[%c0_9, %c0_10] : memref<1x128xf32, #tpu.memory_space<vmem>>, vector<1x128xf32>
    %9 = vector.shape_cast %8 : vector<1x128xf32> to vector<1x128xf32>
    %10 = vector.broadcast %9 : vector<1x128xf32> to vector<8x128xf32>
    %c0_11 = arith.constant 0 : index
    %c0_12 = arith.constant 0 : index
    %c0_13 = arith.constant 0 : index
    %11 = vector.load %arg1[%c0_11, %c0_12, %c0_13] : memref<2x8x128xf32, #tpu.memory_space<vmem>>, vector<1x8x128xf32>
    %12 = vector.shape_cast %11 : vector<1x8x128xf32> to vector<8x128xf32>
    %cst_14 = arith.constant dense<0.000000e+00> : vector<8x384xf32>
    %13 = tpu.matmul %12, %7, %cst_14 {dimension_numbers = #tpu.dot_dimension_numbers<[1], [0], [0], [1], [0, 0, 1, 1], [], []>} : vector<8x128xf32>, vector<128x384xf32>, vector<8x384xf32> -> vector<8x384xf32>
    %c0_15 = arith.constant 0 : index
    %c0_16 = arith.constant 0 : index
    %14 = vector.load %arg6[%c0_15, %c0_16] : memref<128x384xf32, #tpu.memory_space<vmem>>, vector<128x384xf32>
    %c0_17 = arith.constant 0 : index
    %c0_18 = arith.constant 0 : index
    %15 = vector.load %arg8[%c0_17, %c0_18] : memref<1x384xf32, #tpu.memory_space<vmem>>, vector<1x384xf32>
    %16 = vector.shape_cast %15 : vector<1x384xf32> to vector<1x384xf32>
    %17 = vector.broadcast %16 : vector<1x384xf32> to vector<8x384xf32>
    %c0_19 = arith.constant 0 : index
    %c0_20 = arith.constant 0 : index
    %18 = vector.load %arg14[%c0_19, %c0_20] : memref<64x384xf32, #tpu.memory_space<vmem>>, vector<8x384xf32>
    %19 = vector.extract_strided_slice %18 {offsets = [0, 0], sizes = [8, 128], strides = [1, 1]} : vector<8x384xf32> to vector<8x128xf32>
    %20 = vector.extract_strided_slice %13 {offsets = [0, 0], sizes = [8, 128], strides = [1, 1]} : vector<8x384xf32> to vector<8x128xf32>
    %21 = arith.addf %19, %20 : vector<8x128xf32>
    %22 = arith.negf %21 : vector<8x128xf32>
    %23 = math.exp %22 : vector<8x128xf32>
    %cst_21 = arith.constant 1.000000e+00 : f32
    %24 = vector.broadcast %cst_21 : f32 to vector<8x128xf32>
    %25 = arith.addf %24, %23 : vector<8x128xf32>
    %26 = arith.divf %24, %25 : vector<8x128xf32>
    %27 = vector.extract_strided_slice %18 {offsets = [0, 128], sizes = [8, 128], strides = [1, 1]} : vector<8x384xf32> to vector<8x128xf32>
    %28 = vector.extract_strided_slice %13 {offsets = [0, 128], sizes = [8, 128], strides = [1, 1]} : vector<8x384xf32> to vector<8x128xf32>
    %29 = arith.addf %27, %28 : vector<8x128xf32>
    %30 = arith.negf %29 : vector<8x128xf32>
    %31 = math.exp %30 : vector<8x128xf32>
    %cst_22 = arith.constant 1.000000e+00 : f32
    %32 = vector.broadcast %cst_22 : f32 to vector<8x128xf32>
    %33 = arith.addf %32, %31 : vector<8x128xf32>
    %34 = arith.divf %32, %33 : vector<8x128xf32>
    %35 = vector.extract_strided_slice %18 {offsets = [0, 256], sizes = [8, 128], strides = [1, 1]} : vector<8x384xf32> to vector<8x128xf32>
    %36 = vector.extract_strided_slice %13 {offsets = [0, 256], sizes = [8, 128], strides = [1, 1]} : vector<8x384xf32> to vector<8x128xf32>
    %37 = arith.addf %36, %10 : vector<8x128xf32>
    %38 = arith.mulf %26, %37 : vector<8x128xf32>
    %39 = arith.addf %35, %38 : vector<8x128xf32>
    %40 = math.tanh %39 : vector<8x128xf32>
    %cst_23 = arith.constant 1.000000e+00 : f32
    %41 = vector.broadcast %cst_23 : f32 to vector<8x128xf32>
    %42 = arith.subf %41, %34 : vector<8x128xf32>
    %43 = arith.mulf %42, %40 : vector<8x128xf32>
    %44 = arith.mulf %34, %12 : vector<8x128xf32>
    %45 = arith.addf %43, %44 : vector<8x128xf32>
    %cst_24 = arith.constant dense<0.000000e+00> : vector<8x384xf32>
    %46 = tpu.matmul %45, %7, %cst_24 {dimension_numbers = #tpu.dot_dimension_numbers<[1], [0], [0], [1], [0, 0, 1, 1], [], []>} : vector<8x128xf32>, vector<128x384xf32>, vector<8x384xf32> -> vector<8x384xf32>
    %cst_25 = arith.constant dense<0.000000e+00> : vector<8x384xf32>
    %47 = tpu.matmul %45, %14, %cst_25 {dimension_numbers = #tpu.dot_dimension_numbers<[1], [0], [0], [1], [0, 0, 1, 1], [], []>} : vector<8x128xf32>, vector<128x384xf32>, vector<8x384xf32> -> vector<8x384xf32>
    %48 = arith.addf %47, %17 : vector<8x384xf32>
    %c0_26 = arith.constant 0 : index
    %c0_27 = arith.constant 0 : index
    %49 = vector.load %arg15[%c0_26, %c0_27] : memref<64x384xf32, #tpu.memory_space<vmem>>, vector<8x384xf32>
    tpu.vector_store %arg15[%c0_26, %c0_27], %48 {strides = array<i32>} : memref<64x384xf32, #tpu.memory_space<vmem>>, vector<8x384xf32>,
    %c8 = arith.constant 8 : index
    %c0_28 = arith.constant 0 : index
    %50 = vector.load %arg14[%c8, %c0_28] : memref<64x384xf32, #tpu.memory_space<vmem>>, vector<8x384xf32>
    %51 = vector.extract_strided_slice %50 {offsets = [0, 0], sizes = [8, 128], strides = [1, 1]} : vector<8x384xf32> to vector<8x128xf32>
    %52 = vector.extract_strided_slice %46 {offsets = [0, 0], sizes = [8, 128], strides = [1, 1]} : vector<8x384xf32> to vector<8x128xf32>
    %53 = arith.addf %51, %52 : vector<8x128xf32>
    %54 = arith.negf %53 : vector<8x128xf32>
    %55 = math.exp %54 : vector<8x128xf32>
    %cst_29 = arith.constant 1.000000e+00 : f32
    %56 = vector.broadcast %cst_29 : f32 to vector<8x128xf32>
    %57 = arith.addf %56, %55 : vector<8x128xf32>
    %58 = arith.divf %56, %57 : vector<8x128xf32>
    %59 = vector.extract_strided_slice %50 {offsets = [0, 128], sizes = [8, 128], strides = [1, 1]} : vector<8x384xf32> to vector<8x128xf32>
    %60 = vector.extract_strided_slice %46 {offsets = [0, 128], sizes = [8, 128], strides = [1, 1]} : vector<8x384xf32> to vector<8x128xf32>
    %61 = arith.addf %59, %60 : vector<8x128xf32>
    %62 = arith.negf %61 : vector<8x128xf32>
    %63 = math.exp %62 : vector<8x128xf32>
    %cst_30 = arith.constant 1.000000e+00 : f32
    %64 = vector.broadcast %cst_30 : f32 to vector<8x128xf32>
    %65 = arith.addf %64, %63 : vector<8x128xf32>
    %66 = arith.divf %64, %65 : vector<8x128xf32>
    %67 = vector.extract_strided_slice %50 {offsets = [0, 256], sizes = [8, 128], strides = [1, 1]} : vector<8x384xf32> to vector<8x128xf32>
    %68 = vector.extract_strided_slice %46 {offsets = [0, 256], sizes = [8, 128], strides = [1, 1]} : vector<8x384xf32> to vector<8x128xf32>
    %69 = arith.addf %68, %10 : vector<8x128xf32>
    %70 = arith.mulf %58, %69 : vector<8x128xf32>
    %71 = arith.addf %67, %70 : vector<8x128xf32>
    %72 = math.tanh %71 : vector<8x128xf32>
    %cst_31 = arith.constant 1.000000e+00 : f32
    %73 = vector.broadcast %cst_31 : f32 to vector<8x128xf32>
    %74 = arith.subf %73, %66 : vector<8x128xf32>
    %75 = arith.mulf %74, %72 : vector<8x128xf32>
    %76 = arith.mulf %66, %45 : vector<8x128xf32>
    %77 = arith.addf %75, %76 : vector<8x128xf32>
    %cst_32 = arith.constant dense<0.000000e+00> : vector<8x384xf32>
    %78 = tpu.matmul %77, %7, %cst_32 {dimension_numbers = #tpu.dot_dimension_numbers<[1], [0], [0], [1], [0, 0, 1, 1], [], []>} : vector<8x128xf32>, vector<128x384xf32>, vector<8x384xf32> -> vector<8x384xf32>
    %cst_33 = arith.constant dense<0.000000e+00> : vector<8x384xf32>
    %79 = tpu.matmul %77, %14, %cst_33 {dimension_numbers = #tpu.dot_dimension_numbers<[1], [0], [0], [1], [0, 0, 1, 1], [], []>} : vector<8x128xf32>, vector<128x384xf32>, vector<8x384xf32> -> vector<8x384xf32>
    %80 = arith.addf %79, %17 : vector<8x384xf32>
    %c8_34 = arith.constant 8 : index
    %c0_35 = arith.constant 0 : index
    %81 = vector.load %arg15[%c8_34, %c0_35] : memref<64x384xf32, #tpu.memory_space<vmem>>, vector<8x384xf32>
    tpu.vector_store %arg15[%c8_34, %c0_35], %80 {strides = array<i32>} : memref<64x384xf32, #tpu.memory_space<vmem>>, vector<8x384xf32>,
    %c16 = arith.constant 16 : index
    %c0_36 = arith.constant 0 : index
    %82 = vector.load %arg14[%c16, %c0_36] : memref<64x384xf32, #tpu.memory_space<vmem>>, vector<8x384xf32>
    %83 = vector.extract_strided_slice %82 {offsets = [0, 0], sizes = [8, 128], strides = [1, 1]} : vector<8x384xf32> to vector<8x128xf32>
    %84 = vector.extract_strided_slice %78 {offsets = [0, 0], sizes = [8, 128], strides = [1, 1]} : vector<8x384xf32> to vector<8x128xf32>
    %85 = arith.addf %83, %84 : vector<8x128xf32>
    %86 = arith.negf %85 : vector<8x128xf32>
    %87 = math.exp %86 : vector<8x128xf32>
    %cst_37 = arith.constant 1.000000e+00 : f32
    %88 = vector.broadcast %cst_37 : f32 to vector<8x128xf32>
    %89 = arith.addf %88, %87 : vector<8x128xf32>
    %90 = arith.divf %88, %89 : vector<8x128xf32>
    %91 = vector.extract_strided_slice %82 {offsets = [0, 128], sizes = [8, 128], strides = [1, 1]} : vector<8x384xf32> to vector<8x128xf32>
    %92 = vector.extract_strided_slice %78 {offsets = [0, 128], sizes = [8, 128], strides = [1, 1]} : vector<8x384xf32> to vector<8x128xf32>
    %93 = arith.addf %91, %92 : vector<8x128xf32>
    %94 = arith.negf %93 : vector<8x128xf32>
    %95 = math.exp %94 : vector<8x128xf32>
    %cst_38 = arith.constant 1.000000e+00 : f32
    %96 = vector.broadcast %cst_38 : f32 to vector<8x128xf32>
    %97 = arith.addf %96, %95 : vector<8x128xf32>
    %98 = arith.divf %96, %97 : vector<8x128xf32>
    %99 = vector.extract_strided_slice %82 {offsets = [0, 256], sizes = [8, 128], strides = [1, 1]} : vector<8x384xf32> to vector<8x128xf32>
    %100 = vector.extract_strided_slice %78 {offsets = [0, 256], sizes = [8, 128], strides = [1, 1]} : vector<8x384xf32> to vector<8x128xf32>
    %101 = arith.addf %100, %10 : vector<8x128xf32>
    %102 = arith.mulf %90, %101 : vector<8x128xf32>
    %103 = arith.addf %99, %102 : vector<8x128xf32>
    %104 = math.tanh %103 : vector<8x128xf32>
    %cst_39 = arith.constant 1.000000e+00 : f32
    %105 = vector.broadcast %cst_39 : f32 to vector<8x128xf32>
    %106 = arith.subf %105, %98 : vector<8x128xf32>
    %107 = arith.mulf %106, %104 : vector<8x128xf32>
    %108 = arith.mulf %98, %77 : vector<8x128xf32>
    %109 = arith.addf %107, %108 : vector<8x128xf32>
    %cst_40 = arith.constant dense<0.000000e+00> : vector<8x384xf32>
    %110 = tpu.matmul %109, %7, %cst_40 {dimension_numbers = #tpu.dot_dimension_numbers<[1], [0], [0], [1], [0, 0, 1, 1], [], []>} : vector<8x128xf32>, vector<128x384xf32>, vector<8x384xf32> -> vector<8x384xf32>
    %cst_41 = arith.constant dense<0.000000e+00> : vector<8x384xf32>
    %111 = tpu.matmul %109, %14, %cst_41 {dimension_numbers = #tpu.dot_dimension_numbers<[1], [0], [0], [1], [0, 0, 1, 1], [], []>} : vector<8x128xf32>, vector<128x384xf32>, vector<8x384xf32> -> vector<8x384xf32>
    %112 = arith.addf %111, %17 : vector<8x384xf32>
    %c16_42 = arith.constant 16 : index
    %c0_43 = arith.constant 0 : index
    %113 = vector.load %arg15[%c16_42, %c0_43] : memref<64x384xf32, #tpu.memory_space<vmem>>, vector<8x384xf32>
    tpu.vector_store %arg15[%c16_42, %c0_43], %112 {strides = array<i32>} : memref<64x384xf32, #tpu.memory_space<vmem>>, vector<8x384xf32>,
    %c24 = arith.constant 24 : index
    %c0_44 = arith.constant 0 : index
    %114 = vector.load %arg14[%c24, %c0_44] : memref<64x384xf32, #tpu.memory_space<vmem>>, vector<8x384xf32>
    %115 = vector.extract_strided_slice %114 {offsets = [0, 0], sizes = [8, 128], strides = [1, 1]} : vector<8x384xf32> to vector<8x128xf32>
    %116 = vector.extract_strided_slice %110 {offsets = [0, 0], sizes = [8, 128], strides = [1, 1]} : vector<8x384xf32> to vector<8x128xf32>
    %117 = arith.addf %115, %116 : vector<8x128xf32>
    %118 = arith.negf %117 : vector<8x128xf32>
    %119 = math.exp %118 : vector<8x128xf32>
    %cst_45 = arith.constant 1.000000e+00 : f32
    %120 = vector.broadcast %cst_45 : f32 to vector<8x128xf32>
    %121 = arith.addf %120, %119 : vector<8x128xf32>
    %122 = arith.divf %120, %121 : vector<8x128xf32>
    %123 = vector.extract_strided_slice %114 {offsets = [0, 128], sizes = [8, 128], strides = [1, 1]} : vector<8x384xf32> to vector<8x128xf32>
    %124 = vector.extract_strided_slice %110 {offsets = [0, 128], sizes = [8, 128], strides = [1, 1]} : vector<8x384xf32> to vector<8x128xf32>
    %125 = arith.addf %123, %124 : vector<8x128xf32>
    %126 = arith.negf %125 : vector<8x128xf32>
    %127 = math.exp %126 : vector<8x128xf32>
    %cst_46 = arith.constant 1.000000e+00 : f32
    %128 = vector.broadcast %cst_46 : f32 to vector<8x128xf32>
    %129 = arith.addf %128, %127 : vector<8x128xf32>
    %130 = arith.divf %128, %129 : vector<8x128xf32>
    %131 = vector.extract_strided_slice %114 {offsets = [0, 256], sizes = [8, 128], strides = [1, 1]} : vector<8x384xf32> to vector<8x128xf32>
    %132 = vector.extract_strided_slice %110 {offsets = [0, 256], sizes = [8, 128], strides = [1, 1]} : vector<8x384xf32> to vector<8x128xf32>
    %133 = arith.addf %132, %10 : vector<8x128xf32>
    %134 = arith.mulf %122, %133 : vector<8x128xf32>
    %135 = arith.addf %131, %134 : vector<8x128xf32>
    %136 = math.tanh %135 : vector<8x128xf32>
    %cst_47 = arith.constant 1.000000e+00 : f32
    %137 = vector.broadcast %cst_47 : f32 to vector<8x128xf32>
    %138 = arith.subf %137, %130 : vector<8x128xf32>
    %139 = arith.mulf %138, %136 : vector<8x128xf32>
    %140 = arith.mulf %130, %109 : vector<8x128xf32>
    %141 = arith.addf %139, %140 : vector<8x128xf32>
    %cst_48 = arith.constant dense<0.000000e+00> : vector<8x384xf32>
    %142 = tpu.matmul %141, %7, %cst_48 {dimension_numbers = #tpu.dot_dimension_numbers<[1], [0], [0], [1], [0, 0, 1, 1], [], []>} : vector<8x128xf32>, vector<128x384xf32>, vector<8x384xf32> -> vector<8x384xf32>
    %cst_49 = arith.constant dense<0.000000e+00> : vector<8x384xf32>
    %143 = tpu.matmul %141, %14, %cst_49 {dimension_numbers = #tpu.dot_dimension_numbers<[1], [0], [0], [1], [0, 0, 1, 1], [], []>} : vector<8x128xf32>, vector<128x384xf32>, vector<8x384xf32> -> vector<8x384xf32>
    %144 = arith.addf %143, %17 : vector<8x384xf32>
    %c24_50 = arith.constant 24 : index
    %c0_51 = arith.constant 0 : index
    %145 = vector.load %arg15[%c24_50, %c0_51] : memref<64x384xf32, #tpu.memory_space<vmem>>, vector<8x384xf32>
    tpu.vector_store %arg15[%c24_50, %c0_51], %144 {strides = array<i32>} : memref<64x384xf32, #tpu.memory_space<vmem>>, vector<8x384xf32>,
    %c32 = arith.constant 32 : index
    %c0_52 = arith.constant 0 : index
    %146 = vector.load %arg14[%c32, %c0_52] : memref<64x384xf32, #tpu.memory_space<vmem>>, vector<8x384xf32>
    %147 = vector.extract_strided_slice %146 {offsets = [0, 0], sizes = [8, 128], strides = [1, 1]} : vector<8x384xf32> to vector<8x128xf32>
    %148 = vector.extract_strided_slice %142 {offsets = [0, 0], sizes = [8, 128], strides = [1, 1]} : vector<8x384xf32> to vector<8x128xf32>
    %149 = arith.addf %147, %148 : vector<8x128xf32>
    %150 = arith.negf %149 : vector<8x128xf32>
    %151 = math.exp %150 : vector<8x128xf32>
    %cst_53 = arith.constant 1.000000e+00 : f32
    %152 = vector.broadcast %cst_53 : f32 to vector<8x128xf32>
    %153 = arith.addf %152, %151 : vector<8x128xf32>
    %154 = arith.divf %152, %153 : vector<8x128xf32>
    %155 = vector.extract_strided_slice %146 {offsets = [0, 128], sizes = [8, 128], strides = [1, 1]} : vector<8x384xf32> to vector<8x128xf32>
    %156 = vector.extract_strided_slice %142 {offsets = [0, 128], sizes = [8, 128], strides = [1, 1]} : vector<8x384xf32> to vector<8x128xf32>
    %157 = arith.addf %155, %156 : vector<8x128xf32>
    %158 = arith.negf %157 : vector<8x128xf32>
    %159 = math.exp %158 : vector<8x128xf32>
    %cst_54 = arith.constant 1.000000e+00 : f32
    %160 = vector.broadcast %cst_54 : f32 to vector<8x128xf32>
    %161 = arith.addf %160, %159 : vector<8x128xf32>
    %162 = arith.divf %160, %161 : vector<8x128xf32>
    %163 = vector.extract_strided_slice %146 {offsets = [0, 256], sizes = [8, 128], strides = [1, 1]} : vector<8x384xf32> to vector<8x128xf32>
    %164 = vector.extract_strided_slice %142 {offsets = [0, 256], sizes = [8, 128], strides = [1, 1]} : vector<8x384xf32> to vector<8x128xf32>
    %165 = arith.addf %164, %10 : vector<8x128xf32>
    %166 = arith.mulf %154, %165 : vector<8x128xf32>
    %167 = arith.addf %163, %166 : vector<8x128xf32>
    %168 = math.tanh %167 : vector<8x128xf32>
    %cst_55 = arith.constant 1.000000e+00 : f32
    %169 = vector.broadcast %cst_55 : f32 to vector<8x128xf32>
    %170 = arith.subf %169, %162 : vector<8x128xf32>
    %171 = arith.mulf %170, %168 : vector<8x128xf32>
    %172 = arith.mulf %162, %141 : vector<8x128xf32>
    %173 = arith.addf %171, %172 : vector<8x128xf32>
    %cst_56 = arith.constant dense<0.000000e+00> : vector<8x384xf32>
    %174 = tpu.matmul %173, %7, %cst_56 {dimension_numbers = #tpu.dot_dimension_numbers<[1], [0], [0], [1], [0, 0, 1, 1], [], []>} : vector<8x128xf32>, vector<128x384xf32>, vector<8x384xf32> -> vector<8x384xf32>
    %cst_57 = arith.constant dense<0.000000e+00> : vector<8x384xf32>
    %175 = tpu.matmul %173, %14, %cst_57 {dimension_numbers = #tpu.dot_dimension_numbers<[1], [0], [0], [1], [0, 0, 1, 1], [], []>} : vector<8x128xf32>, vector<128x384xf32>, vector<8x384xf32> -> vector<8x384xf32>
    %176 = arith.addf %175, %17 : vector<8x384xf32>
    %c32_58 = arith.constant 32 : index
    %c0_59 = arith.constant 0 : index
    %177 = vector.load %arg15[%c32_58, %c0_59] : memref<64x384xf32, #tpu.memory_space<vmem>>, vector<8x384xf32>
    tpu.vector_store %arg15[%c32_58, %c0_59], %176 {strides = array<i32>} : memref<64x384xf32, #tpu.memory_space<vmem>>, vector<8x384xf32>,
    %c40 = arith.constant 40 : index
    %c0_60 = arith.constant 0 : index
    %178 = vector.load %arg14[%c40, %c0_60] : memref<64x384xf32, #tpu.memory_space<vmem>>, vector<8x384xf32>
    %179 = vector.extract_strided_slice %178 {offsets = [0, 0], sizes = [8, 128], strides = [1, 1]} : vector<8x384xf32> to vector<8x128xf32>
    %180 = vector.extract_strided_slice %174 {offsets = [0, 0], sizes = [8, 128], strides = [1, 1]} : vector<8x384xf32> to vector<8x128xf32>
    %181 = arith.addf %179, %180 : vector<8x128xf32>
    %182 = arith.negf %181 : vector<8x128xf32>
    %183 = math.exp %182 : vector<8x128xf32>
    %cst_61 = arith.constant 1.000000e+00 : f32
    %184 = vector.broadcast %cst_61 : f32 to vector<8x128xf32>
    %185 = arith.addf %184, %183 : vector<8x128xf32>
    %186 = arith.divf %184, %185 : vector<8x128xf32>
    %187 = vector.extract_strided_slice %178 {offsets = [0, 128], sizes = [8, 128], strides = [1, 1]} : vector<8x384xf32> to vector<8x128xf32>
    %188 = vector.extract_strided_slice %174 {offsets = [0, 128], sizes = [8, 128], strides = [1, 1]} : vector<8x384xf32> to vector<8x128xf32>
    %189 = arith.addf %187, %188 : vector<8x128xf32>
    %190 = arith.negf %189 : vector<8x128xf32>
    %191 = math.exp %190 : vector<8x128xf32>
    %cst_62 = arith.constant 1.000000e+00 : f32
    %192 = vector.broadcast %cst_62 : f32 to vector<8x128xf32>
    %193 = arith.addf %192, %191 : vector<8x128xf32>
    %194 = arith.divf %192, %193 : vector<8x128xf32>
    %195 = vector.extract_strided_slice %178 {offsets = [0, 256], sizes = [8, 128], strides = [1, 1]} : vector<8x384xf32> to vector<8x128xf32>
    %196 = vector.extract_strided_slice %174 {offsets = [0, 256], sizes = [8, 128], strides = [1, 1]} : vector<8x384xf32> to vector<8x128xf32>
    %197 = arith.addf %196, %10 : vector<8x128xf32>
    %198 = arith.mulf %186, %197 : vector<8x128xf32>
    %199 = arith.addf %195, %198 : vector<8x128xf32>
    %200 = math.tanh %199 : vector<8x128xf32>
    %cst_63 = arith.constant 1.000000e+00 : f32
    %201 = vector.broadcast %cst_63 : f32 to vector<8x128xf32>
    %202 = arith.subf %201, %194 : vector<8x128xf32>
    %203 = arith.mulf %202, %200 : vector<8x128xf32>
    %204 = arith.mulf %194, %173 : vector<8x128xf32>
    %205 = arith.addf %203, %204 : vector<8x128xf32>
    %cst_64 = arith.constant dense<0.000000e+00> : vector<8x384xf32>
    %206 = tpu.matmul %205, %7, %cst_64 {dimension_numbers = #tpu.dot_dimension_numbers<[1], [0], [0], [1], [0, 0, 1, 1], [], []>} : vector<8x128xf32>, vector<128x384xf32>, vector<8x384xf32> -> vector<8x384xf32>
    %cst_65 = arith.constant dense<0.000000e+00> : vector<8x384xf32>
    %207 = tpu.matmul %205, %14, %cst_65 {dimension_numbers = #tpu.dot_dimension_numbers<[1], [0], [0], [1], [0, 0, 1, 1], [], []>} : vector<8x128xf32>, vector<128x384xf32>, vector<8x384xf32> -> vector<8x384xf32>
    %208 = arith.addf %207, %17 : vector<8x384xf32>
    %c40_66 = arith.constant 40 : index
    %c0_67 = arith.constant 0 : index
    %209 = vector.load %arg15[%c40_66, %c0_67] : memref<64x384xf32, #tpu.memory_space<vmem>>, vector<8x384xf32>
    tpu.vector_store %arg15[%c40_66, %c0_67], %208 {strides = array<i32>} : memref<64x384xf32, #tpu.memory_space<vmem>>, vector<8x384xf32>,
    %c48 = arith.constant 48 : index
    %c0_68 = arith.constant 0 : index
    %210 = vector.load %arg14[%c48, %c0_68] : memref<64x384xf32, #tpu.memory_space<vmem>>, vector<8x384xf32>
    %211 = vector.extract_strided_slice %210 {offsets = [0, 0], sizes = [8, 128], strides = [1, 1]} : vector<8x384xf32> to vector<8x128xf32>
    %212 = vector.extract_strided_slice %206 {offsets = [0, 0], sizes = [8, 128], strides = [1, 1]} : vector<8x384xf32> to vector<8x128xf32>
    %213 = arith.addf %211, %212 : vector<8x128xf32>
    %214 = arith.negf %213 : vector<8x128xf32>
    %215 = math.exp %214 : vector<8x128xf32>
    %cst_69 = arith.constant 1.000000e+00 : f32
    %216 = vector.broadcast %cst_69 : f32 to vector<8x128xf32>
    %217 = arith.addf %216, %215 : vector<8x128xf32>
    %218 = arith.divf %216, %217 : vector<8x128xf32>
    %219 = vector.extract_strided_slice %210 {offsets = [0, 128], sizes = [8, 128], strides = [1, 1]} : vector<8x384xf32> to vector<8x128xf32>
    %220 = vector.extract_strided_slice %206 {offsets = [0, 128], sizes = [8, 128], strides = [1, 1]} : vector<8x384xf32> to vector<8x128xf32>
    %221 = arith.addf %219, %220 : vector<8x128xf32>
    %222 = arith.negf %221 : vector<8x128xf32>
    %223 = math.exp %222 : vector<8x128xf32>
    %cst_70 = arith.constant 1.000000e+00 : f32
    %224 = vector.broadcast %cst_70 : f32 to vector<8x128xf32>
    %225 = arith.addf %224, %223 : vector<8x128xf32>
    %226 = arith.divf %224, %225 : vector<8x128xf32>
    %227 = vector.extract_strided_slice %210 {offsets = [0, 256], sizes = [8, 128], strides = [1, 1]} : vector<8x384xf32> to vector<8x128xf32>
    %228 = vector.extract_strided_slice %206 {offsets = [0, 256], sizes = [8, 128], strides = [1, 1]} : vector<8x384xf32> to vector<8x128xf32>
    %229 = arith.addf %228, %10 : vector<8x128xf32>
    %230 = arith.mulf %218, %229 : vector<8x128xf32>
    %231 = arith.addf %227, %230 : vector<8x128xf32>
    %232 = math.tanh %231 : vector<8x128xf32>
    %cst_71 = arith.constant 1.000000e+00 : f32
    %233 = vector.broadcast %cst_71 : f32 to vector<8x128xf32>
    %234 = arith.subf %233, %226 : vector<8x128xf32>
    %235 = arith.mulf %234, %232 : vector<8x128xf32>
    %236 = arith.mulf %226, %205 : vector<8x128xf32>
    %237 = arith.addf %235, %236 : vector<8x128xf32>
    %cst_72 = arith.constant dense<0.000000e+00> : vector<8x384xf32>
    %238 = tpu.matmul %237, %7, %cst_72 {dimension_numbers = #tpu.dot_dimension_numbers<[1], [0], [0], [1], [0, 0, 1, 1], [], []>} : vector<8x128xf32>, vector<128x384xf32>, vector<8x384xf32> -> vector<8x384xf32>
    %cst_73 = arith.constant dense<0.000000e+00> : vector<8x384xf32>
    %239 = tpu.matmul %237, %14, %cst_73 {dimension_numbers = #tpu.dot_dimension_numbers<[1], [0], [0], [1], [0, 0, 1, 1], [], []>} : vector<8x128xf32>, vector<128x384xf32>, vector<8x384xf32> -> vector<8x384xf32>
    %240 = arith.addf %239, %17 : vector<8x384xf32>
    %c48_74 = arith.constant 48 : index
    %c0_75 = arith.constant 0 : index
    %241 = vector.load %arg15[%c48_74, %c0_75] : memref<64x384xf32, #tpu.memory_space<vmem>>, vector<8x384xf32>
    tpu.vector_store %arg15[%c48_74, %c0_75], %240 {strides = array<i32>} : memref<64x384xf32, #tpu.memory_space<vmem>>, vector<8x384xf32>,
    %c56 = arith.constant 56 : index
    %c0_76 = arith.constant 0 : index
    %242 = vector.load %arg14[%c56, %c0_76] : memref<64x384xf32, #tpu.memory_space<vmem>>, vector<8x384xf32>
    %243 = vector.extract_strided_slice %242 {offsets = [0, 0], sizes = [8, 128], strides = [1, 1]} : vector<8x384xf32> to vector<8x128xf32>
    %244 = vector.extract_strided_slice %238 {offsets = [0, 0], sizes = [8, 128], strides = [1, 1]} : vector<8x384xf32> to vector<8x128xf32>
    %245 = arith.addf %243, %244 : vector<8x128xf32>
    %246 = arith.negf %245 : vector<8x128xf32>
    %247 = math.exp %246 : vector<8x128xf32>
    %cst_77 = arith.constant 1.000000e+00 : f32
    %248 = vector.broadcast %cst_77 : f32 to vector<8x128xf32>
    %249 = arith.addf %248, %247 : vector<8x128xf32>
    %250 = arith.divf %248, %249 : vector<8x128xf32>
    %251 = vector.extract_strided_slice %242 {offsets = [0, 128], sizes = [8, 128], strides = [1, 1]} : vector<8x384xf32> to vector<8x128xf32>
    %252 = vector.extract_strided_slice %238 {offsets = [0, 128], sizes = [8, 128], strides = [1, 1]} : vector<8x384xf32> to vector<8x128xf32>
    %253 = arith.addf %251, %252 : vector<8x128xf32>
    %254 = arith.negf %253 : vector<8x128xf32>
    %255 = math.exp %254 : vector<8x128xf32>
    %cst_78 = arith.constant 1.000000e+00 : f32
    %256 = vector.broadcast %cst_78 : f32 to vector<8x128xf32>
    %257 = arith.addf %256, %255 : vector<8x128xf32>
    %258 = arith.divf %256, %257 : vector<8x128xf32>
    %259 = vector.extract_strided_slice %242 {offsets = [0, 256], sizes = [8, 128], strides = [1, 1]} : vector<8x384xf32> to vector<8x128xf32>
    %260 = vector.extract_strided_slice %238 {offsets = [0, 256], sizes = [8, 128], strides = [1, 1]} : vector<8x384xf32> to vector<8x128xf32>
    %261 = arith.addf %260, %10 : vector<8x128xf32>
    %262 = arith.mulf %250, %261 : vector<8x128xf32>
    %263 = arith.addf %259, %262 : vector<8x128xf32>
    %264 = math.tanh %263 : vector<8x128xf32>
    %cst_79 = arith.constant 1.000000e+00 : f32
    %265 = vector.broadcast %cst_79 : f32 to vector<8x128xf32>
    %266 = arith.subf %265, %258 : vector<8x128xf32>
    %267 = arith.mulf %266, %264 : vector<8x128xf32>
    %268 = arith.mulf %258, %237 : vector<8x128xf32>
    %269 = arith.addf %267, %268 : vector<8x128xf32>
    %cst_80 = arith.constant dense<0.000000e+00> : vector<8x384xf32>
    %270 = tpu.matmul %269, %14, %cst_80 {dimension_numbers = #tpu.dot_dimension_numbers<[1], [0], [0], [1], [0, 0, 1, 1], [], []>} : vector<8x128xf32>, vector<128x384xf32>, vector<8x384xf32> -> vector<8x384xf32>
    %271 = arith.addf %270, %17 : vector<8x384xf32>
    %c56_81 = arith.constant 56 : index
    %c0_82 = arith.constant 0 : index
    %272 = vector.load %arg15[%c56_81, %c0_82] : memref<64x384xf32, #tpu.memory_space<vmem>>, vector<8x384xf32>
    tpu.vector_store %arg15[%c56_81, %c0_82], %271 {strides = array<i32>} : memref<64x384xf32, #tpu.memory_space<vmem>>, vector<8x384xf32>,
    %c0_83 = arith.constant 0 : index
    %c0_84 = arith.constant 0 : index
    %c0_85 = arith.constant 0 : index
    %273 = vector.load %arg13[%c0_83, %c0_84, %c0_85] : memref<2x8x128xf32, #tpu.memory_space<vmem>>, vector<1x8x128xf32>
    %274 = vector.shape_cast %273 : vector<1x8x128xf32> to vector<8x128xf32>
    %275 = vector.shape_cast %269 : vector<8x128xf32> to vector<1x8x128xf32>
    tpu.vector_store %arg13[%c0_83, %c0_84, %c0_85], %275 {strides = array<i32>} : memref<2x8x128xf32, #tpu.memory_space<vmem>>, vector<1x8x128xf32>,
    %c0_86 = arith.constant 0 : index
    %c0_87 = arith.constant 0 : index
    %276 = vector.load %arg7[%c0_86, %c0_87] : memref<128x384xf32, #tpu.memory_space<vmem>>, vector<128x384xf32>
    %c0_88 = arith.constant 0 : index
    %c0_89 = arith.constant 0 : index
    %277 = vector.load %arg9[%c0_88, %c0_89] : memref<1x128xf32, #tpu.memory_space<vmem>>, vector<1x128xf32>
    %278 = vector.shape_cast %277 : vector<1x128xf32> to vector<1x128xf32>
    %279 = vector.broadcast %278 : vector<1x128xf32> to vector<8x128xf32>
    %c1 = arith.constant 1 : index
    %c0_90 = arith.constant 0 : index
    %c0_91 = arith.constant 0 : index
    %280 = vector.load %arg1[%c1, %c0_90, %c0_91] : memref<2x8x128xf32, #tpu.memory_space<vmem>>, vector<1x8x128xf32>
    %281 = vector.shape_cast %280 : vector<1x8x128xf32> to vector<8x128xf32>
    %cst_92 = arith.constant dense<0.000000e+00> : vector<8x384xf32>
    %282 = tpu.matmul %281, %276, %cst_92 {dimension_numbers = #tpu.dot_dimension_numbers<[1], [0], [0], [1], [0, 0, 1, 1], [], []>} : vector<8x128xf32>, vector<128x384xf32>, vector<8x384xf32> -> vector<8x384xf32>
    %c0_93 = arith.constant 0 : index
    %c0_94 = arith.constant 0 : index
    %283 = vector.load %arg15[%c0_93, %c0_94] : memref<64x384xf32, #tpu.memory_space<vmem>>, vector<8x384xf32>
    %284 = vector.extract_strided_slice %283 {offsets = [0, 0], sizes = [8, 128], strides = [1, 1]} : vector<8x384xf32> to vector<8x128xf32>
    %285 = vector.extract_strided_slice %282 {offsets = [0, 0], sizes = [8, 128], strides = [1, 1]} : vector<8x384xf32> to vector<8x128xf32>
    %286 = arith.addf %284, %285 : vector<8x128xf32>
    %287 = arith.negf %286 : vector<8x128xf32>
    %288 = math.exp %287 : vector<8x128xf32>
    %cst_95 = arith.constant 1.000000e+00 : f32
    %289 = vector.broadcast %cst_95 : f32 to vector<8x128xf32>
    %290 = arith.addf %289, %288 : vector<8x128xf32>
    %291 = arith.divf %289, %290 : vector<8x128xf32>
    %292 = vector.extract_strided_slice %283 {offsets = [0, 128], sizes = [8, 128], strides = [1, 1]} : vector<8x384xf32> to vector<8x128xf32>
    %293 = vector.extract_strided_slice %282 {offsets = [0, 128], sizes = [8, 128], strides = [1, 1]} : vector<8x384xf32> to vector<8x128xf32>
    %294 = arith.addf %292, %293 : vector<8x128xf32>
    %295 = arith.negf %294 : vector<8x128xf32>
    %296 = math.exp %295 : vector<8x128xf32>
    %cst_96 = arith.constant 1.000000e+00 : f32
    %297 = vector.broadcast %cst_96 : f32 to vector<8x128xf32>
    %298 = arith.addf %297, %296 : vector<8x128xf32>
    %299 = arith.divf %297, %298 : vector<8x128xf32>
    %300 = vector.extract_strided_slice %283 {offsets = [0, 256], sizes = [8, 128], strides = [1, 1]} : vector<8x384xf32> to vector<8x128xf32>
    %301 = vector.extract_strided_slice %282 {offsets = [0, 256], sizes = [8, 128], strides = [1, 1]} : vector<8x384xf32> to vector<8x128xf32>
    %302 = arith.addf %301, %279 : vector<8x128xf32>
    %303 = arith.mulf %291, %302 : vector<8x128xf32>
    %304 = arith.addf %300, %303 : vector<8x128xf32>
    %305 = math.tanh %304 : vector<8x128xf32>
    %cst_97 = arith.constant 1.000000e+00 : f32
    %306 = vector.broadcast %cst_97 : f32 to vector<8x128xf32>
    %307 = arith.subf %306, %299 : vector<8x128xf32>
    %308 = arith.mulf %307, %305 : vector<8x128xf32>
    %309 = arith.mulf %299, %281 : vector<8x128xf32>
    %310 = arith.addf %308, %309 : vector<8x128xf32>
    %cst_98 = arith.constant dense<0.000000e+00> : vector<8x384xf32>
    %311 = tpu.matmul %310, %276, %cst_98 {dimension_numbers = #tpu.dot_dimension_numbers<[1], [0], [0], [1], [0, 0, 1, 1], [], []>} : vector<8x128xf32>, vector<128x384xf32>, vector<8x384xf32> -> vector<8x384xf32>
    %c8_99 = arith.constant 8 : index
    %c0_100 = arith.constant 0 : index
    %312 = vector.load %arg15[%c8_99, %c0_100] : memref<64x384xf32, #tpu.memory_space<vmem>>, vector<8x384xf32>
    %313 = vector.extract_strided_slice %312 {offsets = [0, 0], sizes = [8, 128], strides = [1, 1]} : vector<8x384xf32> to vector<8x128xf32>
    %314 = vector.extract_strided_slice %311 {offsets = [0, 0], sizes = [8, 128], strides = [1, 1]} : vector<8x384xf32> to vector<8x128xf32>
    %315 = arith.addf %313, %314 : vector<8x128xf32>
    %316 = arith.negf %315 : vector<8x128xf32>
    %317 = math.exp %316 : vector<8x128xf32>
    %cst_101 = arith.constant 1.000000e+00 : f32
    %318 = vector.broadcast %cst_101 : f32 to vector<8x128xf32>
    %319 = arith.addf %318, %317 : vector<8x128xf32>
    %320 = arith.divf %318, %319 : vector<8x128xf32>
    %321 = vector.extract_strided_slice %312 {offsets = [0, 128], sizes = [8, 128], strides = [1, 1]} : vector<8x384xf32> to vector<8x128xf32>
    %322 = vector.extract_strided_slice %311 {offsets = [0, 128], sizes = [8, 128], strides = [1, 1]} : vector<8x384xf32> to vector<8x128xf32>
    %323 = arith.addf %321, %322 : vector<8x128xf32>
    %324 = arith.negf %323 : vector<8x128xf32>
    %325 = math.exp %324 : vector<8x128xf32>
    %cst_102 = arith.constant 1.000000e+00 : f32
    %326 = vector.broadcast %cst_102 : f32 to vector<8x128xf32>
    %327 = arith.addf %326, %325 : vector<8x128xf32>
    %328 = arith.divf %326, %327 : vector<8x128xf32>
    %329 = vector.extract_strided_slice %312 {offsets = [0, 256], sizes = [8, 128], strides = [1, 1]} : vector<8x384xf32> to vector<8x128xf32>
    %330 = vector.extract_strided_slice %311 {offsets = [0, 256], sizes = [8, 128], strides = [1, 1]} : vector<8x384xf32> to vector<8x128xf32>
    %331 = arith.addf %330, %279 : vector<8x128xf32>
    %332 = arith.mulf %320, %331 : vector<8x128xf32>
    %333 = arith.addf %329, %332 : vector<8x128xf32>
    %334 = math.tanh %333 : vector<8x128xf32>
    %cst_103 = arith.constant 1.000000e+00 : f32
    %335 = vector.broadcast %cst_103 : f32 to vector<8x128xf32>
    %336 = arith.subf %335, %328 : vector<8x128xf32>
    %337 = arith.mulf %336, %334 : vector<8x128xf32>
    %338 = arith.mulf %328, %310 : vector<8x128xf32>
    %339 = arith.addf %337, %338 : vector<8x128xf32>
    %cst_104 = arith.constant dense<0.000000e+00> : vector<8x384xf32>
    %340 = tpu.matmul %339, %276, %cst_104 {dimension_numbers = #tpu.dot_dimension_numbers<[1], [0], [0], [1], [0, 0, 1, 1], [], []>} : vector<8x128xf32>, vector<128x384xf32>, vector<8x384xf32> -> vector<8x384xf32>
    %c16_105 = arith.constant 16 : index
    %c0_106 = arith.constant 0 : index
    %341 = vector.load %arg15[%c16_105, %c0_106] : memref<64x384xf32, #tpu.memory_space<vmem>>, vector<8x384xf32>
    %342 = vector.extract_strided_slice %341 {offsets = [0, 0], sizes = [8, 128], strides = [1, 1]} : vector<8x384xf32> to vector<8x128xf32>
    %343 = vector.extract_strided_slice %340 {offsets = [0, 0], sizes = [8, 128], strides = [1, 1]} : vector<8x384xf32> to vector<8x128xf32>
    %344 = arith.addf %342, %343 : vector<8x128xf32>
    %345 = arith.negf %344 : vector<8x128xf32>
    %346 = math.exp %345 : vector<8x128xf32>
    %cst_107 = arith.constant 1.000000e+00 : f32
    %347 = vector.broadcast %cst_107 : f32 to vector<8x128xf32>
    %348 = arith.addf %347, %346 : vector<8x128xf32>
    %349 = arith.divf %347, %348 : vector<8x128xf32>
    %350 = vector.extract_strided_slice %341 {offsets = [0, 128], sizes = [8, 128], strides = [1, 1]} : vector<8x384xf32> to vector<8x128xf32>
    %351 = vector.extract_strided_slice %340 {offsets = [0, 128], sizes = [8, 128], strides = [1, 1]} : vector<8x384xf32> to vector<8x128xf32>
    %352 = arith.addf %350, %351 : vector<8x128xf32>
    %353 = arith.negf %352 : vector<8x128xf32>
    %354 = math.exp %353 : vector<8x128xf32>
    %cst_108 = arith.constant 1.000000e+00 : f32
    %355 = vector.broadcast %cst_108 : f32 to vector<8x128xf32>
    %356 = arith.addf %355, %354 : vector<8x128xf32>
    %357 = arith.divf %355, %356 : vector<8x128xf32>
    %358 = vector.extract_strided_slice %341 {offsets = [0, 256], sizes = [8, 128], strides = [1, 1]} : vector<8x384xf32> to vector<8x128xf32>
    %359 = vector.extract_strided_slice %340 {offsets = [0, 256], sizes = [8, 128], strides = [1, 1]} : vector<8x384xf32> to vector<8x128xf32>
    %360 = arith.addf %359, %279 : vector<8x128xf32>
    %361 = arith.mulf %349, %360 : vector<8x128xf32>
    %362 = arith.addf %358, %361 : vector<8x128xf32>
    %363 = math.tanh %362 : vector<8x128xf32>
    %cst_109 = arith.constant 1.000000e+00 : f32
    %364 = vector.broadcast %cst_109 : f32 to vector<8x128xf32>
    %365 = arith.subf %364, %357 : vector<8x128xf32>
    %366 = arith.mulf %365, %363 : vector<8x128xf32>
    %367 = arith.mulf %357, %339 : vector<8x128xf32>
    %368 = arith.addf %366, %367 : vector<8x128xf32>
    %cst_110 = arith.constant dense<0.000000e+00> : vector<8x384xf32>
    %369 = tpu.matmul %368, %276, %cst_110 {dimension_numbers = #tpu.dot_dimension_numbers<[1], [0], [0], [1], [0, 0, 1, 1], [], []>} : vector<8x128xf32>, vector<128x384xf32>, vector<8x384xf32> -> vector<8x384xf32>
    %c24_111 = arith.constant 24 : index
    %c0_112 = arith.constant 0 : index
    %370 = vector.load %arg15[%c24_111, %c0_112] : memref<64x384xf32, #tpu.memory_space<vmem>>, vector<8x384xf32>
    %371 = vector.extract_strided_slice %370 {offsets = [0, 0], sizes = [8, 128], strides = [1, 1]} : vector<8x384xf32> to vector<8x128xf32>
    %372 = vector.extract_strided_slice %369 {offsets = [0, 0], sizes = [8, 128], strides = [1, 1]} : vector<8x384xf32> to vector<8x128xf32>
    %373 = arith.addf %371, %372 : vector<8x128xf32>
    %374 = arith.negf %373 : vector<8x128xf32>
    %375 = math.exp %374 : vector<8x128xf32>
    %cst_113 = arith.constant 1.000000e+00 : f32
    %376 = vector.broadcast %cst_113 : f32 to vector<8x128xf32>
    %377 = arith.addf %376, %375 : vector<8x128xf32>
    %378 = arith.divf %376, %377 : vector<8x128xf32>
    %379 = vector.extract_strided_slice %370 {offsets = [0, 128], sizes = [8, 128], strides = [1, 1]} : vector<8x384xf32> to vector<8x128xf32>
    %380 = vector.extract_strided_slice %369 {offsets = [0, 128], sizes = [8, 128], strides = [1, 1]} : vector<8x384xf32> to vector<8x128xf32>
    %381 = arith.addf %379, %380 : vector<8x128xf32>
    %382 = arith.negf %381 : vector<8x128xf32>
    %383 = math.exp %382 : vector<8x128xf32>
    %cst_114 = arith.constant 1.000000e+00 : f32
    %384 = vector.broadcast %cst_114 : f32 to vector<8x128xf32>
    %385 = arith.addf %384, %383 : vector<8x128xf32>
    %386 = arith.divf %384, %385 : vector<8x128xf32>
    %387 = vector.extract_strided_slice %370 {offsets = [0, 256], sizes = [8, 128], strides = [1, 1]} : vector<8x384xf32> to vector<8x128xf32>
    %388 = vector.extract_strided_slice %369 {offsets = [0, 256], sizes = [8, 128], strides = [1, 1]} : vector<8x384xf32> to vector<8x128xf32>
    %389 = arith.addf %388, %279 : vector<8x128xf32>
    %390 = arith.mulf %378, %389 : vector<8x128xf32>
    %391 = arith.addf %387, %390 : vector<8x128xf32>
    %392 = math.tanh %391 : vector<8x128xf32>
    %cst_115 = arith.constant 1.000000e+00 : f32
    %393 = vector.broadcast %cst_115 : f32 to vector<8x128xf32>
    %394 = arith.subf %393, %386 : vector<8x128xf32>
    %395 = arith.mulf %394, %392 : vector<8x128xf32>
    %396 = arith.mulf %386, %368 : vector<8x128xf32>
    %397 = arith.addf %395, %396 : vector<8x128xf32>
    %cst_116 = arith.constant dense<0.000000e+00> : vector<8x384xf32>
    %398 = tpu.matmul %397, %276, %cst_116 {dimension_numbers = #tpu.dot_dimension_numbers<[1], [0], [0], [1], [0, 0, 1, 1], [], []>} : vector<8x128xf32>, vector<128x384xf32>, vector<8x384xf32> -> vector<8x384xf32>
    %c32_117 = arith.constant 32 : index
    %c0_118 = arith.constant 0 : index
    %399 = vector.load %arg15[%c32_117, %c0_118] : memref<64x384xf32, #tpu.memory_space<vmem>>, vector<8x384xf32>
    %400 = vector.extract_strided_slice %399 {offsets = [0, 0], sizes = [8, 128], strides = [1, 1]} : vector<8x384xf32> to vector<8x128xf32>
    %401 = vector.extract_strided_slice %398 {offsets = [0, 0], sizes = [8, 128], strides = [1, 1]} : vector<8x384xf32> to vector<8x128xf32>
    %402 = arith.addf %400, %401 : vector<8x128xf32>
    %403 = arith.negf %402 : vector<8x128xf32>
    %404 = math.exp %403 : vector<8x128xf32>
    %cst_119 = arith.constant 1.000000e+00 : f32
    %405 = vector.broadcast %cst_119 : f32 to vector<8x128xf32>
    %406 = arith.addf %405, %404 : vector<8x128xf32>
    %407 = arith.divf %405, %406 : vector<8x128xf32>
    %408 = vector.extract_strided_slice %399 {offsets = [0, 128], sizes = [8, 128], strides = [1, 1]} : vector<8x384xf32> to vector<8x128xf32>
    %409 = vector.extract_strided_slice %398 {offsets = [0, 128], sizes = [8, 128], strides = [1, 1]} : vector<8x384xf32> to vector<8x128xf32>
    %410 = arith.addf %408, %409 : vector<8x128xf32>
    %411 = arith.negf %410 : vector<8x128xf32>
    %412 = math.exp %411 : vector<8x128xf32>
    %cst_120 = arith.constant 1.000000e+00 : f32
    %413 = vector.broadcast %cst_120 : f32 to vector<8x128xf32>
    %414 = arith.addf %413, %412 : vector<8x128xf32>
    %415 = arith.divf %413, %414 : vector<8x128xf32>
    %416 = vector.extract_strided_slice %399 {offsets = [0, 256], sizes = [8, 128], strides = [1, 1]} : vector<8x384xf32> to vector<8x128xf32>
    %417 = vector.extract_strided_slice %398 {offsets = [0, 256], sizes = [8, 128], strides = [1, 1]} : vector<8x384xf32> to vector<8x128xf32>
    %418 = arith.addf %417, %279 : vector<8x128xf32>
    %419 = arith.mulf %407, %418 : vector<8x128xf32>
    %420 = arith.addf %416, %419 : vector<8x128xf32>
    %421 = math.tanh %420 : vector<8x128xf32>
    %cst_121 = arith.constant 1.000000e+00 : f32
    %422 = vector.broadcast %cst_121 : f32 to vector<8x128xf32>
    %423 = arith.subf %422, %415 : vector<8x128xf32>
    %424 = arith.mulf %423, %421 : vector<8x128xf32>
    %425 = arith.mulf %415, %397 : vector<8x128xf32>
    %426 = arith.addf %424, %425 : vector<8x128xf32>
    %cst_122 = arith.constant dense<0.000000e+00> : vector<8x384xf32>
    %427 = tpu.matmul %426, %276, %cst_122 {dimension_numbers = #tpu.dot_dimension_numbers<[1], [0], [0], [1], [0, 0, 1, 1], [], []>} : vector<8x128xf32>, vector<128x384xf32>, vector<8x384xf32> -> vector<8x384xf32>
    %c40_123 = arith.constant 40 : index
    %c0_124 = arith.constant 0 : index
    %428 = vector.load %arg15[%c40_123, %c0_124] : memref<64x384xf32, #tpu.memory_space<vmem>>, vector<8x384xf32>
    %429 = vector.extract_strided_slice %428 {offsets = [0, 0], sizes = [8, 128], strides = [1, 1]} : vector<8x384xf32> to vector<8x128xf32>
    %430 = vector.extract_strided_slice %427 {offsets = [0, 0], sizes = [8, 128], strides = [1, 1]} : vector<8x384xf32> to vector<8x128xf32>
    %431 = arith.addf %429, %430 : vector<8x128xf32>
    %432 = arith.negf %431 : vector<8x128xf32>
    %433 = math.exp %432 : vector<8x128xf32>
    %cst_125 = arith.constant 1.000000e+00 : f32
    %434 = vector.broadcast %cst_125 : f32 to vector<8x128xf32>
    %435 = arith.addf %434, %433 : vector<8x128xf32>
    %436 = arith.divf %434, %435 : vector<8x128xf32>
    %437 = vector.extract_strided_slice %428 {offsets = [0, 128], sizes = [8, 128], strides = [1, 1]} : vector<8x384xf32> to vector<8x128xf32>
    %438 = vector.extract_strided_slice %427 {offsets = [0, 128], sizes = [8, 128], strides = [1, 1]} : vector<8x384xf32> to vector<8x128xf32>
    %439 = arith.addf %437, %438 : vector<8x128xf32>
    %440 = arith.negf %439 : vector<8x128xf32>
    %441 = math.exp %440 : vector<8x128xf32>
    %cst_126 = arith.constant 1.000000e+00 : f32
    %442 = vector.broadcast %cst_126 : f32 to vector<8x128xf32>
    %443 = arith.addf %442, %441 : vector<8x128xf32>
    %444 = arith.divf %442, %443 : vector<8x128xf32>
    %445 = vector.extract_strided_slice %428 {offsets = [0, 256], sizes = [8, 128], strides = [1, 1]} : vector<8x384xf32> to vector<8x128xf32>
    %446 = vector.extract_strided_slice %427 {offsets = [0, 256], sizes = [8, 128], strides = [1, 1]} : vector<8x384xf32> to vector<8x128xf32>
    %447 = arith.addf %446, %279 : vector<8x128xf32>
    %448 = arith.mulf %436, %447 : vector<8x128xf32>
    %449 = arith.addf %445, %448 : vector<8x128xf32>
    %450 = math.tanh %449 : vector<8x128xf32>
    %cst_127 = arith.constant 1.000000e+00 : f32
    %451 = vector.broadcast %cst_127 : f32 to vector<8x128xf32>
    %452 = arith.subf %451, %444 : vector<8x128xf32>
    %453 = arith.mulf %452, %450 : vector<8x128xf32>
    %454 = arith.mulf %444, %426 : vector<8x128xf32>
    %455 = arith.addf %453, %454 : vector<8x128xf32>
    %cst_128 = arith.constant dense<0.000000e+00> : vector<8x384xf32>
    %456 = tpu.matmul %455, %276, %cst_128 {dimension_numbers = #tpu.dot_dimension_numbers<[1], [0], [0], [1], [0, 0, 1, 1], [], []>} : vector<8x128xf32>, vector<128x384xf32>, vector<8x384xf32> -> vector<8x384xf32>
    %c48_129 = arith.constant 48 : index
    %c0_130 = arith.constant 0 : index
    %457 = vector.load %arg15[%c48_129, %c0_130] : memref<64x384xf32, #tpu.memory_space<vmem>>, vector<8x384xf32>
    %458 = vector.extract_strided_slice %457 {offsets = [0, 0], sizes = [8, 128], strides = [1, 1]} : vector<8x384xf32> to vector<8x128xf32>
    %459 = vector.extract_strided_slice %456 {offsets = [0, 0], sizes = [8, 128], strides = [1, 1]} : vector<8x384xf32> to vector<8x128xf32>
    %460 = arith.addf %458, %459 : vector<8x128xf32>
    %461 = arith.negf %460 : vector<8x128xf32>
    %462 = math.exp %461 : vector<8x128xf32>
    %cst_131 = arith.constant 1.000000e+00 : f32
    %463 = vector.broadcast %cst_131 : f32 to vector<8x128xf32>
    %464 = arith.addf %463, %462 : vector<8x128xf32>
    %465 = arith.divf %463, %464 : vector<8x128xf32>
    %466 = vector.extract_strided_slice %457 {offsets = [0, 128], sizes = [8, 128], strides = [1, 1]} : vector<8x384xf32> to vector<8x128xf32>
    %467 = vector.extract_strided_slice %456 {offsets = [0, 128], sizes = [8, 128], strides = [1, 1]} : vector<8x384xf32> to vector<8x128xf32>
    %468 = arith.addf %466, %467 : vector<8x128xf32>
    %469 = arith.negf %468 : vector<8x128xf32>
    %470 = math.exp %469 : vector<8x128xf32>
    %cst_132 = arith.constant 1.000000e+00 : f32
    %471 = vector.broadcast %cst_132 : f32 to vector<8x128xf32>
    %472 = arith.addf %471, %470 : vector<8x128xf32>
    %473 = arith.divf %471, %472 : vector<8x128xf32>
    %474 = vector.extract_strided_slice %457 {offsets = [0, 256], sizes = [8, 128], strides = [1, 1]} : vector<8x384xf32> to vector<8x128xf32>
    %475 = vector.extract_strided_slice %456 {offsets = [0, 256], sizes = [8, 128], strides = [1, 1]} : vector<8x384xf32> to vector<8x128xf32>
    %476 = arith.addf %475, %279 : vector<8x128xf32>
    %477 = arith.mulf %465, %476 : vector<8x128xf32>
    %478 = arith.addf %474, %477 : vector<8x128xf32>
    %479 = math.tanh %478 : vector<8x128xf32>
    %cst_133 = arith.constant 1.000000e+00 : f32
    %480 = vector.broadcast %cst_133 : f32 to vector<8x128xf32>
    %481 = arith.subf %480, %473 : vector<8x128xf32>
    %482 = arith.mulf %481, %479 : vector<8x128xf32>
    %483 = arith.mulf %473, %455 : vector<8x128xf32>
    %484 = arith.addf %482, %483 : vector<8x128xf32>
    %cst_134 = arith.constant dense<0.000000e+00> : vector<8x384xf32>
    %485 = tpu.matmul %484, %276, %cst_134 {dimension_numbers = #tpu.dot_dimension_numbers<[1], [0], [0], [1], [0, 0, 1, 1], [], []>} : vector<8x128xf32>, vector<128x384xf32>, vector<8x384xf32> -> vector<8x384xf32>
    %c56_135 = arith.constant 56 : index
    %c0_136 = arith.constant 0 : index
    %486 = vector.load %arg15[%c56_135, %c0_136] : memref<64x384xf32, #tpu.memory_space<vmem>>, vector<8x384xf32>
    %487 = vector.extract_strided_slice %486 {offsets = [0, 0], sizes = [8, 128], strides = [1, 1]} : vector<8x384xf32> to vector<8x128xf32>
    %488 = vector.extract_strided_slice %485 {offsets = [0, 0], sizes = [8, 128], strides = [1, 1]} : vector<8x384xf32> to vector<8x128xf32>
    %489 = arith.addf %487, %488 : vector<8x128xf32>
    %490 = arith.negf %489 : vector<8x128xf32>
    %491 = math.exp %490 : vector<8x128xf32>
    %cst_137 = arith.constant 1.000000e+00 : f32
    %492 = vector.broadcast %cst_137 : f32 to vector<8x128xf32>
    %493 = arith.addf %492, %491 : vector<8x128xf32>
    %494 = arith.divf %492, %493 : vector<8x128xf32>
    %495 = vector.extract_strided_slice %486 {offsets = [0, 128], sizes = [8, 128], strides = [1, 1]} : vector<8x384xf32> to vector<8x128xf32>
    %496 = vector.extract_strided_slice %485 {offsets = [0, 128], sizes = [8, 128], strides = [1, 1]} : vector<8x384xf32> to vector<8x128xf32>
    %497 = arith.addf %495, %496 : vector<8x128xf32>
    %498 = arith.negf %497 : vector<8x128xf32>
    %499 = math.exp %498 : vector<8x128xf32>
    %cst_138 = arith.constant 1.000000e+00 : f32
    %500 = vector.broadcast %cst_138 : f32 to vector<8x128xf32>
    %501 = arith.addf %500, %499 : vector<8x128xf32>
    %502 = arith.divf %500, %501 : vector<8x128xf32>
    %503 = vector.extract_strided_slice %486 {offsets = [0, 256], sizes = [8, 128], strides = [1, 1]} : vector<8x384xf32> to vector<8x128xf32>
    %504 = vector.extract_strided_slice %485 {offsets = [0, 256], sizes = [8, 128], strides = [1, 1]} : vector<8x384xf32> to vector<8x128xf32>
    %505 = arith.addf %504, %279 : vector<8x128xf32>
    %506 = arith.mulf %494, %505 : vector<8x128xf32>
    %507 = arith.addf %503, %506 : vector<8x128xf32>
    %508 = math.tanh %507 : vector<8x128xf32>
    %cst_139 = arith.constant 1.000000e+00 : f32
    %509 = vector.broadcast %cst_139 : f32 to vector<8x128xf32>
    %510 = arith.subf %509, %502 : vector<8x128xf32>
    %511 = arith.mulf %510, %508 : vector<8x128xf32>
    %512 = arith.mulf %502, %484 : vector<8x128xf32>
    %513 = arith.addf %511, %512 : vector<8x128xf32>
    %c1_140 = arith.constant 1 : index
    %c0_141 = arith.constant 0 : index
    %c0_142 = arith.constant 0 : index
    %514 = vector.load %arg13[%c1_140, %c0_141, %c0_142] : memref<2x8x128xf32, #tpu.memory_space<vmem>>, vector<1x8x128xf32>
    %515 = vector.shape_cast %514 : vector<1x8x128xf32> to vector<8x128xf32>
    %516 = vector.shape_cast %513 : vector<8x128xf32> to vector<1x8x128xf32>
    tpu.vector_store %arg13[%c1_140, %c0_141, %c0_142], %516 {strides = array<i32>} : memref<2x8x128xf32, #tpu.memory_space<vmem>>, vector<1x8x128xf32>,
    %cst_143 = arith.constant 0.000000e+00 : f32
    %517 = vector.broadcast %cst_143 : f32 to vector<8x128xf32>
    %518 = arith.maximumf %513, %517 : vector<8x128xf32>
    %c0_144 = arith.constant 0 : index
    %c0_145 = arith.constant 0 : index
    %519 = vector.load %arg10[%c0_144, %c0_145] : memref<128x128xf32, #tpu.memory_space<vmem>>, vector<128x128xf32>
    %cst_146 = arith.constant dense<0.000000e+00> : vector<8x128xf32>
    %520 = tpu.matmul %518, %519, %cst_146 {dimension_numbers = #tpu.dot_dimension_numbers<[1], [0], [0], [1], [0, 0, 1, 1], [], []>} : vector<8x128xf32>, vector<128x128xf32>, vector<8x128xf32> -> vector<8x128xf32>
    %c0_147 = arith.constant 0 : index
    %c0_148 = arith.constant 0 : index
    %521 = vector.load %arg11[%c0_147, %c0_148] : memref<1x128xf32, #tpu.memory_space<vmem>>, vector<1x128xf32>
    %522 = vector.broadcast %521 : vector<1x128xf32> to vector<8x128xf32>
    %523 = arith.addf %520, %522 : vector<8x128xf32>
    %c0_149 = arith.constant 0 : index
    %c0_150 = arith.constant 0 : index
    %524 = vector.load %arg12[%c0_149, %c0_150] : memref<8x128xf32, #tpu.memory_space<vmem>>, vector<8x128xf32>
    tpu.vector_store %arg12[%c0_149, %c0_150], %523 {strides = array<i32>} : memref<8x128xf32, #tpu.memory_space<vmem>>, vector<8x128xf32>,
    return
  }
}

</mosaic_0001>

<bundles_post_ra>
// kernel: tpu_custom_call.1
= control target key start
LH: loop header
LB: loop body
LE: loop exit
PB: predicated region body
PF: predicated region fallthrough
CT: control target
= control target key end

     0   :  { %19 = vsyncpa [#allocation5], 0  ;;  %s9061_s0 = inlined_call_operand.vmem [shape: f32[64,16], index: 0, kind: input, shape index: {}]   ;;  %s9062_s1 = inlined_call_operand.vmem [shape: f32[2,8,128], index: 1, kind: input, shape index: {}]   ;;  %s9063_s2 = inlined_call_operand.vmem [shape: f32[16,384], index: 2, kind: input, shape index: {}]   ;;  %s9064_s3 = inlined_call_operand.hbm [shape: f32[128,384], index: 3, kind: input, shape index: {}]   ;;  %s9065_s4 = inlined_call_operand.vmem [shape: f32[1,384], index: 4, kind: input, shape index: {}]   ;;  %s9066_s5 = inlined_call_operand.vmem [shape: f32[1,128], index: 5, kind: input, shape index: {}]   ;;  %s9067_s6 = inlined_call_operand.hbm [shape: f32[128,384], index: 6, kind: input, shape index: {}]   ;;  %s9068_s7 = inlined_call_operand.hbm [shape: f32[128,384], index: 7, kind: input, shape index: {}]   ;;  %s9069_s8 = inlined_call_operand.vmem [shape: f32[1,384], index: 8, kind: input, shape index: {}]   ;;  %s9070_s9 = inlined_call_operand.vmem [shape: f32[1,128], index: 9, kind: input, shape index: {}]   ;;  %s9071_s10 = inlined_call_operand.hbm [shape: f32[128,128], index: 10, kind: input, shape index: {}]   ;;  %s9072_s11 = inlined_call_operand.vmem [shape: f32[1,128], index: 11, kind: input, shape index: {}]   ;;  %s9073_s12 = inlined_call_operand.hbm [shape: f32[8,128], index: 12, kind: output, shape index: {0}]   ;;  %s9074_s13 = inlined_call_operand.hbm [shape: f32[2,8,128], index: 13, kind: output, shape index: {1}]  }
   0x1   :  { %20 = vsyncpa [#allocation8], 0 }
   0x2   :  { %21 = vsyncpa [#allocation11], 0 }
   0x3   :  { %22 = vsyncpa [#allocation6], 0 }
   0x4   :  { %23 = vsyncpa [#allocation14], 0  ;;  %s6416_s25 = smov [#allocation7]   ;;  %s6417_s27 = smov [#allocation4]  }
   0x5   :  { %s51_s26 = sshll.u32 %s6416_s25, 4  ;;  %s35_s28 = sshll.u32 %s6417_s27, 4  ;;  %s52_s26 = int_to_ptr.vmem [resolvable:$true] %s51_s26  ;;  %s36_s28 = int_to_ptr.vmem [resolvable:$true] %s35_s28 }
   0x6   :  { %s6294_s29 = scalar_lea.vmem %s52_s26, 6144  ;;  %p6299_p1 = scmp.lt.s32.totalorder %s52_s26, %s52_s26 }
   0x7   :  { %p6295_p0 = scmp.ne.s32.totalorder %s52_s26, %s6294_s29  ;;  %p6300_p2 = scmp.lt.s32.totalorder %s6294_s29, %s6294_s29 }
   0x9   :  { %p6301_p3 = por %p6300_p2, %p6299_p1 }
   0xb   :  { %p6302_p4 = pnand %p6301_p3, %p6295_p0 }
   0xd   :  { %6305 = shalt.err (!%p6302_p4)
}
   0xe   :  { %s6418_s30 = smov 384   ;;  %s6419_s14 = smov 24  }
   0xf   :  { %57 = dma.hbm_to_vmem [thread:$0]  %s9067_s6, 6144, %s52_s26, [#allocation8], %s6418_s30, %s6418_s30, %s6419_s14  }
  0x10   :  { %s6314_s17 = scalar_lea.vmem %s36_s28, 6144  ;;  %p6319_p6 = scmp.lt.s32.totalorder %s36_s28, %s36_s28 }
  0x11   :  { %p6315_p5 = scmp.ne.s32.totalorder %s36_s28, %s6314_s17  ;;  %p6320_p7 = scmp.lt.s32.totalorder %s6314_s17, %s6314_s17 }
  0x13   :  { %p6321_p8 = por %p6320_p7, %p6319_p6 }
  0x15   :  { %p6322_p9 = pnand %p6321_p8, %p6315_p5 }
  0x17   :  { %6325 = shalt.err (!%p6322_p9)
}
  0x18   :  { %41 = dma.hbm_to_vmem [thread:$0]  %s9064_s3, 6144, %s36_s28, [#allocation5], %s6418_s30, %s6418_s30, %s6419_s14  }
  0x19   :  { %s6420_s20 = smov [#allocation9]   ;;  %s6421_s22 = smov [#allocation10]  }
  0x1a   :  { %s63_s21 = sshll.u32 %s6420_s20, 4  ;;  %s79_s23 = sshll.u32 %s6421_s22, 4  ;;  %s64_s21 = int_to_ptr.vmem [resolvable:$true] %s63_s21  ;;  %s80_s23 = int_to_ptr.vmem [resolvable:$true] %s79_s23 }
  0x1b   :  { %s6334_s24 = scalar_lea.vmem %s64_s21, 6144  ;;  %p6339_p11 = scmp.lt.s32.totalorder %s64_s21, %s64_s21 }
  0x1c   :  { %p6335_p10 = scmp.ne.s32.totalorder %s64_s21, %s6334_s24  ;;  %p6340_p12 = scmp.lt.s32.totalorder %s6334_s24, %s6334_s24 }
  0x1e   :  { %p6341_p13 = por %p6340_p12, %p6339_p11 }
  0x20   :  { %p6342_p0 = pnand %p6341_p13, %p6335_p10 }
  0x22   :  { %6345 = shalt.err (!%p6342_p0)
}
  0x23   :  { %69 = dma.hbm_to_vmem [thread:$0]  %s9068_s7, 6144, %s64_s21, [#allocation8], %s6418_s30, %s6418_s30, %s6419_s14  }
  0x24   :  { %s6354_s26 = scalar_lea.vmem %s80_s23, 2048  ;;  %p6359_p2 = scmp.lt.s32.totalorder %s80_s23, %s80_s23 }
  0x25   :  { %p6355_p1 = scmp.ne.s32.totalorder %s80_s23, %s6354_s26  ;;  %p6360_p3 = scmp.lt.s32.totalorder %s6354_s26, %s6354_s26 }
  0x27   :  { %p6361_p4 = por %p6360_p3, %p6359_p2 }
  0x29   :  { %p6362_p5 = pnand %p6361_p4, %p6355_p1 }
  0x2b   :  { %6365 = shalt.err (!%p6362_p5)
}
  0x2c   :  { %s6422_s3 = smov 128   ;;  %s6423_s27 = smov 8  }
  0x2d   :  { %85 = dma.hbm_to_vmem [thread:$0]  %s9071_s10, 2048, %s80_s23, [#allocation11], %s6422_s3, %s6422_s3, %s6423_s27  }
  0x2e   :  { %6406 = dma.done.wait [#allocation5], 6144  }
  0x2f   :  { %6407 = vsyncadd [#allocation5], 4294961152 }
  0x30   :  { %6408 = dma.done.wait [#allocation8], 12288  }
  0x31   :  { %6409 = vsyncadd [#allocation8], 4294955008 }
  0x32   :  { %6410 = dma.done.wait [#allocation11], 2048  }
  0x33   :  { %6411 = vsyncadd [#allocation11], 4294965248  ;;  %v9075_v0 = vmov 0.0   ;;  %v112_v1 = vld [vmem:[%s9063_s2 + $0x20] sm:$0xff]  ;;  %v111_v2 = vld [vmem:[%s9063_s2 + $0x18] sm:$0xff]  ;;  %vm131_vm0 = vcmask 130048  }
  0x34   :  { %220 = vmatprep.mubr.f32.mxu0 %v9075_v0  ;;  %v109_v3 = vld [vmem:[%s9063_s2 + $0x8] sm:$0xff]  ;;  %184 = vmatprep.subr.mxu0 %v112_v1  ;;  %v108_v4 = vld [vmem:[%s9063_s2] sm:$0xff]  ;;  %v6529_v6 = vld [vmem:[#allocation4 + $0x170] sm:$0xff]  ;;  %vm6425_vm1 = vmmov 0  }
  0x35   :  { %v100_v5 = vld [vmem:[%s9061_s0] sm:$0xff]  ;;  %185 = vmatpush1.msra.mxu0 %v111_v2  ;;  %v6532_v7 = vld [vmem:[#allocation4 + $0x168] sm:$0xff]  ;;  %v6534_v8 = vld [vmem:[#allocation4 + $0x158] sm:$0xff]  ;;  %v116_v2 = vlaneseq }
  0x36   :  { %5006 = vmatprep.mubr.msk.f32.mxu1 %vm131_vm0, %v100_v5  ;;  %186 = vmatprep.subr.mxu0 %v109_v3  ;;  %v6538_v9 = vld [vmem:[#allocation4 + $0x150] sm:$0xff]  ;;  %v101_v10 = vld [vmem:[%s9061_s0 + $0x8] sm:$0xff]  ;;  %v6545_v11 = vld [vmem:[#allocation4 + $0x140] sm:$0xff] }
  0x37   :  { %187 = vmatpush1.msra.mxu0 %v108_v4  ;;  %v6548_v12 = vld [vmem:[#allocation4 + $0x138] sm:$0xff]  ;;  %v6551_v13 = vld [vmem:[#allocation4 + $0x128] sm:$0xff]  ;;  %v6555_v14 = vld [vmem:[#allocation4 + $0x120] sm:$0xff]  ;;  %v6836_v3 = vshrl.u32 %v116_v2, 7 }
  0x38   :  { %4515 = vmatmul.mubr.msk.f32.vlgmr.msra.gmra.mxu0 %vm131_vm0, %v100_v5  ;;  %454 = vmatprep.subr.mxu0 %v6529_v6  ;;  %v6562_v15 = vld [vmem:[%s9061_s0 + $0x10] sm:$0xff]  ;;  %v6567_v17 = vld [vmem:[#allocation4 + $0x108] sm:$0xff]  ;;  %v6570_v18 = vld [vmem:[#allocation4 + $0xf8] sm:$0xff] }
  0x39   :  { %455 = vmatpush1.msra.mxu0 %v6532_v7  ;;  %226 = vmatprep.mubr.f32.mxu0 %v9075_v0  ;;  %v6564_v16 = vld [vmem:[#allocation4 + $0x110] sm:$0xff]  ;;  %v113_v19 = vld [vmem:[%s9063_s2 + $0x28] sm:$0xff]  ;;  %v6585_v21 = vld [vmem:[%s9061_s0 + $0x18] sm:$0xff]  ;;  %9342 = vst [vmem:[#allocation27_spill] sm:$0xff] %v6836_v3  ;;  %v9085_v4 = vsub.s32 0, %v6836_v3 }
  0x3a   :  { %456 = vmatprep.subr.mxu0 %v6534_v8  ;;  %v6578_v20 = vld [vmem:[#allocation4 + $0xf0] sm:$0xff]  ;;  %v6587_v22 = vld [vmem:[#allocation4 + $0xe0] sm:$0xff]  ;;  %v6590_v23 = vld [vmem:[#allocation4 + $0xd8] sm:$0xff]  ;;  %5002 = vmatprep.subr.mxu1 %v113_v19 }
  0x3b   :  { %457 = vmatpush1.msra.mxu0 %v6538_v9  ;;  %v6593_v24 = vld [vmem:[#allocation4 + $0xc8] sm:$0xff]  ;;  %5003 = vmatpush3.msra.mxu1 %v113_v19  ;;  %v110_v25 = vld [vmem:[%s9063_s2 + $0x10] sm:$0xff]  ;;  %v6601_v26 = vld [vmem:[#allocation4 + $0xc0] sm:$0xff] }
  0x3c   :  { %4516 = vmatmul.mubr.msk.f32.gmra.mxu0 %vm131_vm0, %v101_v10  ;;  %458 = vmatprep.subr.mxu0 %v6545_v11  ;;  %v6608_v27 = vld [vmem:[%s9061_s0 + $0x20] sm:$0xff]  ;;  %v6610_v28 = vld [vmem:[#allocation4 + $0xb0] sm:$0xff]  ;;  %v6613_v29 = vld [vmem:[#allocation4 + $0xa8] sm:$0xff] }
  0x3d   :  { %459 = vmatpush1.msra.mxu0 %v6548_v12  ;;  %232 = vmatprep.mubr.f32.mxu0 %v9075_v0  ;;  %v6616_v30 = vld [vmem:[#allocation4 + $0x98] sm:$0xff]  ;;  %v6621_v31 = vld [vmem:[#allocation4 + $0x90] sm:$0xff]  ;;  %v6628_v32 = vld [vmem:[%s9061_s0 + $0x28] sm:$0xff] }
  0x3e   :  { %460 = vmatprep.subr.mxu0 %v6551_v13  ;;  %5004 = vmatprep.subr.mxu1 %v110_v25  ;;  %v6630_v33 = vld [vmem:[#allocation4 + $0x80] sm:$0xff]  ;;  %v6633_v34 = vld [vmem:[#allocation4 + $0x78] sm:$0xff]  ;;  %v6637_v35 = vld [vmem:[#allocation4 + $0x68] sm:$0xff] }
  0x3f   :  { %461 = vmatpush1.msra.mxu0 %v6555_v14  ;;  %5005 = vmatpush3.msra.mxu1 %v110_v25  ;;  %v6640_v36 = vld [vmem:[#allocation4 + $0x178] sm:$0xff]  ;;  %v6645_v37 = vld [vmem:[#allocation4 + $0x60] sm:$0xff]  ;;  %v106_v38 = vld [vmem:[%s9061_s0 + $0x30] sm:$0xff] }
  0x40   :  { %4517 = vmatmul.mubr.msk.f32.gmra.mxu0 %vm131_vm0, %v6562_v15  ;;  %462 = vmatprep.subr.mxu0 %v6564_v16  ;;  %v6652_v39 = vld [vmem:[#allocation4 + $0x50] sm:$0xff]  ;;  %v6655_v40 = vld [vmem:[#allocation4 + $0x48] sm:$0xff]  ;;  %v6659_v41 = vld [vmem:[#allocation4 + $0x38] sm:$0xff] }
  0x41   :  { %463 = vmatpush1.msra.mxu0 %v6567_v17  ;;  %238 = vmatprep.mubr.f32.mxu0 %v9075_v0  ;;  %v6662_v42 = vld [vmem:[#allocation4 + $0x160] sm:$0xff]  ;;  %v6666_v43 = vld [vmem:[#allocation4 + $0x30] sm:$0xff]  ;;  %v107_v44 = vld [vmem:[%s9061_s0 + $0x38] sm:$0xff] }
  0x42   :  { %464 = vmatprep.subr.mxu0 %v6570_v18  ;;  %5018 = vmatprep.subr.mxu1 %v9075_v0  ;;  %v6673_v45 = vld [vmem:[#allocation4 + $0x20] sm:$0xff]  ;;  %v6676_v46 = vld [vmem:[#allocation4 + $0x18] sm:$0xff]  ;;  %v6680_v47 = vld [vmem:[#allocation4 + $0x8] sm:$0xff] }
  0x43   :  { %465 = vmatpush1.msra.mxu0 %v6578_v20  ;;  %5007 = vmatmul.mubr.msk.f32.vlgmr.msra.gmra.mxu1 %vm131_vm0, %v101_v10  ;;  %9335 = vst [vmem:[#allocation20_spill] sm:$0xff] %v6673_v45  ;;  %9336 = vst [vmem:[#allocation21_spill] sm:$0xff] %v6676_v46  ;;  %v6683_v48 = vld [vmem:[#allocation4 + $0x148] sm:$0xff]  ;;  %v6687_v49 = vld [vmem:[#allocation4] sm:$0xff] }
  0x44   :  { %4518 = vmatmul.mubr.msk.f32.gmra.mxu0 %vm131_vm0, %v6585_v21  ;;  %466 = vmatprep.subr.mxu0 %v6587_v22  ;;  %9337 = vst [vmem:[#allocation22_spill] sm:$0xff] %v6680_v47  ;;  %9338 = vst [vmem:[#allocation23_spill] sm:$0xff] %v6687_v49  ;;  %v6694_v50 = vld [vmem:[%s9062_s1] sm:$0xff]  ;;  %v6696_v51 = vld [vmem:[#allocation4 + $0x130] sm:$0xff] }
  0x45   :  { %467 = vmatpush1.msra.mxu0 %v6590_v23  ;;  %244 = vmatprep.mubr.f32.mxu0 %v9075_v0  ;;  %v6702_v52 = vld [vmem:[#allocation4 + $0x118] sm:$0xff]  ;;  %v6707_v53 = vld [vmem:[#allocation4 + $0x100] sm:$0xff]  ;;  %v6714_v54 = vld [vmem:[#allocation4 + $0xe8] sm:$0xff] }
  0x46   :  { %468 = vmatprep.subr.mxu0 %v6593_v24  ;;  %5019 = vmatpush3.msra.mxu1 %v6640_v36  ;;  %v6722_v55 = vld [vmem:[#allocation4 + $0xd0] sm:$0xff]  ;;  %v6728_v56 = vld [vmem:[#allocation4 + $0xb8] sm:$0xff]  ;;  %v6735_v57 = vld [vmem:[#allocation4 + $0xa0] sm:$0xff] }
  0x47   :  { %469 = vmatpush1.msra.mxu0 %v6601_v26  ;;  %5020 = vmatprep.subr.mxu1 %v9075_v0  ;;  %v6741_v58 = vld [vmem:[#allocation4 + $0x88] sm:$0xff]  ;;  %v6748_v59 = vld [vmem:[#allocation4 + $0x70] sm:$0xff]  ;;  %v6754_v60 = vld [vmem:[#allocation4 + $0x58] sm:$0xff] }
  0x48   :  { %4519 = vmatmul.mubr.msk.f32.gmra.mxu0 %vm131_vm0, %v6608_v27  ;;  %470 = vmatprep.subr.mxu0 %v6610_v28  ;;  %v6760_v61 = vld [vmem:[#allocation4 + $0x40] sm:$0xff]  ;;  %v6766_v62 = vld [vmem:[#allocation4 + $0x28] sm:$0xff]  ;;  %v6772_v63 = vld [vmem:[#allocation4 + $0x10] sm:$0xff] }
  0x49   :  { %471 = vmatpush1.msra.mxu0 %v6613_v29  ;;  %250 = vmatprep.mubr.f32.mxu0 %v9075_v0  ;;  %9339 = vst [vmem:[#allocation24_spill] sm:$0xff] %v6766_v62  ;;  %9340 = vst [vmem:[#allocation25_spill] sm:$0xff] %v6772_v63  ;;  %v6833_v1 = vld [vmem:[#allocation7 + $0x170] sm:$0xff]  ;;  %v114_v5 = vld [vmem:[%s9065_s4] sm:$0x7] }
  0x4a   :  { %472 = vmatprep.subr.mxu0 %v6616_v30  ;;  %5021 = vmatpush3.msra.mxu1 %v6662_v42  ;;  %9341 = vst [vmem:[#allocation26_spill] sm:$0xff] %v6833_v1 }
  0x4b   :  { %473 = vmatpush1.msra.mxu0 %v6621_v31  ;;  %5022 = vmatprep.subr.mxu1 %v9075_v0 }
  0x4c   :  { %4520 = vmatmul.mubr.msk.f32.gmra.mxu0 %vm131_vm0, %v6628_v32  ;;  %474 = vmatprep.subr.mxu0 %v6630_v33 }
  0x4d   :  { %475 = vmatpush1.msra.mxu0 %v6633_v34  ;;  %256 = vmatprep.mubr.f32.mxu0 %v9075_v0 }
  0x4e   :  { %476 = vmatprep.subr.mxu0 %v6637_v35  ;;  %5023 = vmatpush3.msra.mxu1 %v6683_v48 }
  0x4f   :  { %477 = vmatpush1.msra.mxu0 %v6645_v37  ;;  %5024 = vmatprep.subr.mxu1 %v9075_v0 }
  0x50   :  { %4521 = vmatmul.mubr.msk.f32.gmra.mxu0 %vm131_vm0, %v106_v38  ;;  %478 = vmatprep.subr.mxu0 %v6652_v39 }
  0x51   :  { %479 = vmatpush1.msra.mxu0 %v6655_v40  ;;  %262 = vmatprep.mubr.f32.mxu0 %v9075_v0 }
  0x52   :  { %480 = vmatprep.subr.mxu0 %v6659_v41  ;;  %5025 = vmatpush3.msra.mxu1 %v6696_v51 }
  0x53   :  { %481 = vmatpush1.msra.mxu0 %v6666_v43  ;;  %5026 = vmatprep.subr.mxu1 %v9075_v0 }
  0x54   :  { %4522 = vmatmul.mubr.msk.f32.gmra.mxu0 %vm131_vm0, %v107_v44  ;;  %482 = vmatprep.subr.mxu0 %v6673_v45 }
  0x55   :  { %483 = vmatpush1.msra.mxu0 %v6676_v46  ;;  %518 = vmatprep.mubr.f32.mxu0 %v9075_v0 }
  0x56   :  { %484 = vmatprep.subr.mxu0 %v6680_v47  ;;  %5009 = vmatprep.mubr.msk.f32.mxu1 %vm131_vm0, %v6562_v15  ;;  %v9087_v15 = vsub.s32 1, %v6836_v3 }
  0x57   :  { %485 = vmatpush1.msra.mxu0 %v6687_v49  ;;  %5027 = vmatpush3.msra.mxu1 %v6702_v52 }
  0x58   :  { %519 = vmatmul.mubr.f32.vlgmr.msra.gmra.mxu0 %v6694_v50  ;;  %685 = vmatprep.subr.mxu0 %v6529_v6 }
  0x59   :  { %5028 = vmatprep.subr.mxu1 %v9075_v0  ;;  %5010 = vmatmul.mubr.msk.f32.gmra.mxu1 %vm131_vm0, %v6585_v21  ;;  %v119_v21 = vrot.slane %v114_v5, %v9085_v4 }
  0x5a   :  { %5029 = vmatpush3.msra.mxu1 %v6707_v53  ;;  %5012 = vmatprep.mubr.msk.f32.mxu1 %vm131_vm0, %v6608_v27  ;;  %v123_v27 = vrot.slane %v114_v5, %v9087_v15 }
  0x5b   :  { %5030 = vmatprep.subr.mxu1 %v9075_v0  ;;  %686 = vmatpush1.msra.mxu0 %v6532_v7 }
  0x5c   :  { %5031 = vmatpush3.msra.mxu1 %v6714_v54  ;;  %687 = vmatprep.subr.mxu0 %v6534_v8 }
  0x5d   :  { %5032 = vmatprep.subr.mxu1 %v9075_v0  ;;  %5013 = vmatmul.mubr.msk.f32.gmra.mxu1 %vm131_vm0, %v6628_v32 }
  0x5e   :  { %5033 = vmatpush3.msra.mxu1 %v6722_v55  ;;  %5015 = vmatprep.mubr.msk.f32.mxu1 %vm131_vm0, %v106_v38 }
  0x5f   :  { %5034 = vmatprep.subr.mxu1 %v9075_v0  ;;  %688 = vmatpush1.msra.mxu0 %v6538_v9 }
  0x60   :  { %5035 = vmatpush3.msra.mxu1 %v6728_v56  ;;  %689 = vmatprep.subr.mxu0 %v6545_v11 }
  0x61   :  { %5036 = vmatprep.subr.mxu1 %v9075_v0  ;;  %5016 = vmatmul.mubr.msk.f32.gmra.mxu1 %vm131_vm0, %v107_v44 }
  0x62   :  { %5037 = vmatpush3.msra.mxu1 %v6735_v57  ;;  %5050 = vmatprep.mubr.msk.f32.mxu1 %vm6425_vm1, %v9075_v0 }
  0x63   :  { %5038 = vmatprep.subr.mxu1 %v9075_v0  ;;  %690 = vmatpush1.msra.mxu0 %v6548_v12 }
  0x64   :  { %5039 = vmatpush3.msra.mxu1 %v6741_v58  ;;  %691 = vmatprep.subr.mxu0 %v6551_v13 }
  0x65   :  { %5040 = vmatprep.subr.mxu1 %v9075_v0  ;;  %692 = vmatpush1.msra.mxu0 %v6555_v14 }
  0x66   :  { %5041 = vmatpush3.msra.mxu1 %v6748_v59  ;;  %693 = vmatprep.subr.mxu0 %v6564_v16 }
  0x67   :  { %5042 = vmatprep.subr.mxu1 %v9075_v0  ;;  %694 = vmatpush1.msra.mxu0 %v6567_v17 }
  0x68   :  { %5043 = vmatpush3.msra.mxu1 %v6754_v60  ;;  %695 = vmatprep.subr.mxu0 %v6570_v18 }
  0x69   :  { %5044 = vmatprep.subr.mxu1 %v9075_v0  ;;  %696 = vmatpush1.msra.mxu0 %v6578_v20 }
  0x6a   :  { %5045 = vmatpush3.msra.mxu1 %v6760_v61  ;;  %697 = vmatprep.subr.mxu0 %v6587_v22 }
  0x6b   :  { %5046 = vmatprep.subr.mxu1 %v9075_v0  ;;  %698 = vmatpush1.msra.mxu0 %v6590_v23 }
  0x6c   :  { %5047 = vmatpush3.msra.mxu1 %v6766_v62  ;;  %699 = vmatprep.subr.mxu0 %v6593_v24 }
  0x6d   :  { %5048 = vmatprep.subr.mxu1 %v9075_v0  ;;  %700 = vmatpush1.msra.mxu0 %v6601_v26 }
  0x6e   :  { %5049 = vmatpush3.msra.mxu1 %v6772_v63  ;;  %701 = vmatprep.subr.mxu0 %v6610_v28 }
  0x6f   :  { %5051 = vmatmul.mubr.f32.vlgmr.msra.gmra.mxu1 %v6694_v50  ;;  %5053 = vmatprep.subr.mxu1 %v9075_v0 }
  0x70   :  { %5054 = vmatpush3.msra.mxu1 %v6640_v36  ;;  %702 = vmatpush1.msra.mxu0 %v6613_v29 }
  0x71   :  { %5055 = vmatprep.subr.mxu1 %v9075_v0  ;;  %703 = vmatprep.subr.mxu0 %v6616_v30 }
  0x72   :  { %5056 = vmatpush3.msra.mxu1 %v6662_v42  ;;  %704 = vmatpush1.msra.mxu0 %v6621_v31 }
  0x73   :  { %5057 = vmatprep.subr.mxu1 %v9075_v0  ;;  %705 = vmatprep.subr.mxu0 %v6630_v33 }
  0x74   :  { %5058 = vmatpush3.msra.mxu1 %v6683_v48  ;;  %706 = vmatpush1.msra.mxu0 %v6633_v34 }
  0x75   :  { %5059 = vmatprep.subr.mxu1 %v9075_v0  ;;  %707 = vmatprep.subr.mxu0 %v6637_v35 }
  0x76   :  { %5060 = vmatpush3.msra.mxu1 %v6696_v51  ;;  %708 = vmatpush1.msra.mxu0 %v6645_v37 }
  0x77   :  { %5061 = vmatprep.subr.mxu1 %v9075_v0  ;;  %709 = vmatprep.subr.mxu0 %v6652_v39 }
  0x78   :  { %5062 = vmatpush3.msra.mxu1 %v6702_v52  ;;  %710 = vmatpush1.msra.mxu0 %v6655_v40 }
  0x79   :  { %5063 = vmatprep.subr.mxu1 %v9075_v0  ;;  %711 = vmatprep.subr.mxu0 %v6659_v41 }
  0x7a   :  { %5064 = vmatpush3.msra.mxu1 %v6707_v53  ;;  %712 = vmatpush1.msra.mxu0 %v6666_v43 }
  0x7b   :  { %5065 = vmatprep.subr.mxu1 %v9075_v0  ;;  %713 = vmatprep.subr.mxu0 %v6673_v45 }
  0x7c   :  { %5066 = vmatpush3.msra.mxu1 %v6714_v54  ;;  %714 = vmatpush1.msra.mxu0 %v6676_v46 }
  0x7d   :  { %5067 = vmatprep.subr.mxu1 %v9075_v0  ;;  %715 = vmatprep.subr.mxu0 %v6680_v47  ;;  %v9091_v47 = vsub.s32 2, %v6836_v3 }
  0x7e   :  { %5068 = vmatpush3.msra.mxu1 %v6722_v55  ;;  %716 = vmatpush1.msra.mxu0 %v6687_v49 }
  0x7f   :  { %5069 = vmatprep.subr.mxu1 %v9075_v0  ;;  %749 = vmatprep.mubr.f32.mxu0 %v9075_v0 }
  0x80   :  { %5070 = vmatpush3.msra.mxu1 %v6728_v56  ;;  %5085 = vmatprep.mubr.msk.f32.mxu1 %vm6425_vm1, %v9075_v0 }
  0x81   :  { %5071 = vmatprep.subr.mxu1 %v9075_v0  ;;  %826 = vmatprep.subr.mxu0 %v6833_v1 }
  0x82   :  { %5072 = vmatpush3.msra.mxu1 %v6735_v57 }
  0x83   :  { %5073 = vmatprep.subr.mxu1 %v9075_v0 }
  0x84   :  { %5074 = vmatpush3.msra.mxu1 %v6741_v58 }
  0x85   :  { %5075 = vmatprep.subr.mxu1 %v9075_v0 }
  0x86   :  { %5076 = vmatpush3.msra.mxu1 %v6748_v59 }
  0x87   :  { %5077 = vmatprep.subr.mxu1 %v9075_v0 }
  0x88   :  { %5078 = vmatpush3.msra.mxu1 %v6754_v60 }
  0x89   :  { %5079 = vmatprep.subr.mxu1 %v9075_v0 }
  0x8a   :  { %5080 = vmatpush3.msra.mxu1 %v6760_v61 }
  0x8b   :  { %5081 = vmatprep.subr.mxu1 %v9075_v0 }
  0x8c   :  { %5082 = vmatpush3.msra.mxu1 %v6766_v62 }
  0x8d   :  { %5083 = vmatprep.subr.mxu1 %v9075_v0 }
  0x8e   :  { %5084 = vmatpush3.msra.mxu1 %v6772_v63 }
  0x8f   :  { %5088 = vmatprep.subr.mxu1 %v9075_v0 }
  0xf8   :  { %v222_v10 = vpop.f32.mrf.mxu0 }
  0xfa   :  { %v224_v19 = vpop.f32.mrf.mxu0 }
  0xfc   :  { %v228_v25 = vpop.f32.mrf.mxu0 }
  0xfd   :  { %v6847_v32 = vadd.f32 %v228_v25, %v119_v21  ;;  %v127_v25 = vrot.slane %v114_v5, %v9091_v47  ;;  %v223_v47 = vadd.f32 %v222_v10, %v119_v21 }
  0xfe   :  { %v230_v38 = vpop.f32.mrf.mxu0 }
  0xff   :  { %9343 = vst [vmem:[#allocation28_spill] sm:$0xff] %v6847_v32  ;;  %v6849_v44 = vadd.f32 %v230_v38, %v123_v27 }
 0x100   :  { %v234_v2 = vpop.f32.mrf.mxu0 }
 0x101   :  { %9344 = vst [vmem:[#allocation29_spill] sm:$0xff] %v6849_v44  ;;  %v6851_v0 = vadd.f32 %v234_v2, %v119_v21 }
 0x102   :  { %v236_v1 = vpop.f32.mrf.mxu0 }
 0x103   :  { %9345 = vst [vmem:[#allocation30_spill] sm:$0xff] %v6851_v0  ;;  %v6853_v63 = vadd.f32 %v236_v1, %v123_v27  ;;  %v5008_v0 = vpop.f32.mrf.mxu1 }
 0x104   :  { %v240_v49 = vpop.f32.mrf.mxu0 }
 0x105   :  { %9346 = vst [vmem:[#allocation31_spill] sm:$0xff] %v6853_v63  ;;  %v6856_v62 = vadd.f32 %v240_v49, %v119_v21  ;;  %v6866_v63 = vadd.f32 %v5008_v0, %v127_v25 }
 0x106   :  { %v242_v4 = vpop.f32.mrf.mxu0 }
 0x107   :  { %9347 = vst [vmem:[#allocation32_spill] sm:$0xff] %v6856_v62  ;;  %v6858_v46 = vadd.f32 %v242_v4, %v123_v27  ;;  %9351 = vst [vmem:[#allocation36_spill] sm:$0xff] %v6866_v63 }
 0x108   :  { %v246_v15 = vpop.f32.mrf.mxu0 }
 0x109   :  { %9348 = vst [vmem:[#allocation33_spill] sm:$0xff] %v6858_v46  ;;  %v6862_v38 = vadd.f32 %v246_v15, %v119_v21 }
 0x10a   :  { %v248_v44 = vpop.f32.mrf.mxu0 }
 0x10b   :  { %9349 = vst [vmem:[#allocation34_spill] sm:$0xff] %v6862_v38  ;;  %v6864_v2 = vadd.f32 %v248_v44, %v123_v27 }
 0x10c   :  { %v252_v1 = vpop.f32.mrf.mxu0 }
 0x10d   :  { %9350 = vst [vmem:[#allocation35_spill] sm:$0xff] %v6864_v2  ;;  %v6868_v32 = vadd.f32 %v252_v1, %v119_v21  ;;  %v335_v1 = vpop.f32.mrf.mxu1 }
 0x10e   :  { %v254_v49 = vpop.f32.mrf.mxu0 }
 0x10f   :  { %9352 = vst [vmem:[#allocation37_spill] sm:$0xff] %v6868_v32  ;;  %v6870_v62 = vadd.f32 %v254_v49, %v123_v27 }
 0x110   :  { %v258_v4 = vpop.f32.mrf.mxu0 }
 0x111   :  { %9353 = vst [vmem:[#allocation38_spill] sm:$0xff] %v6870_v62  ;;  %v6872_v46 = vadd.f32 %v258_v4, %v119_v21  ;;  %v225_v4 = vadd.f32 %v224_v19, %v123_v27 }
 0x112   :  { %v260_v45 = vpop.f32.mrf.mxu0 }
 0x113   :  { %9354 = vst [vmem:[#allocation39_spill] sm:$0xff] %v6872_v46  ;;  %v6874_v3 = vadd.f32 %v260_v45, %v123_v27 }
 0x114   :  { %v264_v5 = vpop.f32.mrf.mxu0 }
 0x115   :  { %9355 = vst [vmem:[#allocation40_spill] sm:$0xff] %v6874_v3  ;;  %v6876_v15 = vadd.f32 %v264_v5, %v119_v21 }
 0x116   :  { %v266_v44 = vpop.f32.mrf.mxu0 }
 0x117   :  { %9356 = vst [vmem:[#allocation41_spill] sm:$0xff] %v6876_v15  ;;  %v6878_v2 = vadd.f32 %v266_v44, %v123_v27 }
 0x118   :  { %v520_v0 = vpop.f32.mrf.mxu0 }
 0x119   :  { %9357 = vst [vmem:[#allocation42_spill] sm:$0xff] %v6878_v2  ;;  %v663_v38 = vadd.f32 %v520_v0, %v223_v47  ;;  %v5011_v63 = vpop.f32.mrf.mxu1 }
 0x11a   :  { %v522_v49 = vpop.f32.mrf.mxu0  ;;  %v6880_v62 = vadd.f32 %v5011_v63, %v127_v25 }
 0x11b   :  { %v4532_v32 = vmul.f32 -1.442695, %v663_v38  ;;  %v345_v46 = vpop.f32.mrf.mxu1  ;;  %v670_v3 = vadd.f32 %v522_v49, %v225_v4  ;;  %v6895_v49 = vld [vmem:[%s9066_s5] ss:$0 sm:$0xff] }
 0x11c   :  { %9358 = vst [vmem:[#allocation43_spill] sm:$0xff] %v6880_v62  ;;  %v6882_v45 = vadd.f32 %v345_v46, %v127_v25  ;;  %v6955_v62 = vld [vmem:[#allocation7 + $0xe0] sm:$0xff] }
 0x11d   :  { %5905 = vpow2.f32 %v4532_v32  ;;  %v5014_v5 = vpop.f32.mrf.mxu1  ;;  %v4533_v44 = vmul.f32 -1.442695, %v670_v3  ;;  %9372 = vst [vmem:[#allocation56_spill] sm:$0xff] %v6955_v62 }
 0x11e   :  { %9359 = vst [vmem:[#allocation44_spill] sm:$0xff] %v6882_v45  ;;  %v6884_v15 = vadd.f32 %v5014_v5, %v127_v25  ;;  %v6959_v45 = vld [vmem:[#allocation7 + $0xd8] sm:$0xff] }
 0x11f   :  { %v355_v10 = vpop.f32.mrf.mxu1  ;;  %5907 = vpow2.f32 %v4533_v44  ;;  %9373 = vst [vmem:[#allocation57_spill] sm:$0xff] %v6959_v45 }
 0x120   :  { %9360 = vst [vmem:[#allocation45_spill] sm:$0xff] %v6884_v15  ;;  %v6886_v21 = vadd.f32 %v355_v10, %v127_v25  ;;  %v336_v10 = vadd.f32 %v335_v1, %v127_v25  ;;  %v6901_v15 = vld [vmem:[#allocation7 + $0x168] sm:$0xff]  ;;  %v6911_v1 = vld [vmem:[#allocation7 + $0x160] sm:$0xff] }
 0x121   :  { %v5017_v47 = vpop.f32.mrf.mxu1 }
 0x122   :  { %9361 = vst [vmem:[#allocation46_spill] sm:$0xff] %v6886_v21  ;;  %v6888_v0 = vadd.f32 %v5017_v47, %v127_v25  ;;  %v6903_v21 = vld [vmem:[#allocation7 + $0x178] sm:$0xff] }
 0x123   :  { %v365_v38 = vpop.f32.mrf.mxu1 }
 0x124   :  { %9362 = vst [vmem:[#allocation47_spill] sm:$0xff] %v6888_v0  ;;  %v6890_v2 = vadd.f32 %v365_v38, %v127_v25  ;;  %v6909_v25 = vld [vmem:[#allocation7 + $0x150] sm:$0xff] }
 0x126   :  { %9363 = vst [vmem:[#allocation48_spill] sm:$0xff] %v6890_v2 }
 0x12a   :  { %v5906_v63 = vpop.eup %5905 }
 0x12b   :  { %v667_v19 = vadd.f32 1.0, %v5906_v63 }
 0x12c   :  { %v5908_v32 = vpop.eup %5907 }
 0x12d   :  { %5909 = vrcp.f32 %v667_v19  ;;  %v674_v4 = vadd.f32 1.0, %v5908_v32  ;;  %v6905_v32 = vld [vmem:[#allocation7 + $0x158] sm:$0xff] }
 0x12f   :  { %v591_v46 = vpop.f32.mrf.mxu1  ;;  %5911 = vrcp.f32 %v674_v4  ;;  %v6921_v4 = vld [vmem:[#allocation7 + $0x148] sm:$0xff] }
 0x130   :  { %v677_v3 = vadd.f32 %v6895_v49, %v591_v46  ;;  %v6919_v46 = vld [vmem:[#allocation7 + $0x138] sm:$0xff] }
 0x131   :  { %v5052_v27 = vpop.f32.mrf.mxu1 }
 0x13a   :  { %v5910_v5 = vpop.eup %5909 }
 0x13b   :  { %v678_v47 = vmul.f32 %v5910_v5, %v677_v3  ;;  %v6925_v3 = vld [vmem:[#allocation7 + $0x128] sm:$0xff]  ;;  %v6929_v5 = vld [vmem:[#allocation7 + $0x120] sm:$0xff] }
 0x13c   :  { %v5912_v44 = vpop.eup %5911 }
 0x13d   :  { %v679_v38 = vadd.f32 %v678_v47, %v336_v10  ;;  %v681_v63 = vsub.f32 1.0, %v5912_v44  ;;  %v683_v27 = vmul.f32 %v5912_v44, %v6694_v50  ;;  %v6915_v50 = vld [vmem:[#allocation7 + $0x140] sm:$0xff]  ;;  %v6931_v10 = vld [vmem:[#allocation7 + $0x130] sm:$0xff]  ;;  %v6941_v44 = vld [vmem:[#allocation7 + $0x118] sm:$0xff] }
 0x13e   :  { %9365 = vst [vmem:[#allocation49_spill] sm:$0xff] %v6931_v10  ;;  %v6935_v47 = vld [vmem:[#allocation7 + $0x110] sm:$0xff]  ;;  %9368 = vst [vmem:[#allocation52_spill] sm:$0xff] %v6941_v44 }
 0x13f   :  { %5913 = vtanh.f32 %v679_v38  ;;  %9366 = vst [vmem:[#allocation50_spill] sm:$0xff] %v6935_v47  ;;  %v6939_v38 = vld [vmem:[#allocation7 + $0x108] sm:$0xff] }
 0x140   :  { %9367 = vst [vmem:[#allocation51_spill] sm:$0xff] %v6939_v38 }
 0x14c   :  { %v5914_v19 = vpop.eup %5913 }
 0x14d   :  { %v682_v0 = vmul.f32 %v5914_v19, %v681_v63  ;;  %v6945_v63 = vld [vmem:[#allocation7 + $0xf8] sm:$0xff]  ;;  %v6949_v19 = vld [vmem:[#allocation7 + $0xf0] sm:$0xff] }
 0x14e   :  { %9369 = vst [vmem:[#allocation53_spill] sm:$0xff] %v6945_v63  ;;  %9370 = vst [vmem:[#allocation54_spill] sm:$0xff] %v6949_v19 }
 0x14f   :  { %v6899_v2 = vadd.f32 %v683_v27, %v682_v0  ;;  %v9364_v0 = vmov 0.0   ;;  %v6951_v27 = vld [vmem:[#allocation7 + $0x100] sm:$0xff] }
 0x150   :  { %9371 = vst [vmem:[#allocation55_spill] sm:$0xff] %v6951_v27 }
 0x151   :  { %750 = vmatmul.mubr.f32.vlgmr.msra.gmra.mxu0 %v6899_v2  ;;  %5086 = vmatmul.mubr.f32.vlgmr.msra.gmra.mxu1 %v6899_v2 }
 0x152   :  { %827 = vmatpush1.msra.mxu0 %v6901_v15  ;;  %5089 = vmatpush3.msra.mxu1 %v6903_v21 }
 0x153   :  { %828 = vmatprep.subr.mxu0 %v6905_v32  ;;  %5090 = vmatprep.subr.mxu1 %v9364_v0 }
 0x154   :  { %829 = vmatpush1.msra.mxu0 %v6909_v25  ;;  %5091 = vmatpush3.msra.mxu1 %v6911_v1 }
 0x155   :  { %830 = vmatprep.subr.mxu0 %v6915_v50  ;;  %5092 = vmatprep.subr.mxu1 %v9364_v0 }
 0x156   :  { %831 = vmatpush1.msra.mxu0 %v6919_v46  ;;  %5093 = vmatpush3.msra.mxu1 %v6921_v4 }
 0x157   :  { %832 = vmatprep.subr.mxu0 %v6925_v3  ;;  %5094 = vmatprep.subr.mxu1 %v9364_v0 }
 0x158   :  { %833 = vmatpush1.msra.mxu0 %v6929_v5  ;;  %5095 = vmatpush3.msra.mxu1 %v6931_v10  ;;  %v6961_v10 = vld [vmem:[#allocation7 + $0xe8] sm:$0xff] }
 0x159   :  { %834 = vmatprep.subr.mxu0 %v6935_v47  ;;  %5096 = vmatprep.subr.mxu1 %v9364_v0  ;;  %9374 = vst [vmem:[#allocation58_spill] sm:$0xff] %v6961_v10  ;;  %v6965_v47 = vld [vmem:[#allocation7 + $0xc8] sm:$0xff] }
 0x15a   :  { %835 = vmatpush1.msra.mxu0 %v6939_v38  ;;  %5097 = vmatpush3.msra.mxu1 %v6941_v44  ;;  %9375 = vst [vmem:[#allocation59_spill] sm:$0xff] %v6965_v47  ;;  %v6969_v44 = vld [vmem:[#allocation7 + $0xc0] sm:$0xff]  ;;  %v6971_v38 = vld [vmem:[#allocation7 + $0xd0] sm:$0xff] }
 0x15b   :  { %836 = vmatprep.subr.mxu0 %v6945_v63  ;;  %5098 = vmatprep.subr.mxu1 %v9364_v0  ;;  %9376 = vst [vmem:[#allocation60_spill] sm:$0xff] %v6969_v44  ;;  %9377 = vst [vmem:[#allocation61_spill] sm:$0xff] %v6971_v38  ;;  %v6975_v63 = vld [vmem:[#allocation7 + $0xb0] sm:$0xff] }
 0x15c   :  { %837 = vmatpush1.msra.mxu0 %v6949_v19  ;;  %5099 = vmatpush3.msra.mxu1 %v6951_v27  ;;  %9378 = vst [vmem:[#allocation62_spill] sm:$0xff] %v6975_v63  ;;  %v6979_v27 = vld [vmem:[#allocation7 + $0xa8] sm:$0xff]  ;;  %v6981_v19 = vld [vmem:[#allocation7 + $0xb8] sm:$0xff] }
 0x15d   :  { %838 = vmatprep.subr.mxu0 %v6955_v62  ;;  %5100 = vmatprep.subr.mxu1 %v9364_v0  ;;  %9379 = vst [vmem:[#allocation63_spill] sm:$0xff] %v6979_v27  ;;  %9380 = vst [vmem:[#allocation64_spill] sm:$0xff] %v6981_v19  ;;  %v6985_v62 = vld [vmem:[#allocation7 + $0x98] sm:$0xff] }
 0x15e   :  { %839 = vmatpush1.msra.mxu0 %v6959_v45  ;;  %5101 = vmatpush3.msra.mxu1 %v6961_v10  ;;  %9381 = vst [vmem:[#allocation65_spill] sm:$0xff] %v6985_v62  ;;  %v6989_v10 = vld [vmem:[#allocation7 + $0x90] sm:$0xff]  ;;  %v6991_v45 = vld [vmem:[#allocation7 + $0xa0] sm:$0xff] }
 0x15f   :  { %840 = vmatprep.subr.mxu0 %v6965_v47  ;;  %5102 = vmatprep.subr.mxu1 %v9364_v0  ;;  %9382 = vst [vmem:[#allocation66_spill] sm:$0xff] %v6989_v10  ;;  %9383 = vst [vmem:[#allocation67_spill] sm:$0xff] %v6991_v45  ;;  %v6995_v47 = vld [vmem:[#allocation7 + $0x80] sm:$0xff] }
 0x160   :  { %841 = vmatpush1.msra.mxu0 %v6969_v44  ;;  %5103 = vmatpush3.msra.mxu1 %v6971_v38  ;;  %9384 = vst [vmem:[#allocation68_spill] sm:$0xff] %v6995_v47  ;;  %v6999_v38 = vld [vmem:[#allocation7 + $0x78] sm:$0xff]  ;;  %v7001_v44 = vld [vmem:[#allocation7 + $0x88] sm:$0xff] }
 0x161   :  { %842 = vmatprep.subr.mxu0 %v6975_v63  ;;  %5104 = vmatprep.subr.mxu1 %v9364_v0  ;;  %9385 = vst [vmem:[#allocation69_spill] sm:$0xff] %v6999_v38  ;;  %9386 = vst [vmem:[#allocation70_spill] sm:$0xff] %v7001_v44  ;;  %v7005_v63 = vld [vmem:[#allocation7 + $0x68] sm:$0xff] }
 0x162   :  { %843 = vmatpush1.msra.mxu0 %v6979_v27  ;;  %5105 = vmatpush3.msra.mxu1 %v6981_v19  ;;  %9387 = vst [vmem:[#allocation71_spill] sm:$0xff] %v7005_v63  ;;  %v7009_v19 = vld [vmem:[#allocation7 + $0x60] sm:$0xff]  ;;  %v7011_v27 = vld [vmem:[#allocation7 + $0x70] sm:$0xff] }
 0x163   :  { %844 = vmatprep.subr.mxu0 %v6985_v62  ;;  %5106 = vmatprep.subr.mxu1 %v9364_v0  ;;  %9388 = vst [vmem:[#allocation72_spill] sm:$0xff] %v7009_v19  ;;  %9389 = vst [vmem:[#allocation73_spill] sm:$0xff] %v7011_v27  ;;  %v7015_v62 = vld [vmem:[#allocation7 + $0x50] sm:$0xff] }
 0x164   :  { %845 = vmatpush1.msra.mxu0 %v6989_v10  ;;  %5107 = vmatpush3.msra.mxu1 %v6991_v45  ;;  %9390 = vst [vmem:[#allocation74_spill] sm:$0xff] %v7015_v62  ;;  %v7019_v45 = vld [vmem:[#allocation7 + $0x48] sm:$0xff]  ;;  %v7021_v10 = vld [vmem:[#allocation7 + $0x58] sm:$0xff] }
 0x165   :  { %846 = vmatprep.subr.mxu0 %v6995_v47  ;;  %5108 = vmatprep.subr.mxu1 %v9364_v0  ;;  %9391 = vst [vmem:[#allocation75_spill] sm:$0xff] %v7021_v10  ;;  %v7025_v47 = vld [vmem:[#allocation7 + $0x38] sm:$0xff] }
 0x166   :  { %847 = vmatpush1.msra.mxu0 %v6999_v38  ;;  %5109 = vmatpush3.msra.mxu1 %v7001_v44  ;;  %9392 = vst [vmem:[#allocation76_spill] sm:$0xff] %v7025_v47  ;;  %v7029_v44 = vld [vmem:[#allocation7 + $0x30] sm:$0xff]  ;;  %v7031_v38 = vld [vmem:[#allocation7 + $0x40] sm:$0xff] }
 0x167   :  { %848 = vmatprep.subr.mxu0 %v7005_v63  ;;  %5110 = vmatprep.subr.mxu1 %v9364_v0  ;;  %v7035_v63 = vld [vmem:[#allocation7 + $0x20] sm:$0xff] }
 0x168   :  { %849 = vmatpush1.msra.mxu0 %v7009_v19  ;;  %5111 = vmatpush3.msra.mxu1 %v7011_v27  ;;  %9393 = vst [vmem:[#allocation77_spill] sm:$0xff] %v7035_v63  ;;  %v7039_v27 = vld [vmem:[#allocation7 + $0x18] sm:$0xff]  ;;  %v7041_v19 = vld [vmem:[#allocation7 + $0x28] sm:$0xff] }
 0x169   :  { %850 = vmatprep.subr.mxu0 %v7015_v62  ;;  %5112 = vmatprep.subr.mxu1 %v9364_v0  ;;  %9394 = vst [vmem:[#allocation78_spill] sm:$0xff] %v7039_v27  ;;  %9395 = vst [vmem:[#allocation79_spill] sm:$0xff] %v7041_v19  ;;  %v7045_v62 = vld [vmem:[#allocation7 + $0x8] sm:$0xff] }
 0x16a   :  { %851 = vmatpush1.msra.mxu0 %v7019_v45  ;;  %5113 = vmatpush3.msra.mxu1 %v7021_v10  ;;  %9396 = vst [vmem:[#allocation80_spill] sm:$0xff] %v7045_v62  ;;  %v7049_v10 = vld [vmem:[#allocation7] sm:$0xff] }
 0x16b   :  { %852 = vmatprep.subr.mxu0 %v7025_v47  ;;  %5114 = vmatprep.subr.mxu1 %v9364_v0  ;;  %9397 = vst [vmem:[#allocation81_spill] sm:$0xff] %v7049_v10  ;;  %v7053_v47 = vld [vmem:[#allocation7 + $0x10] sm:$0xff] }
 0x16c   :  { %853 = vmatpush1.msra.mxu0 %v7029_v44  ;;  %5115 = vmatpush3.msra.mxu1 %v7031_v38  ;;  %9398 = vst [vmem:[#allocation82_spill] sm:$0xff] %v7053_v47 }
 0x16d   :  { %854 = vmatprep.subr.mxu0 %v7035_v63  ;;  %5116 = vmatprep.subr.mxu1 %v9364_v0 }
 0x16e   :  { %855 = vmatpush1.msra.mxu0 %v7039_v27  ;;  %5117 = vmatpush3.msra.mxu1 %v7041_v19 }
 0x16f   :  { %856 = vmatprep.subr.mxu0 %v7045_v62  ;;  %5118 = vmatprep.subr.mxu1 %v9364_v0 }
 0x170   :  { %857 = vmatpush1.msra.mxu0 %v7049_v10  ;;  %890 = vmatprep.mubr.f32.mxu0 %v9364_v0 }
 0x171   :  { %5119 = vmatpush3.msra.mxu1 %v7053_v47  ;;  %5120 = vmatprep.mubr.msk.f32.mxu1 %vm6425_vm1, %v9364_v0 }
 0x172   :  { %891 = vmatmul.mubr.f32.vlgmr.msra.gmra.mxu0 %v6899_v2  ;;  %5121 = vmatmul.mubr.f32.vlgmr.msra.gmra.mxu1 %v6899_v2 }
 0x173   :  { %995 = vmatprep.subr.mxu0 %v6529_v6  ;;  %5123 = vmatprep.subr.mxu1 %v9364_v0  ;;  %v9399_v6 = vld [vmem:[#allocation20_spill] sm:$0xff] }
 0x174   :  { %996 = vmatpush1.msra.mxu0 %v6532_v7  ;;  %5124 = vmatpush3.msra.mxu1 %v6640_v36  ;;  %v9400_v7 = vld [vmem:[#allocation21_spill] sm:$0xff] }
 0x175   :  { %997 = vmatprep.subr.mxu0 %v6534_v8  ;;  %5125 = vmatprep.subr.mxu1 %v9364_v0  ;;  %v9401_v8 = vld [vmem:[#allocation24_spill] sm:$0xff] }
 0x176   :  { %998 = vmatpush1.msra.mxu0 %v6538_v9  ;;  %5126 = vmatpush3.msra.mxu1 %v6662_v42  ;;  %v9402_v9 = vld [vmem:[#allocation22_spill] sm:$0xff] }
 0x177   :  { %999 = vmatprep.subr.mxu0 %v6545_v11  ;;  %5127 = vmatprep.subr.mxu1 %v9364_v0  ;;  %v9403_v11 = vld [vmem:[#allocation23_spill] sm:$0xff] }
 0x178   :  { %1000 = vmatpush1.msra.mxu0 %v6548_v12  ;;  %5128 = vmatpush3.msra.mxu1 %v6683_v48  ;;  %v9404_v12 = vld [vmem:[#allocation25_spill] sm:$0xff] }
 0x179   :  { %1001 = vmatprep.subr.mxu0 %v6551_v13  ;;  %5129 = vmatprep.subr.mxu1 %v9364_v0  ;;  %v9405_v13 = vld [vmem:[#allocation26_spill] sm:$0xff] }
 0x17a   :  { %1002 = vmatpush1.msra.mxu0 %v6555_v14  ;;  %5130 = vmatpush3.msra.mxu1 %v6696_v51 }
 0x17b   :  { %1003 = vmatprep.subr.mxu0 %v6564_v16  ;;  %5131 = vmatprep.subr.mxu1 %v9364_v0 }
 0x17c   :  { %1004 = vmatpush1.msra.mxu0 %v6567_v17  ;;  %5132 = vmatpush3.msra.mxu1 %v6702_v52  ;;  %v9406_v17 = vld [vmem:[#allocation28_spill] sm:$0xff] }
 0x17d   :  { %1005 = vmatprep.subr.mxu0 %v6570_v18  ;;  %5133 = vmatprep.subr.mxu1 %v9364_v0 }
 0x17e   :  { %1006 = vmatpush1.msra.mxu0 %v6578_v20  ;;  %5134 = vmatpush3.msra.mxu1 %v6707_v53 }
 0x17f   :  { %1007 = vmatprep.subr.mxu0 %v6587_v22  ;;  %5135 = vmatprep.subr.mxu1 %v9364_v0 }
 0x180   :  { %1008 = vmatpush1.msra.mxu0 %v6590_v23  ;;  %5136 = vmatpush3.msra.mxu1 %v6714_v54 }
 0x181   :  { %1009 = vmatprep.subr.mxu0 %v6593_v24  ;;  %5137 = vmatprep.subr.mxu1 %v9364_v0  ;;  %v9407_v24 = vld [vmem:[#allocation29_spill] sm:$0xff] }
 0x182   :  { %1010 = vmatpush1.msra.mxu0 %v6601_v26  ;;  %5138 = vmatpush3.msra.mxu1 %v6722_v55 }
 0x183   :  { %1011 = vmatprep.subr.mxu0 %v6610_v28  ;;  %5139 = vmatprep.subr.mxu1 %v9364_v0 }
 0x184   :  { %1012 = vmatpush1.msra.mxu0 %v6613_v29  ;;  %5140 = vmatpush3.msra.mxu1 %v6728_v56 }
 0x185   :  { %1013 = vmatprep.subr.mxu0 %v6616_v30  ;;  %5141 = vmatprep.subr.mxu1 %v9364_v0 }
 0x186   :  { %1014 = vmatpush1.msra.mxu0 %v6621_v31  ;;  %5142 = vmatpush3.msra.mxu1 %v6735_v57 }
 0x187   :  { %1015 = vmatprep.subr.mxu0 %v6630_v33  ;;  %5143 = vmatprep.subr.mxu1 %v9364_v0 }
 0x188   :  { %1016 = vmatpush1.msra.mxu0 %v6633_v34  ;;  %5144 = vmatpush3.msra.mxu1 %v6741_v58 }
 0x189   :  { %1017 = vmatprep.subr.mxu0 %v6637_v35  ;;  %5145 = vmatprep.subr.mxu1 %v9364_v0 }
 0x18a   :  { %1018 = vmatpush1.msra.mxu0 %v6645_v37  ;;  %5146 = vmatpush3.msra.mxu1 %v6748_v59 }
 0x18b   :  { %1019 = vmatprep.subr.mxu0 %v6652_v39  ;;  %5147 = vmatprep.subr.mxu1 %v9364_v0 }
 0x18c   :  { %1020 = vmatpush1.msra.mxu0 %v6655_v40  ;;  %5148 = vmatpush3.msra.mxu1 %v6754_v60  ;;  %v9409_v40 = vld [vmem:[#allocation36_spill] sm:$0xff] }
 0x18d   :  { %1021 = vmatprep.subr.mxu0 %v6659_v41  ;;  %5149 = vmatprep.subr.mxu1 %v9364_v0 }
 0x18e   :  { %1022 = vmatpush1.msra.mxu0 %v6666_v43  ;;  %5150 = vmatpush3.msra.mxu1 %v6760_v61 }
 0x18f   :  { %1023 = vmatprep.subr.mxu0 %v9399_v6  ;;  %5151 = vmatprep.subr.mxu1 %v9364_v0 }
 0x190   :  { %1024 = vmatpush1.msra.mxu0 %v9400_v7  ;;  %5152 = vmatpush3.msra.mxu1 %v9401_v8 }
 0x191   :  { %1025 = vmatprep.subr.mxu0 %v9402_v9  ;;  %5153 = vmatprep.subr.mxu1 %v9364_v0 }
 0x192   :  { %1026 = vmatpush1.msra.mxu0 %v9403_v11  ;;  %5154 = vmatpush3.msra.mxu1 %v9404_v12 }
 0x193   :  { %1059 = vmatprep.mubr.f32.mxu0 %v9364_v0  ;;  %5155 = vmatprep.mubr.msk.f32.mxu1 %vm6425_vm1, %v9364_v0 }
 0x194   :  { %1136 = vmatprep.subr.mxu0 %v9405_v13  ;;  %5158 = vmatprep.subr.mxu1 %v9364_v0 }
 0x211   :  { %v751_v14 = vpop.f32.mrf.mxu0  ;;  %v822_v16 = vpop.f32.mrf.mxu1 }
 0x212   :  { %v973_v18 = vadd.f32 %v751_v14, %v9406_v17  ;;  %v987_v34 = vadd.f32 %v6895_v49, %v822_v16  ;;  %v9411_v14 = vld [vmem:[#allocation50_spill] sm:$0xff]  ;;  %v9412_v16 = vld [vmem:[#allocation51_spill] sm:$0xff]  ;;  %v9413_v17 = vld [vmem:[#allocation52_spill] sm:$0xff] }
 0x213   :  { %v5087_v20 = vpop.f32.mrf.mxu1  ;;  %v753_v23 = vpop.f32.mrf.mxu0 }
 0x214   :  { %v4534_v22 = vmul.f32 -1.442695, %v973_v18  ;;  %v980_v26 = vadd.f32 %v753_v23, %v9407_v24  ;;  %v9414_v18 = vld [vmem:[#allocation53_spill] sm:$0xff]  ;;  %v9415_v20 = vld [vmem:[#allocation54_spill] sm:$0xff]  ;;  %v9417_v23 = vld [vmem:[#allocation56_spill] sm:$0xff] }
 0x215   :  { %v9418_v24 = vld [vmem:[#allocation57_spill] sm:$0xff] }
 0x216   :  { %5915 = vpow2.f32 %v4534_v22  ;;  %v4535_v28 = vmul.f32 -1.442695, %v980_v26  ;;  %v9416_v22 = vld [vmem:[#allocation55_spill] sm:$0xff]  ;;  %v9419_v26 = vld [vmem:[#allocation58_spill] sm:$0xff] }
 0x218   :  { %5917 = vpow2.f32 %v4535_v28  ;;  %v9420_v28 = vld [vmem:[#allocation59_spill] sm:$0xff] }
 0x223   :  { %v5916_v29 = vpop.eup %5915 }
 0x224   :  { %v977_v30 = vadd.f32 1.0, %v5916_v29  ;;  %v9421_v29 = vld [vmem:[#allocation60_spill] sm:$0xff] }
 0x225   :  { %v5918_v31 = vpop.eup %5917 }
 0x226   :  { %5919 = vrcp.f32 %v977_v30  ;;  %v984_v33 = vadd.f32 1.0, %v5918_v31  ;;  %v9422_v30 = vld [vmem:[#allocation61_spill] sm:$0xff]  ;;  %v9423_v31 = vld [vmem:[#allocation62_spill] sm:$0xff] }
 0x228   :  { %5921 = vrcp.f32 %v984_v33  ;;  %v9424_v33 = vld [vmem:[#allocation63_spill] sm:$0xff] }
 0x232   :  { %v7136_v35 = vpop.f32.mrf.mxu1 }
 0x233   :  { %9408 = vst [vmem:[#allocation20_spill] sm:$0xff] %v7136_v35  ;;  %v5920_v36 = vpop.eup %5919  ;;  %v9436_v35 = vld [vmem:[#allocation75_spill] sm:$0xff] }
 0x234   :  { %v988_v37 = vmul.f32 %v5920_v36, %v987_v34  ;;  %v5122_v39 = vpop.f32.mrf.mxu1  ;;  %v9425_v34 = vld [vmem:[#allocation64_spill] sm:$0xff]  ;;  %v9426_v36 = vld [vmem:[#allocation65_spill] sm:$0xff] }
 0x235   :  { %v5922_v42 = vpop.eup %5921  ;;  %v9428_v39 = vld [vmem:[#allocation67_spill] sm:$0xff] }
 0x236   :  { %v989_v41 = vadd.f32 %v988_v37, %v9409_v40  ;;  %v991_v43 = vsub.f32 1.0, %v5922_v42  ;;  %v993_v9 = vmul.f32 %v5922_v42, %v6899_v2  ;;  %v9410_v2 = vld [vmem:[#allocation49_spill] sm:$0xff]  ;;  %v9427_v37 = vld [vmem:[#allocation66_spill] sm:$0xff]  ;;  %v9429_v40 = vld [vmem:[#allocation68_spill] sm:$0xff] }
 0x237   :  { %v9431_v42 = vld [vmem:[#allocation70_spill] sm:$0xff] }
 0x238   :  { %5923 = vtanh.f32 %v989_v41  ;;  %v9430_v41 = vld [vmem:[#allocation69_spill] sm:$0xff] }
 0x245   :  { %v5924_v6 = vpop.eup %5923 }
 0x246   :  { %v992_v7 = vmul.f32 %v5924_v6, %v991_v43  ;;  %v9432_v43 = vld [vmem:[#allocation71_spill] sm:$0xff]  ;;  %v9433_v6 = vld [vmem:[#allocation72_spill] sm:$0xff] }
 0x248   :  { %v7140_v11 = vadd.f32 %v993_v9, %v992_v7  ;;  %v9434_v7 = vld [vmem:[#allocation73_spill] sm:$0xff]  ;;  %v9435_v9 = vld [vmem:[#allocation74_spill] sm:$0xff] }
 0x24a   :  { %1060 = vmatmul.mubr.f32.vlgmr.msra.gmra.mxu0 %v7140_v11  ;;  %5156 = vmatmul.mubr.f32.vlgmr.msra.gmra.mxu1 %v7140_v11 }
 0x24b   :  { %1137 = vmatpush1.msra.mxu0 %v6901_v15  ;;  %5159 = vmatpush3.msra.mxu1 %v6903_v21 }
 0x24c   :  { %1138 = vmatprep.subr.mxu0 %v6905_v32  ;;  %5160 = vmatprep.subr.mxu1 %v9364_v0 }
 0x24d   :  { %1139 = vmatpush1.msra.mxu0 %v6909_v25  ;;  %5161 = vmatpush3.msra.mxu1 %v6911_v1 }
 0x24e   :  { %1140 = vmatprep.subr.mxu0 %v6915_v50  ;;  %5162 = vmatprep.subr.mxu1 %v9364_v0 }
 0x24f   :  { %1141 = vmatpush1.msra.mxu0 %v6919_v46  ;;  %5163 = vmatpush3.msra.mxu1 %v6921_v4 }
 0x250   :  { %1142 = vmatprep.subr.mxu0 %v6925_v3  ;;  %5164 = vmatprep.subr.mxu1 %v9364_v0 }
 0x251   :  { %1143 = vmatpush1.msra.mxu0 %v6929_v5  ;;  %5165 = vmatpush3.msra.mxu1 %v9410_v2 }
 0x252   :  { %1144 = vmatprep.subr.mxu0 %v9411_v14  ;;  %5166 = vmatprep.subr.mxu1 %v9364_v0 }
 0x253   :  { %1145 = vmatpush1.msra.mxu0 %v9412_v16  ;;  %5167 = vmatpush3.msra.mxu1 %v9413_v17 }
 0x254   :  { %1146 = vmatprep.subr.mxu0 %v9414_v18  ;;  %5168 = vmatprep.subr.mxu1 %v9364_v0 }
 0x255   :  { %1147 = vmatpush1.msra.mxu0 %v9415_v20  ;;  %5169 = vmatpush3.msra.mxu1 %v9416_v22 }
 0x256   :  { %1148 = vmatprep.subr.mxu0 %v9417_v23  ;;  %5170 = vmatprep.subr.mxu1 %v9364_v0 }
 0x257   :  { %1149 = vmatpush1.msra.mxu0 %v9418_v24  ;;  %5171 = vmatpush3.msra.mxu1 %v9419_v26 }
 0x258   :  { %1150 = vmatprep.subr.mxu0 %v9420_v28  ;;  %5172 = vmatprep.subr.mxu1 %v9364_v0 }
 0x259   :  { %1151 = vmatpush1.msra.mxu0 %v9421_v29  ;;  %5173 = vmatpush3.msra.mxu1 %v9422_v30 }
 0x25a   :  { %1152 = vmatprep.subr.mxu0 %v9423_v31  ;;  %5174 = vmatprep.subr.mxu1 %v9364_v0 }
 0x25b   :  { %1153 = vmatpush1.msra.mxu0 %v9424_v33  ;;  %5175 = vmatpush3.msra.mxu1 %v9425_v34 }
 0x25c   :  { %1154 = vmatprep.subr.mxu0 %v9426_v36  ;;  %5176 = vmatprep.subr.mxu1 %v9364_v0 }
 0x25d   :  { %1155 = vmatpush1.msra.mxu0 %v9427_v37  ;;  %5177 = vmatpush3.msra.mxu1 %v9428_v39 }
 0x25e   :  { %1156 = vmatprep.subr.mxu0 %v9429_v40  ;;  %5178 = vmatprep.subr.mxu1 %v9364_v0  ;;  %v9437_v40 = vld [vmem:[#allocation76_spill] sm:$0xff] }
 0x25f   :  { %1157 = vmatpush1.msra.mxu0 %v9430_v41  ;;  %5179 = vmatpush3.msra.mxu1 %v9431_v42 }
 0x260   :  { %1158 = vmatprep.subr.mxu0 %v9432_v43  ;;  %5180 = vmatprep.subr.mxu1 %v9364_v0 }
 0x261   :  { %1159 = vmatpush1.msra.mxu0 %v9433_v6  ;;  %5181 = vmatpush3.msra.mxu1 %v9434_v7 }
 0x262   :  { %1160 = vmatprep.subr.mxu0 %v9435_v9  ;;  %5182 = vmatprep.subr.mxu1 %v9364_v0 }
 0x263   :  { %1161 = vmatpush1.msra.mxu0 %v7019_v45  ;;  %5183 = vmatpush3.msra.mxu1 %v9436_v35 }
 0x264   :  { %1162 = vmatprep.subr.mxu0 %v9437_v40  ;;  %5184 = vmatprep.subr.mxu1 %v9364_v0 }
 0x265   :  { %1163 = vmatpush1.msra.mxu0 %v7029_v44  ;;  %5185 = vmatpush3.msra.mxu1 %v7031_v38 }
 0x266   :  { %1164 = vmatprep.subr.mxu0 %v7035_v63  ;;  %5186 = vmatprep.subr.mxu1 %v9364_v0  ;;  %v7231_v63 = vld [vmem:[#allocation4 + $0x140] sm:$0xff] }
 0x267   :  { %1165 = vmatpush1.msra.mxu0 %v7039_v27  ;;  %5187 = vmatpush3.msra.mxu1 %v7041_v19  ;;  %v7211_v27 = vld [vmem:[#allocation4 + $0x170] sm:$0xff]  ;;  %9442 = vst [vmem:[#allocation25_spill] sm:$0xff] %v7231_v63 }
 0x268   :  { %1166 = vmatprep.subr.mxu0 %v7045_v62  ;;  %5188 = vmatprep.subr.mxu1 %v9364_v0  ;;  %9438 = vst [vmem:[#allocation21_spill] sm:$0xff] %v7211_v27  ;;  %v7215_v62 = vld [vmem:[#allocation4 + $0x168] sm:$0xff]  ;;  %v7225_v19 = vld [vmem:[#allocation4 + $0x150] sm:$0xff] }
 0x269   :  { %1167 = vmatpush1.msra.mxu0 %v7049_v10  ;;  %1200 = vmatprep.mubr.f32.mxu0 %v9364_v0  ;;  %v7218_v10 = vld [vmem:[#allocation4 + $0x178] sm:$0xff]  ;;  %9441 = vst [vmem:[#allocation23_spill] sm:$0xff] %v7225_v19 }
 0x26a   :  { %5189 = vmatpush3.msra.mxu1 %v7053_v47  ;;  %5190 = vmatprep.mubr.msk.f32.mxu1 %vm6425_vm1, %v9364_v0  ;;  %9439 = vst [vmem:[#allocation24_spill] sm:$0xff] %v7218_v10  ;;  %v7221_v47 = vld [vmem:[#allocation4 + $0x158] sm:$0xff] }
 0x26b   :  { %1201 = vmatmul.mubr.f32.vlgmr.msra.gmra.mxu0 %v7140_v11  ;;  %5191 = vmatmul.mubr.f32.vlgmr.msra.gmra.mxu1 %v7140_v11  ;;  %9440 = vst [vmem:[#allocation22_spill] sm:$0xff] %v7221_v47 }
 0x26c   :  { %1305 = vmatprep.subr.mxu0 %v7211_v27  ;;  %5193 = vmatprep.subr.mxu1 %v9364_v0  ;;  %v7228_v27 = vld [vmem:[#allocation4 + $0x160] sm:$0xff] }
 0x26d   :  { %1306 = vmatpush1.msra.mxu0 %v7215_v62  ;;  %5194 = vmatpush3.msra.mxu1 %v7218_v10  ;;  %v7235_v10 = vld [vmem:[#allocation4 + $0x138] sm:$0xff] }
 0x26e   :  { %1307 = vmatprep.subr.mxu0 %v7221_v47  ;;  %5195 = vmatprep.subr.mxu1 %v9364_v0  ;;  %9443 = vst [vmem:[#allocation26_spill] sm:$0xff] %v7235_v10  ;;  %v7239_v47 = vld [vmem:[#allocation4 + $0x128] sm:$0xff] }
 0x26f   :  { %1308 = vmatpush1.msra.mxu0 %v7225_v19  ;;  %5196 = vmatpush3.msra.mxu1 %v7228_v27  ;;  %v7243_v19 = vld [vmem:[#allocation4 + $0x120] sm:$0xff] }
 0x270   :  { %1309 = vmatprep.subr.mxu0 %v7231_v63  ;;  %5197 = vmatprep.subr.mxu1 %v9364_v0  ;;  %9444 = vst [vmem:[#allocation28_spill] sm:$0xff] %v7243_v19  ;;  %v7247_v63 = vld [vmem:[#allocation4 + $0x110] sm:$0xff] }
 0x271   :  { %1310 = vmatpush1.msra.mxu0 %v7235_v10  ;;  %5198 = vmatpush3.msra.mxu1 %v6683_v48  ;;  %9445 = vst [vmem:[#allocation29_spill] sm:$0xff] %v7247_v63  ;;  %v7251_v10 = vld [vmem:[#allocation4 + $0x108] sm:$0xff]  ;;  %v7255_v48 = vld [vmem:[#allocation4 + $0xf8] sm:$0xff] }
 0x272   :  { %1311 = vmatprep.subr.mxu0 %v7239_v47  ;;  %5199 = vmatprep.subr.mxu1 %v9364_v0  ;;  %9446 = vst [vmem:[#allocation36_spill] sm:$0xff] %v7251_v10  ;;  %9447 = vst [vmem:[#allocation49_spill] sm:$0xff] %v7255_v48 }
 0x273   :  { %1312 = vmatpush1.msra.mxu0 %v7243_v19  ;;  %5200 = vmatpush3.msra.mxu1 %v6696_v51  ;;  %v7259_v19 = vld [vmem:[#allocation4 + $0xf0] sm:$0xff]  ;;  %v7263_v51 = vld [vmem:[#allocation4 + $0xe0] sm:$0xff] }
 0x274   :  { %1313 = vmatprep.subr.mxu0 %v7247_v63  ;;  %5201 = vmatprep.subr.mxu1 %v9364_v0  ;;  %9448 = vst [vmem:[#allocation50_spill] sm:$0xff] %v7259_v19  ;;  %9449 = vst [vmem:[#allocation51_spill] sm:$0xff] %v7263_v51 }
 0x275   :  { %1314 = vmatpush1.msra.mxu0 %v7251_v10  ;;  %5202 = vmatpush3.msra.mxu1 %v6702_v52  ;;  %v7267_v10 = vld [vmem:[#allocation4 + $0xd8] sm:$0xff]  ;;  %v7271_v52 = vld [vmem:[#allocation4 + $0xc8] sm:$0xff] }
 0x276   :  { %1315 = vmatprep.subr.mxu0 %v7255_v48  ;;  %5203 = vmatprep.subr.mxu1 %v9364_v0  ;;  %9450 = vst [vmem:[#allocation52_spill] sm:$0xff] %v7267_v10  ;;  %9451 = vst [vmem:[#allocation53_spill] sm:$0xff] %v7271_v52 }
 0x277   :  { %1316 = vmatpush1.msra.mxu0 %v7259_v19  ;;  %5204 = vmatpush3.msra.mxu1 %v6707_v53  ;;  %v7275_v19 = vld [vmem:[#allocation4 + $0xc0] sm:$0xff]  ;;  %v7279_v53 = vld [vmem:[#allocation4 + $0xb0] sm:$0xff] }
 0x278   :  { %1317 = vmatprep.subr.mxu0 %v7263_v51  ;;  %5205 = vmatprep.subr.mxu1 %v9364_v0  ;;  %9452 = vst [vmem:[#allocation54_spill] sm:$0xff] %v7275_v19  ;;  %9453 = vst [vmem:[#allocation55_spill] sm:$0xff] %v7279_v53 }
 0x279   :  { %1318 = vmatpush1.msra.mxu0 %v7267_v10  ;;  %5206 = vmatpush3.msra.mxu1 %v6714_v54  ;;  %v7283_v10 = vld [vmem:[#allocation4 + $0xa8] sm:$0xff]  ;;  %v7287_v54 = vld [vmem:[#allocation4 + $0x98] sm:$0xff] }
 0x27a   :  { %1319 = vmatprep.subr.mxu0 %v7271_v52  ;;  %5207 = vmatprep.subr.mxu1 %v9364_v0  ;;  %9454 = vst [vmem:[#allocation56_spill] sm:$0xff] %v7283_v10  ;;  %9455 = vst [vmem:[#allocation57_spill] sm:$0xff] %v7287_v54 }
 0x27b   :  { %1320 = vmatpush1.msra.mxu0 %v7275_v19  ;;  %5208 = vmatpush3.msra.mxu1 %v6722_v55  ;;  %v7291_v19 = vld [vmem:[#allocation4 + $0x90] sm:$0xff]  ;;  %v7295_v55 = vld [vmem:[#allocation4 + $0x80] sm:$0xff] }
 0x27c   :  { %1321 = vmatprep.subr.mxu0 %v7279_v53  ;;  %5209 = vmatprep.subr.mxu1 %v9364_v0  ;;  %9456 = vst [vmem:[#allocation58_spill] sm:$0xff] %v7291_v19  ;;  %9457 = vst [vmem:[#allocation59_spill] sm:$0xff] %v7295_v55 }
 0x27d   :  { %1322 = vmatpush1.msra.mxu0 %v7283_v10  ;;  %5210 = vmatpush3.msra.mxu1 %v6728_v56  ;;  %v7299_v10 = vld [vmem:[#allocation4 + $0x78] sm:$0xff]  ;;  %v7303_v56 = vld [vmem:[#allocation4 + $0x68] sm:$0xff] }
 0x27e   :  { %1323 = vmatprep.subr.mxu0 %v7287_v54  ;;  %5211 = vmatprep.subr.mxu1 %v9364_v0  ;;  %9458 = vst [vmem:[#allocation60_spill] sm:$0xff] %v7299_v10  ;;  %9459 = vst [vmem:[#allocation61_spill] sm:$0xff] %v7303_v56 }
 0x27f   :  { %1324 = vmatpush1.msra.mxu0 %v7291_v19  ;;  %5212 = vmatpush3.msra.mxu1 %v6735_v57  ;;  %v7307_v19 = vld [vmem:[#allocation4 + $0x60] sm:$0xff]  ;;  %v7311_v57 = vld [vmem:[#allocation4 + $0x50] sm:$0xff] }
 0x280   :  { %1325 = vmatprep.subr.mxu0 %v7295_v55  ;;  %5213 = vmatprep.subr.mxu1 %v9364_v0  ;;  %9460 = vst [vmem:[#allocation62_spill] sm:$0xff] %v7307_v19  ;;  %9461 = vst [vmem:[#allocation63_spill] sm:$0xff] %v7311_v57 }
 0x281   :  { %1326 = vmatpush1.msra.mxu0 %v7299_v10  ;;  %5214 = vmatpush3.msra.mxu1 %v6741_v58  ;;  %v7315_v10 = vld [vmem:[#allocation4 + $0x48] sm:$0xff]  ;;  %v7319_v58 = vld [vmem:[#allocation4 + $0x38] sm:$0xff] }
 0x282   :  { %1327 = vmatprep.subr.mxu0 %v7303_v56  ;;  %5215 = vmatprep.subr.mxu1 %v9364_v0  ;;  %9462 = vst [vmem:[#allocation64_spill] sm:$0xff] %v7315_v10  ;;  %9463 = vst [vmem:[#allocation65_spill] sm:$0xff] %v7319_v58  ;;  %v9472_v56 = vld [vmem:[#allocation31_spill] sm:$0xff] }
 0x283   :  { %1328 = vmatpush1.msra.mxu0 %v7307_v19  ;;  %5216 = vmatpush3.msra.mxu1 %v6748_v59  ;;  %v7323_v19 = vld [vmem:[#allocation4 + $0x30] sm:$0xff]  ;;  %v7327_v59 = vld [vmem:[#allocation4 + $0x20] sm:$0xff] }
 0x284   :  { %1329 = vmatprep.subr.mxu0 %v7311_v57  ;;  %5217 = vmatprep.subr.mxu1 %v9364_v0  ;;  %9464 = vst [vmem:[#allocation66_spill] sm:$0xff] %v7323_v19  ;;  %9465 = vst [vmem:[#allocation67_spill] sm:$0xff] %v7327_v59 }
 0x285   :  { %1330 = vmatpush1.msra.mxu0 %v7315_v10  ;;  %5218 = vmatpush3.msra.mxu1 %v6754_v60  ;;  %v7331_v10 = vld [vmem:[#allocation4 + $0x18] sm:$0xff]  ;;  %v7335_v60 = vld [vmem:[#allocation4 + $0x8] sm:$0xff] }
 0x286   :  { %1331 = vmatprep.subr.mxu0 %v7319_v58  ;;  %5219 = vmatprep.subr.mxu1 %v9364_v0  ;;  %9466 = vst [vmem:[#allocation69_spill] sm:$0xff] %v7331_v10  ;;  %9467 = vst [vmem:[#allocation70_spill] sm:$0xff] %v7335_v60 }
 0x287   :  { %1332 = vmatpush1.msra.mxu0 %v7323_v19  ;;  %5220 = vmatpush3.msra.mxu1 %v6760_v61  ;;  %v7339_v19 = vld [vmem:[#allocation4] sm:$0xff]  ;;  %v7348_v61 = vpop.f32.mrf.mxu0 }
 0x288   :  { %1333 = vmatprep.subr.mxu0 %v7327_v59  ;;  %5221 = vmatprep.subr.mxu1 %v9364_v0  ;;  %9468 = vst [vmem:[#allocation71_spill] sm:$0xff] %v7339_v19  ;;  %9469 = vst [vmem:[#allocation72_spill] sm:$0xff] %v7348_v61  ;;  %v9471_v59 = vld [vmem:[#allocation30_spill] sm:$0xff] }
 0x289   :  { %1334 = vmatpush1.msra.mxu0 %v7331_v10  ;;  %5222 = vmatpush3.msra.mxu1 %v9401_v8  ;;  %v7350_v8 = vpop.f32.mrf.mxu0 }
 0x28a   :  { %1335 = vmatprep.subr.mxu0 %v7335_v60  ;;  %5223 = vmatprep.subr.mxu1 %v9364_v0  ;;  %9470 = vst [vmem:[#allocation73_spill] sm:$0xff] %v7350_v8 }
 0x28b   :  { %1336 = vmatpush1.msra.mxu0 %v7339_v19  ;;  %5224 = vmatpush3.msra.mxu1 %v9404_v12 }
 0x28c   :  { %1369 = vmatprep.mubr.f32.mxu0 %v9364_v0  ;;  %5225 = vmatprep.mubr.msk.f32.mxu1 %vm6425_vm1, %v9364_v0 }
 0x28d   :  { %1446 = vmatprep.subr.mxu0 %v9405_v13  ;;  %5228 = vmatprep.subr.mxu1 %v9364_v0 }
 0x30a   :  { %v1061_v60 = vpop.f32.mrf.mxu0  ;;  %v1132_v10 = vpop.f32.mrf.mxu1 }
 0x30b   :  { %v1283_v58 = vadd.f32 %v1061_v60, %v9471_v59  ;;  %v1297_v61 = vadd.f32 %v6895_v49, %v1132_v10  ;;  %v9477_v49 = vld [vmem:[#allocation78_spill] sm:$0xff] }
 0x30c   :  { %v5157_v19 = vpop.f32.mrf.mxu1  ;;  %v1063_v12 = vpop.f32.mrf.mxu0  ;;  %v9487_v10 = vld [vmem:[#allocation26_spill] sm:$0xff] }
 0x30d   :  { %v4536_v57 = vmul.f32 -1.442695, %v1283_v58  ;;  %v1290_v55 = vadd.f32 %v1063_v12, %v9472_v56  ;;  %v9474_v58 = vld [vmem:[#allocation44_spill] sm:$0xff]  ;;  %v9514_v12 = vld [vmem:[#allocation67_spill] sm:$0xff] }
 0x30f   :  { %5925 = vpow2.f32 %v4536_v57  ;;  %v4537_v54 = vmul.f32 -1.442695, %v1290_v55 }
 0x311   :  { %5927 = vpow2.f32 %v4537_v54 }
 0x31c   :  { %v5926_v53 = vpop.eup %5925 }
 0x31d   :  { %v1287_v13 = vadd.f32 1.0, %v5926_v53 }
 0x31e   :  { %v5928_v52 = vpop.eup %5927 }
 0x31f   :  { %5929 = vrcp.f32 %v1287_v13  ;;  %v1294_v51 = vadd.f32 1.0, %v5928_v52  ;;  %v9512_v52 = vld [vmem:[#allocation66_spill] sm:$0xff]  ;;  %v9515_v13 = vld [vmem:[#allocation69_spill] sm:$0xff] }
 0x321   :  { %5931 = vrcp.f32 %v1294_v51  ;;  %v9511_v51 = vld [vmem:[#allocation65_spill] sm:$0xff] }
 0x32b   :  { %v7355_v8 = vpop.f32.mrf.mxu1 }
 0x32c   :  { %9473 = vst [vmem:[#allocation74_spill] sm:$0xff] %v7355_v8  ;;  %v5930_v48 = vpop.eup %5929  ;;  %v9523_v8 = vld [vmem:[#allocation32_spill] sm:$0xff] }
 0x32d   :  { %v1298_v63 = vmul.f32 %v5930_v48, %v1297_v61  ;;  %v5192_v19 = vpop.f32.mrf.mxu1  ;;  %v7501_v48 = vld [vmem:[#allocation4 + $0x58] sm:$0xff]  ;;  %v7507_v61 = vld [vmem:[#allocation4 + $0x40] sm:$0xff] }
 0x32e   :  { %v5932_v57 = vpop.eup %5931  ;;  %9510 = vst [vmem:[#allocation31_spill] sm:$0xff] %v7501_v48  ;;  %9513 = vst [vmem:[#allocation44_spill] sm:$0xff] %v7507_v61  ;;  %v7513_v19 = vld [vmem:[#allocation4 + $0x28] sm:$0xff] }
 0x32f   :  { %v1299_v59 = vadd.f32 %v1298_v63, %v9474_v58  ;;  %v1301_v56 = vsub.f32 1.0, %v5932_v57  ;;  %v1303_v53 = vmul.f32 %v5932_v57, %v7140_v11  ;;  %v7441_v63 = vld [vmem:[#allocation4 + $0x148] sm:$0xff]  ;;  %v7447_v11 = vld [vmem:[#allocation4 + $0x130] sm:$0xff] }
 0x330   :  { %v9517_v58 = vld [vmem:[#allocation70_spill] sm:$0xff]  ;;  %v7519_v57 = vld [vmem:[#allocation4 + $0x10] sm:$0xff] }
 0x331   :  { %5933 = vtanh.f32 %v1299_v59  ;;  %v9518_v59 = vld [vmem:[#allocation71_spill] sm:$0xff] }
 0x33e   :  { %v5934_v55 = vpop.eup %5933 }
 0x33f   :  { %v1302_v54 = vmul.f32 %v5934_v55, %v1301_v56  ;;  %v7525_v56 = vld [vmem:[#allocation7 + $0x170] sm:$0xff]  ;;  %v7529_v55 = vpop.f32.mrf.mxu0 }
 0x340   :  { %9520 = vst [vmem:[#allocation78_spill] sm:$0xff] %v7525_v56 }
 0x341   :  { %v7359_v60 = vadd.f32 %v1303_v53, %v1302_v54  ;;  %v7531_v54 = vpop.f32.mrf.mxu0 }
 0x343   :  { %1370 = vmatmul.mubr.f32.vlgmr.msra.gmra.mxu0 %v7359_v60  ;;  %5226 = vmatmul.mubr.f32.vlgmr.msra.gmra.mxu1 %v7359_v60 }
 0x344   :  { %1447 = vmatpush1.msra.mxu0 %v6901_v15  ;;  %5229 = vmatpush3.msra.mxu1 %v6903_v21  ;;  %v9475_v15 = vld [vmem:[#allocation68_spill] sm:$0xff]  ;;  %v9476_v21 = vld [vmem:[#allocation77_spill] sm:$0xff] }
 0x345   :  { %1448 = vmatprep.subr.mxu0 %v6905_v32  ;;  %5230 = vmatprep.subr.mxu1 %v9364_v0  ;;  %v9478_v32 = vld [vmem:[#allocation79_spill] sm:$0xff]  ;;  %9516 = vst [vmem:[#allocation68_spill] sm:$0xff] %v7513_v19  ;;  %9519 = vst [vmem:[#allocation77_spill] sm:$0xff] %v7519_v57 }
 0x346   :  { %1449 = vmatpush1.msra.mxu0 %v6909_v25  ;;  %5231 = vmatpush3.msra.mxu1 %v6911_v1  ;;  %v9479_v25 = vld [vmem:[#allocation80_spill] sm:$0xff]  ;;  %v9481_v1 = vld [vmem:[#allocation82_spill] sm:$0xff]  ;;  %9521 = vst [vmem:[#allocation79_spill] sm:$0xff] %v7529_v55 }
 0x347   :  { %1450 = vmatprep.subr.mxu0 %v6915_v50  ;;  %5232 = vmatprep.subr.mxu1 %v9364_v0  ;;  %v9482_v50 = vld [vmem:[#allocation21_spill] sm:$0xff]  ;;  %9522 = vst [vmem:[#allocation80_spill] sm:$0xff] %v7531_v54 }
 0x348   :  { %1451 = vmatpush1.msra.mxu0 %v6919_v46  ;;  %5233 = vmatpush3.msra.mxu1 %v6921_v4  ;;  %v9483_v46 = vld [vmem:[#allocation24_spill] sm:$0xff]  ;;  %v9484_v4 = vld [vmem:[#allocation22_spill] sm:$0xff]  ;;  %v7538_v54 = vld [vmem:[%s9066_s5] ss:$0 sm:$0xff] }
 0x349   :  { %1452 = vmatprep.subr.mxu0 %v6925_v3  ;;  %5234 = vmatprep.subr.mxu1 %v9364_v0  ;;  %v9485_v3 = vld [vmem:[#allocation23_spill] sm:$0xff] }
 0x34a   :  { %1453 = vmatpush1.msra.mxu0 %v6929_v5  ;;  %5235 = vmatpush3.msra.mxu1 %v9410_v2  ;;  %v9486_v5 = vld [vmem:[#allocation25_spill] sm:$0xff] }
 0x34b   :  { %1454 = vmatprep.subr.mxu0 %v9411_v14  ;;  %5236 = vmatprep.subr.mxu1 %v9364_v0  ;;  %v9489_v2 = vld [vmem:[#allocation29_spill] sm:$0xff]  ;;  %v9490_v14 = vld [vmem:[#allocation36_spill] sm:$0xff] }
 0x34c   :  { %1455 = vmatpush1.msra.mxu0 %v9412_v16  ;;  %5237 = vmatpush3.msra.mxu1 %v9413_v17  ;;  %v7453_v16 = vld [vmem:[#allocation4 + $0x118] sm:$0xff]  ;;  %v9491_v17 = vld [vmem:[#allocation49_spill] sm:$0xff] }
 0x34d   :  { %1456 = vmatprep.subr.mxu0 %v9414_v18  ;;  %5238 = vmatprep.subr.mxu1 %v9364_v0  ;;  %v9492_v18 = vld [vmem:[#allocation50_spill] sm:$0xff] }
 0x34e   :  { %1457 = vmatpush1.msra.mxu0 %v9415_v20  ;;  %5239 = vmatpush3.msra.mxu1 %v9416_v22  ;;  %v7459_v20 = vld [vmem:[#allocation4 + $0x100] sm:$0xff]  ;;  %v9493_v22 = vld [vmem:[#allocation51_spill] sm:$0xff] }
 0x34f   :  { %1458 = vmatprep.subr.mxu0 %v9417_v23  ;;  %5240 = vmatprep.subr.mxu1 %v9364_v0  ;;  %v9494_v23 = vld [vmem:[#allocation52_spill] sm:$0xff] }
 0x350   :  { %1459 = vmatpush1.msra.mxu0 %v9418_v24  ;;  %5241 = vmatpush3.msra.mxu1 %v9419_v26  ;;  %v7465_v24 = vld [vmem:[#allocation4 + $0xe8] sm:$0xff]  ;;  %v9495_v26 = vld [vmem:[#allocation53_spill] sm:$0xff] }
 0x351   :  { %1460 = vmatprep.subr.mxu0 %v9420_v28  ;;  %5242 = vmatprep.subr.mxu1 %v9364_v0  ;;  %v9496_v28 = vld [vmem:[#allocation54_spill] sm:$0xff] }
 0x352   :  { %1461 = vmatpush1.msra.mxu0 %v9421_v29  ;;  %5243 = vmatpush3.msra.mxu1 %v9422_v30  ;;  %v7471_v29 = vld [vmem:[#allocation4 + $0xd0] sm:$0xff] }
 0x353   :  { %1462 = vmatprep.subr.mxu0 %v9423_v31  ;;  %5244 = vmatprep.subr.mxu1 %v9364_v0  ;;  %v9497_v30 = vld [vmem:[#allocation55_spill] sm:$0xff]  ;;  %v9498_v31 = vld [vmem:[#allocation56_spill] sm:$0xff] }
 0x354   :  { %1463 = vmatpush1.msra.mxu0 %v9424_v33  ;;  %5245 = vmatpush3.msra.mxu1 %v9425_v34  ;;  %v7477_v33 = vld [vmem:[#allocation4 + $0xb8] sm:$0xff]  ;;  %v9499_v34 = vld [vmem:[#allocation57_spill] sm:$0xff] }
 0x355   :  { %1464 = vmatprep.subr.mxu0 %v9426_v36  ;;  %5246 = vmatprep.subr.mxu1 %v9364_v0  ;;  %v9500_v36 = vld [vmem:[#allocation58_spill] sm:$0xff] }
 0x356   :  { %1465 = vmatpush1.msra.mxu0 %v9427_v37  ;;  %5247 = vmatpush3.msra.mxu1 %v9428_v39  ;;  %v7483_v37 = vld [vmem:[#allocation4 + $0xa0] sm:$0xff]  ;;  %v9502_v39 = vld [vmem:[#allocation59_spill] sm:$0xff] }
 0x357   :  { %1466 = vmatprep.subr.mxu0 %v9475_v15  ;;  %5248 = vmatprep.subr.mxu1 %v9364_v0  ;;  %9501 = vst [vmem:[#allocation75_spill] sm:$0xff] %v7483_v37 }
 0x358   :  { %1467 = vmatpush1.msra.mxu0 %v9430_v41  ;;  %5249 = vmatpush3.msra.mxu1 %v9431_v42  ;;  %v7489_v41 = vld [vmem:[#allocation4 + $0x88] sm:$0xff]  ;;  %v9505_v42 = vld [vmem:[#allocation61_spill] sm:$0xff] }
 0x359   :  { %1468 = vmatprep.subr.mxu0 %v9432_v43  ;;  %5250 = vmatprep.subr.mxu1 %v9364_v0  ;;  %9504 = vst [vmem:[#allocation76_spill] sm:$0xff] %v7489_v41  ;;  %v9506_v43 = vld [vmem:[#allocation62_spill] sm:$0xff] }
 0x35a   :  { %1469 = vmatpush1.msra.mxu0 %v9433_v6  ;;  %5251 = vmatpush3.msra.mxu1 %v9434_v7  ;;  %v7495_v6 = vld [vmem:[#allocation4 + $0x70] sm:$0xff] }
 0x35b   :  { %1470 = vmatprep.subr.mxu0 %v9435_v9  ;;  %5252 = vmatprep.subr.mxu1 %v9364_v0  ;;  %9507 = vst [vmem:[#allocation30_spill] sm:$0xff] %v7495_v6  ;;  %v9508_v7 = vld [vmem:[#allocation63_spill] sm:$0xff]  ;;  %v9509_v9 = vld [vmem:[#allocation64_spill] sm:$0xff] }
 0x35c   :  { %1471 = vmatpush1.msra.mxu0 %v7019_v45  ;;  %5253 = vmatpush3.msra.mxu1 %v9436_v35  ;;  %v9480_v45 = vld [vmem:[#allocation81_spill] sm:$0xff]  ;;  %v9488_v35 = vld [vmem:[#allocation28_spill] sm:$0xff] }
 0x35d   :  { %1472 = vmatprep.subr.mxu0 %v9437_v40  ;;  %5254 = vmatprep.subr.mxu1 %v9364_v0  ;;  %v9503_v40 = vld [vmem:[#allocation60_spill] sm:$0xff] }
 0x35e   :  { %1473 = vmatpush1.msra.mxu0 %v7029_v44  ;;  %5255 = vmatpush3.msra.mxu1 %v7031_v38 }
 0x35f   :  { %1474 = vmatprep.subr.mxu0 %v9476_v21  ;;  %5256 = vmatprep.subr.mxu1 %v9364_v0 }
 0x360   :  { %1475 = vmatpush1.msra.mxu0 %v9477_v49  ;;  %5257 = vmatpush3.msra.mxu1 %v9478_v32 }
 0x361   :  { %1476 = vmatprep.subr.mxu0 %v9479_v25  ;;  %5258 = vmatprep.subr.mxu1 %v9364_v0 }
 0x362   :  { %1477 = vmatpush1.msra.mxu0 %v9480_v45  ;;  %1510 = vmatprep.mubr.f32.mxu0 %v9364_v0 }
 0x363   :  { %5259 = vmatpush3.msra.mxu1 %v9481_v1  ;;  %5260 = vmatprep.mubr.msk.f32.mxu1 %vm6425_vm1, %v9364_v0 }
 0x364   :  { %1511 = vmatmul.mubr.f32.vlgmr.msra.gmra.mxu0 %v7359_v60  ;;  %5261 = vmatmul.mubr.f32.vlgmr.msra.gmra.mxu1 %v7359_v60 }
 0x365   :  { %1615 = vmatprep.subr.mxu0 %v9482_v50  ;;  %5263 = vmatprep.subr.mxu1 %v9364_v0 }
 0x366   :  { %1616 = vmatpush1.msra.mxu0 %v7215_v62  ;;  %5264 = vmatpush3.msra.mxu1 %v9483_v46 }
 0x367   :  { %1617 = vmatprep.subr.mxu0 %v9484_v4  ;;  %5265 = vmatprep.subr.mxu1 %v9364_v0 }
 0x368   :  { %1618 = vmatpush1.msra.mxu0 %v9485_v3  ;;  %5266 = vmatpush3.msra.mxu1 %v7228_v27 }
 0x369   :  { %1619 = vmatprep.subr.mxu0 %v9486_v5  ;;  %5267 = vmatprep.subr.mxu1 %v9364_v0 }
 0x36a   :  { %1620 = vmatpush1.msra.mxu0 %v9487_v10  ;;  %5268 = vmatpush3.msra.mxu1 %v7441_v63 }
 0x36b   :  { %1621 = vmatprep.subr.mxu0 %v7239_v47  ;;  %5269 = vmatprep.subr.mxu1 %v9364_v0 }
 0x36c   :  { %1622 = vmatpush1.msra.mxu0 %v9488_v35  ;;  %5270 = vmatpush3.msra.mxu1 %v7447_v11 }
 0x36d   :  { %1623 = vmatprep.subr.mxu0 %v9489_v2  ;;  %5271 = vmatprep.subr.mxu1 %v9364_v0 }
 0x36e   :  { %1624 = vmatpush1.msra.mxu0 %v9490_v14  ;;  %5272 = vmatpush3.msra.mxu1 %v7453_v16 }
 0x36f   :  { %1625 = vmatprep.subr.mxu0 %v9491_v17  ;;  %5273 = vmatprep.subr.mxu1 %v9364_v0 }
 0x370   :  { %1626 = vmatpush1.msra.mxu0 %v9492_v18  ;;  %5274 = vmatpush3.msra.mxu1 %v7459_v20 }
 0x371   :  { %1627 = vmatprep.subr.mxu0 %v9493_v22  ;;  %5275 = vmatprep.subr.mxu1 %v9364_v0 }
 0x372   :  { %1628 = vmatpush1.msra.mxu0 %v9494_v23  ;;  %5276 = vmatpush3.msra.mxu1 %v7465_v24 }
 0x373   :  { %1629 = vmatprep.subr.mxu0 %v9495_v26  ;;  %5277 = vmatprep.subr.mxu1 %v9364_v0 }
 0x374   :  { %1630 = vmatpush1.msra.mxu0 %v9496_v28  ;;  %5278 = vmatpush3.msra.mxu1 %v7471_v29 }
 0x375   :  { %1631 = vmatprep.subr.mxu0 %v9497_v30  ;;  %5279 = vmatprep.subr.mxu1 %v9364_v0 }
 0x376   :  { %1632 = vmatpush1.msra.mxu0 %v9498_v31  ;;  %5280 = vmatpush3.msra.mxu1 %v7477_v33 }
 0x377   :  { %1633 = vmatprep.subr.mxu0 %v9499_v34  ;;  %5281 = vmatprep.subr.mxu1 %v9364_v0 }
 0x378   :  { %1634 = vmatpush1.msra.mxu0 %v9500_v36  ;;  %5282 = vmatpush3.msra.mxu1 %v7483_v37 }
 0x379   :  { %1635 = vmatprep.subr.mxu0 %v9502_v39  ;;  %5283 = vmatprep.subr.mxu1 %v9364_v0 }
 0x37a   :  { %1636 = vmatpush1.msra.mxu0 %v9503_v40  ;;  %5284 = vmatpush3.msra.mxu1 %v7489_v41 }
 0x37b   :  { %1637 = vmatprep.subr.mxu0 %v9505_v42  ;;  %5285 = vmatprep.subr.mxu1 %v9364_v0 }
 0x37c   :  { %1638 = vmatpush1.msra.mxu0 %v9506_v43  ;;  %5286 = vmatpush3.msra.mxu1 %v7495_v6 }
 0x37d   :  { %1639 = vmatprep.subr.mxu0 %v9508_v7  ;;  %5287 = vmatprep.subr.mxu1 %v9364_v0 }
 0x37e   :  { %1640 = vmatpush1.msra.mxu0 %v9509_v9  ;;  %5288 = vmatpush3.msra.mxu1 %v7501_v48 }
 0x37f   :  { %1641 = vmatprep.subr.mxu0 %v9511_v51  ;;  %5289 = vmatprep.subr.mxu1 %v9364_v0 }
 0x380   :  { %1642 = vmatpush1.msra.mxu0 %v9512_v52  ;;  %5290 = vmatpush3.msra.mxu1 %v7507_v61 }
 0x381   :  { %1643 = vmatprep.subr.mxu0 %v9514_v12  ;;  %5291 = vmatprep.subr.mxu1 %v9364_v0 }
 0x382   :  { %1644 = vmatpush1.msra.mxu0 %v9515_v13  ;;  %5292 = vmatpush3.msra.mxu1 %v7513_v19  ;;  %v9524_v13 = vld [vmem:[#allocation33_spill] sm:$0xff] }
 0x383   :  { %1645 = vmatprep.subr.mxu0 %v9517_v58  ;;  %5293 = vmatprep.subr.mxu1 %v9364_v0 }
 0x384   :  { %1646 = vmatpush1.msra.mxu0 %v9518_v59  ;;  %5294 = vmatpush3.msra.mxu1 %v7519_v57 }
 0x385   :  { %1679 = vmatprep.mubr.f32.mxu0 %v9364_v0  ;;  %5295 = vmatprep.mubr.msk.f32.mxu1 %vm6425_vm1, %v9364_v0 }
 0x386   :  { %1756 = vmatprep.subr.mxu0 %v7525_v56  ;;  %5298 = vmatprep.subr.mxu1 %v9364_v0 }
 0x403   :  { %v1371_v53 = vpop.f32.mrf.mxu0  ;;  %v1442_v15 = vpop.f32.mrf.mxu1 }
 0x404   :  { %v1593_v59 = vadd.f32 %v1371_v53, %v9523_v8  ;;  %v1607_v8 = vadd.f32 %v7538_v54, %v1442_v15  ;;  %v7549_v15 = vld [vmem:[#allocation7 + $0x168] sm:$0xff] }
 0x405   :  { %v5227_v57 = vpop.f32.mrf.mxu1  ;;  %v1373_v19 = vpop.f32.mrf.mxu0 }
 0x406   :  { %v4538_v58 = vmul.f32 -1.442695, %v1593_v59  ;;  %v1600_v12 = vadd.f32 %v1373_v19, %v9524_v13 }
 0x408   :  { %5935 = vpow2.f32 %v4538_v58  ;;  %v4539_v61 = vmul.f32 -1.442695, %v1600_v12  ;;  %v9526_v12 = vld [vmem:[#allocation43_spill] sm:$0xff] }
 0x40a   :  { %5937 = vpow2.f32 %v4539_v61 }
 0x415   :  { %v5936_v52 = vpop.eup %5935 }
 0x416   :  { %v1597_v56 = vadd.f32 1.0, %v5936_v52 }
 0x417   :  { %v5938_v51 = vpop.eup %5937 }
 0x418   :  { %5939 = vrcp.f32 %v1597_v56  ;;  %v1604_v48 = vadd.f32 1.0, %v5938_v51 }
 0x41a   :  { %5941 = vrcp.f32 %v1604_v48  ;;  %v7552_v48 = vld [vmem:[#allocation7 + $0x178] sm:$0xff] }
 0x424   :  { %v7541_v57 = vpop.f32.mrf.mxu1 }
 0x425   :  { %9525 = vst [vmem:[#allocation81_spill] sm:$0xff] %v7541_v57  ;;  %v5940_v59 = vpop.eup %5939  ;;  %v7595_v57 = vld [vmem:[#allocation7 + $0xf8] sm:$0xff] }
 0x426   :  { %v1608_v58 = vmul.f32 %v5940_v59, %v1607_v8  ;;  %v5262_v13 = vpop.f32.mrf.mxu1  ;;  %v7555_v8 = vld [vmem:[#allocation7 + $0x158] sm:$0xff]  ;;  %v7562_v59 = vld [vmem:[#allocation7 + $0x160] sm:$0xff]  ;;  %9532 = vst [vmem:[#allocation25_spill] sm:$0xff] %v7595_v57 }
 0x427   :  { %v5942_v52 = vpop.eup %5941  ;;  %v7569_v13 = vld [vmem:[#allocation7 + $0x138] sm:$0xff] }
 0x428   :  { %v1609_v61 = vadd.f32 %v1608_v58, %v9526_v12  ;;  %v1611_v19 = vsub.f32 1.0, %v5942_v52  ;;  %v1613_v53 = vmul.f32 %v5942_v52, %v7359_v60  ;;  %v7559_v60 = vld [vmem:[#allocation7 + $0x150] sm:$0xff]  ;;  %v7565_v58 = vld [vmem:[#allocation7 + $0x140] sm:$0xff]  ;;  %v7572_v12 = vld [vmem:[#allocation7 + $0x148] sm:$0xff] }
 0x429   :  { %v7579_v52 = vld [vmem:[#allocation7 + $0x120] sm:$0xff] }
 0x42a   :  { %5943 = vtanh.f32 %v1609_v61  ;;  %v7575_v61 = vld [vmem:[#allocation7 + $0x128] sm:$0xff]  ;;  %9527 = vst [vmem:[#allocation82_spill] sm:$0xff] %v7579_v52 }
 0x437   :  { %v5944_v56 = vpop.eup %5943 }
 0x438   :  { %v1612_v51 = vmul.f32 %v5944_v56, %v1611_v19  ;;  %v7582_v19 = vld [vmem:[#allocation7 + $0x130] sm:$0xff] }
 0x439   :  { %9528 = vst [vmem:[#allocation21_spill] sm:$0xff] %v7582_v19  ;;  %v7585_v56 = vld [vmem:[#allocation7 + $0x110] sm:$0xff] }
 0x43a   :  { %v7545_v55 = vadd.f32 %v1613_v53, %v1612_v51  ;;  %9529 = vst [vmem:[#allocation24_spill] sm:$0xff] %v7585_v56  ;;  %v7589_v51 = vld [vmem:[#allocation7 + $0x108] sm:$0xff]  ;;  %v7592_v53 = vld [vmem:[#allocation7 + $0x118] sm:$0xff] }
 0x43b   :  { %9530 = vst [vmem:[#allocation22_spill] sm:$0xff] %v7589_v51  ;;  %9531 = vst [vmem:[#allocation23_spill] sm:$0xff] %v7592_v53 }
 0x43c   :  { %1680 = vmatmul.mubr.f32.vlgmr.msra.gmra.mxu0 %v7545_v55  ;;  %5296 = vmatmul.mubr.f32.vlgmr.msra.gmra.mxu1 %v7545_v55 }
 0x43d   :  { %1757 = vmatpush1.msra.mxu0 %v7549_v15  ;;  %5299 = vmatpush3.msra.mxu1 %v7552_v48 }
 0x43e   :  { %1758 = vmatprep.subr.mxu0 %v7555_v8  ;;  %5300 = vmatprep.subr.mxu1 %v9364_v0 }
 0x43f   :  { %1759 = vmatpush1.msra.mxu0 %v7559_v60  ;;  %5301 = vmatpush3.msra.mxu1 %v7562_v59 }
 0x440   :  { %1760 = vmatprep.subr.mxu0 %v7565_v58  ;;  %5302 = vmatprep.subr.mxu1 %v9364_v0 }
 0x441   :  { %1761 = vmatpush1.msra.mxu0 %v7569_v13  ;;  %5303 = vmatpush3.msra.mxu1 %v7572_v12 }
 0x442   :  { %1762 = vmatprep.subr.mxu0 %v7575_v61  ;;  %5304 = vmatprep.subr.mxu1 %v9364_v0 }
 0x443   :  { %1763 = vmatpush1.msra.mxu0 %v7579_v52  ;;  %5305 = vmatpush3.msra.mxu1 %v7582_v19  ;;  %v7599_v19 = vld [vmem:[#allocation7 + $0xf0] sm:$0xff]  ;;  %v7605_v52 = vld [vmem:[#allocation7 + $0xe0] sm:$0xff] }
 0x444   :  { %1764 = vmatprep.subr.mxu0 %v7585_v56  ;;  %5306 = vmatprep.subr.mxu1 %v9364_v0  ;;  %9533 = vst [vmem:[#allocation26_spill] sm:$0xff] %v7599_v19  ;;  %v7602_v56 = vld [vmem:[#allocation7 + $0x100] sm:$0xff]  ;;  %9535 = vst [vmem:[#allocation29_spill] sm:$0xff] %v7605_v52 }
 0x445   :  { %1765 = vmatpush1.msra.mxu0 %v7589_v51  ;;  %5307 = vmatpush3.msra.mxu1 %v7592_v53  ;;  %9534 = vst [vmem:[#allocation28_spill] sm:$0xff] %v7602_v56  ;;  %v7609_v53 = vld [vmem:[#allocation7 + $0xd8] sm:$0xff]  ;;  %v7615_v51 = vld [vmem:[#allocation7 + $0xc8] sm:$0xff] }
 0x446   :  { %1766 = vmatprep.subr.mxu0 %v7595_v57  ;;  %5308 = vmatprep.subr.mxu1 %v9364_v0  ;;  %9536 = vst [vmem:[#allocation36_spill] sm:$0xff] %v7609_v53  ;;  %v7612_v57 = vld [vmem:[#allocation7 + $0xe8] sm:$0xff]  ;;  %9538 = vst [vmem:[#allocation50_spill] sm:$0xff] %v7615_v51 }
 0x447   :  { %1767 = vmatpush1.msra.mxu0 %v7599_v19  ;;  %5309 = vmatpush3.msra.mxu1 %v7602_v56  ;;  %9537 = vst [vmem:[#allocation49_spill] sm:$0xff] %v7612_v57  ;;  %v7619_v56 = vld [vmem:[#allocation7 + $0xc0] sm:$0xff]  ;;  %v7625_v19 = vld [vmem:[#allocation7 + $0xb0] sm:$0xff] }
 0x448   :  { %1768 = vmatprep.subr.mxu0 %v7605_v52  ;;  %5310 = vmatprep.subr.mxu1 %v9364_v0  ;;  %9539 = vst [vmem:[#allocation51_spill] sm:$0xff] %v7619_v56  ;;  %v7622_v52 = vld [vmem:[#allocation7 + $0xd0] sm:$0xff]  ;;  %9541 = vst [vmem:[#allocation53_spill] sm:$0xff] %v7625_v19 }
 0x449   :  { %1769 = vmatpush1.msra.mxu0 %v7609_v53  ;;  %5311 = vmatpush3.msra.mxu1 %v7612_v57  ;;  %9540 = vst [vmem:[#allocation52_spill] sm:$0xff] %v7622_v52  ;;  %v7629_v57 = vld [vmem:[#allocation7 + $0xa8] sm:$0xff]  ;;  %v7635_v53 = vld [vmem:[#allocation7 + $0x98] sm:$0xff] }
 0x44a   :  { %1770 = vmatprep.subr.mxu0 %v7615_v51  ;;  %5312 = vmatprep.subr.mxu1 %v9364_v0  ;;  %9542 = vst [vmem:[#allocation54_spill] sm:$0xff] %v7629_v57  ;;  %v7632_v51 = vld [vmem:[#allocation7 + $0xb8] sm:$0xff]  ;;  %9544 = vst [vmem:[#allocation56_spill] sm:$0xff] %v7635_v53 }
 0x44b   :  { %1771 = vmatpush1.msra.mxu0 %v7619_v56  ;;  %5313 = vmatpush3.msra.mxu1 %v7622_v52  ;;  %9543 = vst [vmem:[#allocation55_spill] sm:$0xff] %v7632_v51  ;;  %v7639_v52 = vld [vmem:[#allocation7 + $0x90] sm:$0xff]  ;;  %v7645_v56 = vld [vmem:[#allocation7 + $0x80] sm:$0xff] }
 0x44c   :  { %1772 = vmatprep.subr.mxu0 %v7625_v19  ;;  %5314 = vmatprep.subr.mxu1 %v9364_v0  ;;  %9545 = vst [vmem:[#allocation57_spill] sm:$0xff] %v7639_v52  ;;  %v7642_v19 = vld [vmem:[#allocation7 + $0xa0] sm:$0xff]  ;;  %9547 = vst [vmem:[#allocation33_spill] sm:$0xff] %v7645_v56 }
 0x44d   :  { %1773 = vmatpush1.msra.mxu0 %v7629_v57  ;;  %5315 = vmatpush3.msra.mxu1 %v7632_v51  ;;  %9546 = vst [vmem:[#allocation32_spill] sm:$0xff] %v7642_v19  ;;  %v7649_v51 = vld [vmem:[#allocation7 + $0x78] sm:$0xff]  ;;  %v7655_v57 = vld [vmem:[#allocation7 + $0x68] sm:$0xff] }
 0x44e   :  { %1774 = vmatprep.subr.mxu0 %v7635_v53  ;;  %5316 = vmatprep.subr.mxu1 %v9364_v0  ;;  %9548 = vst [vmem:[#allocation43_spill] sm:$0xff] %v7649_v51  ;;  %v7652_v53 = vld [vmem:[#allocation7 + $0x88] sm:$0xff]  ;;  %9550 = vst [vmem:[#allocation84_spill] sm:$0xff] %v7655_v57 }
 0x44f   :  { %1775 = vmatpush1.msra.mxu0 %v7639_v52  ;;  %5317 = vmatpush3.msra.mxu1 %v7642_v19  ;;  %9549 = vst [vmem:[#allocation83_spill] sm:$0xff] %v7652_v53  ;;  %v7659_v19 = vld [vmem:[#allocation7 + $0x60] sm:$0xff]  ;;  %v7665_v52 = vld [vmem:[#allocation7 + $0x50] sm:$0xff] }
 0x450   :  { %1776 = vmatprep.subr.mxu0 %v7645_v56  ;;  %5318 = vmatprep.subr.mxu1 %v9364_v0  ;;  %v7662_v56 = vld [vmem:[#allocation7 + $0x70] sm:$0xff] }
 0x451   :  { %1777 = vmatpush1.msra.mxu0 %v7649_v51  ;;  %5319 = vmatpush3.msra.mxu1 %v7652_v53  ;;  %9551 = vst [vmem:[#allocation85_spill] sm:$0xff] %v7662_v56  ;;  %v7669_v53 = vld [vmem:[#allocation7 + $0x48] sm:$0xff]  ;;  %v7675_v51 = vld [vmem:[#allocation7 + $0x38] sm:$0xff] }
 0x452   :  { %1778 = vmatprep.subr.mxu0 %v7655_v57  ;;  %5320 = vmatprep.subr.mxu1 %v9364_v0  ;;  %9552 = vst [vmem:[#allocation86_spill] sm:$0xff] %v7669_v53  ;;  %v7672_v57 = vld [vmem:[#allocation7 + $0x58] sm:$0xff]  ;;  %9554 = vst [vmem:[#allocation88_spill] sm:$0xff] %v7675_v51 }
 0x453   :  { %1779 = vmatpush1.msra.mxu0 %v7659_v19  ;;  %5321 = vmatpush3.msra.mxu1 %v7662_v56  ;;  %9553 = vst [vmem:[#allocation87_spill] sm:$0xff] %v7672_v57 }
 0x454   :  { %1780 = vmatprep.subr.mxu0 %v7665_v52  ;;  %5322 = vmatprep.subr.mxu1 %v9364_v0 }
 0x455   :  { %1781 = vmatpush1.msra.mxu0 %v7669_v53  ;;  %5323 = vmatpush3.msra.mxu1 %v7672_v57 }
 0x456   :  { %1782 = vmatprep.subr.mxu0 %v7675_v51  ;;  %5324 = vmatprep.subr.mxu1 %v9364_v0 }
 0x457   :  { %1783 = vmatpush1.msra.mxu0 %v7029_v44  ;;  %5325 = vmatpush3.msra.mxu1 %v7031_v38  ;;  %v9555_v38 = vld [vmem:[#allocation31_spill] sm:$0xff]  ;;  %v9556_v44 = vld [vmem:[#allocation65_spill] sm:$0xff] }
 0x458   :  { %1784 = vmatprep.subr.mxu0 %v9476_v21  ;;  %5326 = vmatprep.subr.mxu1 %v9364_v0  ;;  %v9557_v21 = vld [vmem:[#allocation66_spill] sm:$0xff] }
 0x459   :  { %1785 = vmatpush1.msra.mxu0 %v9477_v49  ;;  %5327 = vmatpush3.msra.mxu1 %v9478_v32  ;;  %v9558_v49 = vld [vmem:[#allocation44_spill] sm:$0xff]  ;;  %v9559_v32 = vld [vmem:[#allocation67_spill] sm:$0xff] }
 0x45a   :  { %1786 = vmatprep.subr.mxu0 %v9479_v25  ;;  %5328 = vmatprep.subr.mxu1 %v9364_v0  ;;  %v9560_v25 = vld [vmem:[#allocation69_spill] sm:$0xff] }
 0x45b   :  { %1787 = vmatpush1.msra.mxu0 %v9480_v45  ;;  %1820 = vmatprep.mubr.f32.mxu0 %v9364_v0  ;;  %v9561_v45 = vld [vmem:[#allocation68_spill] sm:$0xff] }
 0x45c   :  { %5329 = vmatpush3.msra.mxu1 %v9481_v1  ;;  %5330 = vmatprep.mubr.msk.f32.mxu1 %vm6425_vm1, %v9364_v0  ;;  %v9562_v1 = vld [vmem:[#allocation70_spill] sm:$0xff] }
 0x45d   :  { %1821 = vmatmul.mubr.f32.vlgmr.msra.gmra.mxu0 %v7545_v55  ;;  %5331 = vmatmul.mubr.f32.vlgmr.msra.gmra.mxu1 %v7545_v55 }
 0x45e   :  { %1925 = vmatprep.subr.mxu0 %v9482_v50  ;;  %5333 = vmatprep.subr.mxu1 %v9364_v0 }
 0x45f   :  { %1926 = vmatpush1.msra.mxu0 %v7215_v62  ;;  %5334 = vmatpush3.msra.mxu1 %v9483_v46 }
 0x460   :  { %1927 = vmatprep.subr.mxu0 %v9484_v4  ;;  %5335 = vmatprep.subr.mxu1 %v9364_v0 }
 0x461   :  { %1928 = vmatpush1.msra.mxu0 %v9485_v3  ;;  %5336 = vmatpush3.msra.mxu1 %v7228_v27 }
 0x462   :  { %1929 = vmatprep.subr.mxu0 %v9486_v5  ;;  %5337 = vmatprep.subr.mxu1 %v9364_v0 }
 0x463   :  { %1930 = vmatpush1.msra.mxu0 %v9487_v10  ;;  %5338 = vmatpush3.msra.mxu1 %v7441_v63 }
 0x464   :  { %1931 = vmatprep.subr.mxu0 %v7239_v47  ;;  %5339 = vmatprep.subr.mxu1 %v9364_v0 }
 0x465   :  { %1932 = vmatpush1.msra.mxu0 %v9488_v35  ;;  %5340 = vmatpush3.msra.mxu1 %v7447_v11 }
 0x466   :  { %1933 = vmatprep.subr.mxu0 %v9489_v2  ;;  %5341 = vmatprep.subr.mxu1 %v9364_v0 }
 0x467   :  { %1934 = vmatpush1.msra.mxu0 %v9490_v14  ;;  %5342 = vmatpush3.msra.mxu1 %v7453_v16 }
 0x468   :  { %1935 = vmatprep.subr.mxu0 %v9491_v17  ;;  %5343 = vmatprep.subr.mxu1 %v9364_v0 }
 0x469   :  { %1936 = vmatpush1.msra.mxu0 %v9492_v18  ;;  %5344 = vmatpush3.msra.mxu1 %v7459_v20 }
 0x46a   :  { %1937 = vmatprep.subr.mxu0 %v9493_v22  ;;  %5345 = vmatprep.subr.mxu1 %v9364_v0 }
 0x46b   :  { %1938 = vmatpush1.msra.mxu0 %v9494_v23  ;;  %5346 = vmatpush3.msra.mxu1 %v7465_v24 }
 0x46c   :  { %1939 = vmatprep.subr.mxu0 %v9495_v26  ;;  %5347 = vmatprep.subr.mxu1 %v9364_v0 }
 0x46d   :  { %1940 = vmatpush1.msra.mxu0 %v9496_v28  ;;  %5348 = vmatpush3.msra.mxu1 %v7471_v29 }
 0x46e   :  { %1941 = vmatprep.subr.mxu0 %v9497_v30  ;;  %5349 = vmatprep.subr.mxu1 %v9364_v0 }
 0x46f   :  { %1942 = vmatpush1.msra.mxu0 %v9498_v31  ;;  %5350 = vmatpush3.msra.mxu1 %v7477_v33 }
 0x470   :  { %1943 = vmatprep.subr.mxu0 %v9499_v34  ;;  %5351 = vmatprep.subr.mxu1 %v9364_v0 }
 0x471   :  { %1944 = vmatpush1.msra.mxu0 %v9500_v36  ;;  %5352 = vmatpush3.msra.mxu1 %v7483_v37 }
 0x472   :  { %1945 = vmatprep.subr.mxu0 %v9502_v39  ;;  %5353 = vmatprep.subr.mxu1 %v9364_v0 }
 0x473   :  { %1946 = vmatpush1.msra.mxu0 %v9503_v40  ;;  %5354 = vmatpush3.msra.mxu1 %v7489_v41 }
 0x474   :  { %1947 = vmatprep.subr.mxu0 %v9505_v42  ;;  %5355 = vmatprep.subr.mxu1 %v9364_v0 }
 0x475   :  { %1948 = vmatpush1.msra.mxu0 %v9506_v43  ;;  %5356 = vmatpush3.msra.mxu1 %v7495_v6  ;;  %v9569_v6 = vld [vmem:[#allocation35_spill] sm:$0xff] }
 0x476   :  { %1949 = vmatprep.subr.mxu0 %v9508_v7  ;;  %5357 = vmatprep.subr.mxu1 %v9364_v0 }
 0x477   :  { %1950 = vmatpush1.msra.mxu0 %v9509_v9  ;;  %5358 = vmatpush3.msra.mxu1 %v9555_v38  ;;  %v9563_v38 = vld [vmem:[#allocation71_spill] sm:$0xff] }
 0x478   :  { %1951 = vmatprep.subr.mxu0 %v9556_v44  ;;  %5359 = vmatprep.subr.mxu1 %v9364_v0  ;;  %v9564_v44 = vld [vmem:[#allocation77_spill] sm:$0xff] }
 0x479   :  { %1952 = vmatpush1.msra.mxu0 %v9557_v21  ;;  %5360 = vmatpush3.msra.mxu1 %v9558_v49  ;;  %v9568_v21 = vld [vmem:[#allocation34_spill] sm:$0xff] }
 0x47a   :  { %1953 = vmatprep.subr.mxu0 %v9559_v32  ;;  %5361 = vmatprep.subr.mxu1 %v9364_v0  ;;  %v9565_v32 = vld [vmem:[#allocation78_spill] sm:$0xff] }
 0x47b   :  { %1954 = vmatpush1.msra.mxu0 %v9560_v25  ;;  %5362 = vmatpush3.msra.mxu1 %v9561_v45  ;;  %v7763_v25 = vpop.f32.mrf.mxu0 }
 0x47c   :  { %1955 = vmatprep.subr.mxu0 %v9562_v1  ;;  %5363 = vmatprep.subr.mxu1 %v9364_v0  ;;  %9566 = vst [vmem:[#allocation89_spill] sm:$0xff] %v7763_v25 }
 0x47d   :  { %1956 = vmatpush1.msra.mxu0 %v9563_v38  ;;  %5364 = vmatpush3.msra.mxu1 %v9564_v44  ;;  %v7765_v45 = vpop.f32.mrf.mxu0 }
 0x47e   :  { %1989 = vmatprep.mubr.f32.mxu0 %v9364_v0  ;;  %5365 = vmatprep.mubr.msk.f32.mxu1 %vm6425_vm1, %v9364_v0  ;;  %9567 = vst [vmem:[#allocation90_spill] sm:$0xff] %v7765_v45 }
 0x47f   :  { %2066 = vmatprep.subr.mxu0 %v9565_v32  ;;  %5368 = vmatprep.subr.mxu1 %v9364_v0 }
 0x4fc   :  { %v1681_v1 = vpop.f32.mrf.mxu0  ;;  %v1752_v49 = vpop.f32.mrf.mxu1 }
 0x4fd   :  { %v1903_v9 = vadd.f32 %v1681_v1, %v9568_v21  ;;  %v1917_v25 = vadd.f32 %v7538_v54, %v1752_v49  ;;  %v9577_v49 = vld [vmem:[#allocation25_spill] sm:$0xff] }
 0x4fe   :  { %v5297_v38 = vpop.f32.mrf.mxu1  ;;  %v1683_v44 = vpop.f32.mrf.mxu0  ;;  %v9580_v1 = vld [vmem:[#allocation29_spill] sm:$0xff] }
 0x4ff   :  { %v4540_v7 = vmul.f32 -1.442695, %v1903_v9  ;;  %v1910_v43 = vadd.f32 %v1683_v44, %v9569_v6  ;;  %v9571_v9 = vld [vmem:[#allocation46_spill] sm:$0xff] }
 0x501   :  { %5945 = vpow2.f32 %v4540_v7  ;;  %v4541_v42 = vmul.f32 -1.442695, %v1910_v43 }
 0x503   :  { %5947 = vpow2.f32 %v4541_v42 }
 0x50e   :  { %v5946_v41 = vpop.eup %5945 }
 0x50f   :  { %v1907_v32 = vadd.f32 1.0, %v5946_v41 }
 0x510   :  { %v5948_v40 = vpop.eup %5947 }
 0x511   :  { %5949 = vrcp.f32 %v1907_v32  ;;  %v1914_v39 = vadd.f32 1.0, %v5948_v40  ;;  %v9575_v40 = vld [vmem:[#allocation22_spill] sm:$0xff] }
 0x512   :  { %v9578_v32 = vld [vmem:[#allocation26_spill] sm:$0xff] }
 0x513   :  { %5951 = vrcp.f32 %v1914_v39  ;;  %v9574_v39 = vld [vmem:[#allocation24_spill] sm:$0xff] }
 0x51d   :  { %v7770_v45 = vpop.f32.mrf.mxu1 }
 0x51e   :  { %9570 = vst [vmem:[#allocation34_spill] sm:$0xff] %v7770_v45  ;;  %v5950_v37 = vpop.eup %5949  ;;  %v9589_v45 = vld [vmem:[#allocation56_spill] sm:$0xff] }
 0x51f   :  { %v1918_v36 = vmul.f32 %v5950_v37, %v1917_v25  ;;  %v5332_v38 = vpop.f32.mrf.mxu1  ;;  %v9573_v37 = vld [vmem:[#allocation21_spill] sm:$0xff]  ;;  %v9579_v25 = vld [vmem:[#allocation28_spill] sm:$0xff] }
 0x520   :  { %v5952_v7 = vpop.eup %5951  ;;  %v9581_v38 = vld [vmem:[#allocation36_spill] sm:$0xff] }
 0x521   :  { %v1919_v21 = vadd.f32 %v1918_v36, %v9571_v9  ;;  %v1921_v6 = vsub.f32 1.0, %v5952_v7  ;;  %v1923_v41 = vmul.f32 %v5952_v7, %v7545_v55  ;;  %v9572_v36 = vld [vmem:[#allocation82_spill] sm:$0xff]  ;;  %v9576_v55 = vld [vmem:[#allocation23_spill] sm:$0xff]  ;;  %v9582_v9 = vld [vmem:[#allocation49_spill] sm:$0xff] }
 0x522   :  { %v9584_v7 = vld [vmem:[#allocation51_spill] sm:$0xff] }
 0x523   :  { %5953 = vtanh.f32 %v1919_v21  ;;  %v9583_v21 = vld [vmem:[#allocation50_spill] sm:$0xff] }
 0x530   :  { %v5954_v43 = vpop.eup %5953 }
 0x531   :  { %v1922_v42 = vmul.f32 %v5954_v43, %v1921_v6  ;;  %v9585_v6 = vld [vmem:[#allocation52_spill] sm:$0xff]  ;;  %v9586_v43 = vld [vmem:[#allocation53_spill] sm:$0xff] }
 0x533   :  { %v7774_v44 = vadd.f32 %v1923_v41, %v1922_v42  ;;  %v9587_v42 = vld [vmem:[#allocation54_spill] sm:$0xff]  ;;  %v9588_v41 = vld [vmem:[#allocation55_spill] sm:$0xff] }
 0x535   :  { %1990 = vmatmul.mubr.f32.vlgmr.msra.gmra.mxu0 %v7774_v44  ;;  %5366 = vmatmul.mubr.f32.vlgmr.msra.gmra.mxu1 %v7774_v44 }
 0x536   :  { %2067 = vmatpush1.msra.mxu0 %v7549_v15  ;;  %5369 = vmatpush3.msra.mxu1 %v7552_v48 }
 0x537   :  { %2068 = vmatprep.subr.mxu0 %v7555_v8  ;;  %5370 = vmatprep.subr.mxu1 %v9364_v0 }
 0x538   :  { %2069 = vmatpush1.msra.mxu0 %v7559_v60  ;;  %5371 = vmatpush3.msra.mxu1 %v7562_v59 }
 0x539   :  { %2070 = vmatprep.subr.mxu0 %v7565_v58  ;;  %5372 = vmatprep.subr.mxu1 %v9364_v0 }
 0x53a   :  { %2071 = vmatpush1.msra.mxu0 %v7569_v13  ;;  %5373 = vmatpush3.msra.mxu1 %v7572_v12 }
 0x53b   :  { %2072 = vmatprep.subr.mxu0 %v7575_v61  ;;  %5374 = vmatprep.subr.mxu1 %v9364_v0 }
 0x53c   :  { %2073 = vmatpush1.msra.mxu0 %v9572_v36  ;;  %5375 = vmatpush3.msra.mxu1 %v9573_v37 }
 0x53d   :  { %2074 = vmatprep.subr.mxu0 %v9574_v39  ;;  %5376 = vmatprep.subr.mxu1 %v9364_v0 }
 0x53e   :  { %2075 = vmatpush1.msra.mxu0 %v9575_v40  ;;  %5377 = vmatpush3.msra.mxu1 %v9576_v55 }
 0x53f   :  { %2076 = vmatprep.subr.mxu0 %v9577_v49  ;;  %5378 = vmatprep.subr.mxu1 %v9364_v0 }
 0x540   :  { %2077 = vmatpush1.msra.mxu0 %v9578_v32  ;;  %5379 = vmatpush3.msra.mxu1 %v9579_v25 }
 0x541   :  { %2078 = vmatprep.subr.mxu0 %v9580_v1  ;;  %5380 = vmatprep.subr.mxu1 %v9364_v0 }
 0x542   :  { %2079 = vmatpush1.msra.mxu0 %v9581_v38  ;;  %5381 = vmatpush3.msra.mxu1 %v9582_v9  ;;  %v9590_v9 = vld [vmem:[#allocation57_spill] sm:$0xff] }
 0x543   :  { %2080 = vmatprep.subr.mxu0 %v9583_v21  ;;  %5382 = vmatprep.subr.mxu1 %v9364_v0  ;;  %v9591_v21 = vld [vmem:[#allocation32_spill] sm:$0xff]  ;;  %v9592_v38 = vld [vmem:[#allocation33_spill] sm:$0xff] }
 0x544   :  { %2081 = vmatpush1.msra.mxu0 %v9584_v7  ;;  %5383 = vmatpush3.msra.mxu1 %v9585_v6  ;;  %v9593_v6 = vld [vmem:[#allocation43_spill] sm:$0xff]  ;;  %v9595_v7 = vld [vmem:[#allocation84_spill] sm:$0xff] }
 0x545   :  { %2082 = vmatprep.subr.mxu0 %v9586_v43  ;;  %5384 = vmatprep.subr.mxu1 %v9364_v0  ;;  %v9594_v43 = vld [vmem:[#allocation83_spill] sm:$0xff] }
 0x546   :  { %2083 = vmatpush1.msra.mxu0 %v9587_v42  ;;  %5385 = vmatpush3.msra.mxu1 %v9588_v41 }
 0x547   :  { %2084 = vmatprep.subr.mxu0 %v9589_v45  ;;  %5386 = vmatprep.subr.mxu1 %v9364_v0 }
 0x548   :  { %2085 = vmatpush1.msra.mxu0 %v9590_v9  ;;  %5387 = vmatpush3.msra.mxu1 %v9591_v21 }
 0x549   :  { %2086 = vmatprep.subr.mxu0 %v9592_v38  ;;  %5388 = vmatprep.subr.mxu1 %v9364_v0 }
 0x54a   :  { %2087 = vmatpush1.msra.mxu0 %v9593_v6  ;;  %5389 = vmatpush3.msra.mxu1 %v9594_v43  ;;  %v7830_v43 = vld [vmem:[#allocation7 + $0x30] sm:$0xff] }
 0x54b   :  { %2088 = vmatprep.subr.mxu0 %v9595_v7  ;;  %5390 = vmatprep.subr.mxu1 %v9364_v0  ;;  %v7833_v7 = vld [vmem:[#allocation7 + $0x40] sm:$0xff] }
 0x54c   :  { %2089 = vmatpush1.msra.mxu0 %v7659_v19  ;;  %5391 = vmatpush3.msra.mxu1 %v7662_v56  ;;  %9596 = vst [vmem:[#allocation35_spill] sm:$0xff] %v7833_v7  ;;  %v7836_v56 = vld [vmem:[#allocation7 + $0x20] sm:$0xff] }
 0x54d   :  { %2090 = vmatprep.subr.mxu0 %v7665_v52  ;;  %5392 = vmatprep.subr.mxu1 %v9364_v0  ;;  %9597 = vst [vmem:[#allocation46_spill] sm:$0xff] %v7836_v56 }
 0x54e   :  { %2091 = vmatpush1.msra.mxu0 %v7669_v53  ;;  %5393 = vmatpush3.msra.mxu1 %v7672_v57  ;;  %v7840_v53 = vld [vmem:[#allocation7 + $0x18] sm:$0xff]  ;;  %v7846_v57 = vld [vmem:[#allocation7 + $0x8] sm:$0xff] }
 0x54f   :  { %2092 = vmatprep.subr.mxu0 %v7675_v51  ;;  %5394 = vmatprep.subr.mxu1 %v9364_v0  ;;  %v7843_v51 = vld [vmem:[#allocation7 + $0x28] sm:$0xff]  ;;  %9599 = vst [vmem:[#allocation21_spill] sm:$0xff] %v7846_v57 }
 0x550   :  { %2093 = vmatpush1.msra.mxu0 %v7830_v43  ;;  %5395 = vmatpush3.msra.mxu1 %v7833_v7  ;;  %9598 = vst [vmem:[#allocation82_spill] sm:$0xff] %v7843_v51  ;;  %v7850_v7 = vld [vmem:[#allocation7] sm:$0xff] }
 0x551   :  { %2094 = vmatprep.subr.mxu0 %v7836_v56  ;;  %5396 = vmatprep.subr.mxu1 %v9364_v0  ;;  %9600 = vst [vmem:[#allocation24_spill] sm:$0xff] %v7850_v7  ;;  %v7854_v56 = vld [vmem:[#allocation7 + $0x10] sm:$0xff] }
 0x552   :  { %2095 = vmatpush1.msra.mxu0 %v7840_v53  ;;  %5397 = vmatpush3.msra.mxu1 %v7843_v51  ;;  %9601 = vst [vmem:[#allocation22_spill] sm:$0xff] %v7854_v56 }
 0x553   :  { %2096 = vmatprep.subr.mxu0 %v7846_v57  ;;  %5398 = vmatprep.subr.mxu1 %v9364_v0 }
 0x554   :  { %2097 = vmatpush1.msra.mxu0 %v7850_v7  ;;  %2130 = vmatprep.mubr.f32.mxu0 %v9364_v0 }
 0x555   :  { %5399 = vmatpush3.msra.mxu1 %v7854_v56  ;;  %5400 = vmatprep.mubr.msk.f32.mxu1 %vm6425_vm1, %v9364_v0 }
 0x556   :  { %2131 = vmatmul.mubr.f32.vlgmr.msra.gmra.mxu0 %v7774_v44  ;;  %5401 = vmatmul.mubr.f32.vlgmr.msra.gmra.mxu1 %v7774_v44 }
 0x557   :  { %2235 = vmatprep.subr.mxu0 %v9482_v50  ;;  %5403 = vmatprep.subr.mxu1 %v9364_v0  ;;  %v9605_v50 = vld [vmem:[#allocation60_spill] sm:$0xff] }
 0x558   :  { %2236 = vmatpush1.msra.mxu0 %v7215_v62  ;;  %5404 = vmatpush3.msra.mxu1 %v9483_v46  ;;  %v9602_v62 = vld [vmem:[#allocation58_spill] sm:$0xff]  ;;  %v9606_v46 = vld [vmem:[#allocation76_spill] sm:$0xff] }
 0x559   :  { %2237 = vmatprep.subr.mxu0 %v9484_v4  ;;  %5405 = vmatprep.subr.mxu1 %v9364_v0  ;;  %v9607_v4 = vld [vmem:[#allocation61_spill] sm:$0xff] }
 0x55a   :  { %2238 = vmatpush1.msra.mxu0 %v9485_v3  ;;  %5406 = vmatpush3.msra.mxu1 %v7228_v27  ;;  %v9604_v27 = vld [vmem:[#allocation59_spill] sm:$0xff]  ;;  %v9608_v3 = vld [vmem:[#allocation62_spill] sm:$0xff] }
 0x55b   :  { %2239 = vmatprep.subr.mxu0 %v9486_v5  ;;  %5407 = vmatprep.subr.mxu1 %v9364_v0  ;;  %v9609_v5 = vld [vmem:[#allocation30_spill] sm:$0xff] }
 0x55c   :  { %2240 = vmatpush1.msra.mxu0 %v9487_v10  ;;  %5408 = vmatpush3.msra.mxu1 %v7441_v63  ;;  %v9610_v10 = vld [vmem:[#allocation63_spill] sm:$0xff] }
 0x55d   :  { %2241 = vmatprep.subr.mxu0 %v7239_v47  ;;  %5409 = vmatprep.subr.mxu1 %v9364_v0  ;;  %v9603_v47 = vld [vmem:[#allocation75_spill] sm:$0xff] }
 0x55e   :  { %2242 = vmatpush1.msra.mxu0 %v9488_v35  ;;  %5410 = vmatpush3.msra.mxu1 %v7447_v11  ;;  %v9611_v35 = vld [vmem:[#allocation64_spill] sm:$0xff] }
 0x55f   :  { %2243 = vmatprep.subr.mxu0 %v9489_v2  ;;  %5411 = vmatprep.subr.mxu1 %v9364_v0  ;;  %v9612_v2 = vld [vmem:[#allocation31_spill] sm:$0xff] }
 0x560   :  { %2244 = vmatpush1.msra.mxu0 %v9490_v14  ;;  %5412 = vmatpush3.msra.mxu1 %v7453_v16  ;;  %v9613_v14 = vld [vmem:[#allocation65_spill] sm:$0xff] }
 0x561   :  { %2245 = vmatprep.subr.mxu0 %v9491_v17  ;;  %5413 = vmatprep.subr.mxu1 %v9364_v0  ;;  %v9614_v17 = vld [vmem:[#allocation66_spill] sm:$0xff] }
 0x562   :  { %2246 = vmatpush1.msra.mxu0 %v9492_v18  ;;  %5414 = vmatpush3.msra.mxu1 %v7459_v20  ;;  %v9615_v18 = vld [vmem:[#allocation44_spill] sm:$0xff] }
 0x563   :  { %2247 = vmatprep.subr.mxu0 %v9493_v22  ;;  %5415 = vmatprep.subr.mxu1 %v9364_v0  ;;  %v9616_v22 = vld [vmem:[#allocation67_spill] sm:$0xff] }
 0x564   :  { %2248 = vmatpush1.msra.mxu0 %v9494_v23  ;;  %5416 = vmatpush3.msra.mxu1 %v7465_v24  ;;  %v9617_v23 = vld [vmem:[#allocation69_spill] sm:$0xff] }
 0x565   :  { %2249 = vmatprep.subr.mxu0 %v9495_v26  ;;  %5417 = vmatprep.subr.mxu1 %v9364_v0  ;;  %v9618_v26 = vld [vmem:[#allocation68_spill] sm:$0xff] }
 0x566   :  { %2250 = vmatpush1.msra.mxu0 %v9496_v28  ;;  %5418 = vmatpush3.msra.mxu1 %v7471_v29  ;;  %v9619_v28 = vld [vmem:[#allocation70_spill] sm:$0xff] }
 0x567   :  { %2251 = vmatprep.subr.mxu0 %v9497_v30  ;;  %5419 = vmatprep.subr.mxu1 %v9364_v0  ;;  %v9620_v30 = vld [vmem:[#allocation71_spill] sm:$0xff] }
 0x568   :  { %2252 = vmatpush1.msra.mxu0 %v9498_v31  ;;  %5420 = vmatpush3.msra.mxu1 %v7477_v33  ;;  %v9621_v31 = vld [vmem:[#allocation77_spill] sm:$0xff] }
 0x569   :  { %2253 = vmatprep.subr.mxu0 %v9499_v34  ;;  %5421 = vmatprep.subr.mxu1 %v9364_v0  ;;  %v9622_v34 = vld [vmem:[#allocation78_spill] sm:$0xff] }
 0x56a   :  { %2254 = vmatpush1.msra.mxu0 %v9602_v62  ;;  %5422 = vmatpush3.msra.mxu1 %v9603_v47  ;;  %v7930_v62 = vpop.f32.mrf.mxu0 }
 0x56b   :  { %2255 = vmatprep.subr.mxu0 %v9604_v27  ;;  %5423 = vmatprep.subr.mxu1 %v9364_v0  ;;  %9623 = vst [vmem:[#allocation23_spill] sm:$0xff] %v7930_v62 }
 0x56c   :  { %2256 = vmatpush1.msra.mxu0 %v9605_v50  ;;  %5424 = vmatpush3.msra.mxu1 %v9606_v46  ;;  %v7932_v27 = vpop.f32.mrf.mxu0 }
 0x56d   :  { %2257 = vmatprep.subr.mxu0 %v9607_v4  ;;  %5425 = vmatprep.subr.mxu1 %v9364_v0  ;;  %9624 = vst [vmem:[#allocation25_spill] sm:$0xff] %v7932_v27 }
 0x56e   :  { %2258 = vmatpush1.msra.mxu0 %v9608_v3  ;;  %5426 = vmatpush3.msra.mxu1 %v9609_v5  ;;  %v9625_v3 = vld [vmem:[#allocation37_spill] sm:$0xff] }
 0x56f   :  { %2259 = vmatprep.subr.mxu0 %v9610_v10  ;;  %5427 = vmatprep.subr.mxu1 %v9364_v0 }
 0x570   :  { %2260 = vmatpush1.msra.mxu0 %v9611_v35  ;;  %5428 = vmatpush3.msra.mxu1 %v9612_v2 }
 0x571   :  { %2261 = vmatprep.subr.mxu0 %v9613_v14  ;;  %5429 = vmatprep.subr.mxu1 %v9364_v0 }
 0x572   :  { %2262 = vmatpush1.msra.mxu0 %v9614_v17  ;;  %5430 = vmatpush3.msra.mxu1 %v9615_v18 }
 0x573   :  { %2263 = vmatprep.subr.mxu0 %v9616_v22  ;;  %5431 = vmatprep.subr.mxu1 %v9364_v0  ;;  %v9626_v22 = vld [vmem:[#allocation38_spill] sm:$0xff] }
 0x574   :  { %2264 = vmatpush1.msra.mxu0 %v9617_v23  ;;  %5432 = vmatpush3.msra.mxu1 %v9618_v26 }
 0x575   :  { %2265 = vmatprep.subr.mxu0 %v9619_v28  ;;  %5433 = vmatprep.subr.mxu1 %v9364_v0 }
 0x576   :  { %2266 = vmatpush1.msra.mxu0 %v9620_v30  ;;  %5434 = vmatpush3.msra.mxu1 %v9621_v31 }
 0x577   :  { %2299 = vmatprep.mubr.f32.mxu0 %v9364_v0  ;;  %5435 = vmatprep.mubr.msk.f32.mxu1 %vm6425_vm1, %v9364_v0 }
 0x578   :  { %2376 = vmatprep.subr.mxu0 %v9622_v34  ;;  %5438 = vmatprep.subr.mxu1 %v9364_v0 }
 0x5f5   :  { %v1991_v50 = vpop.f32.mrf.mxu0  ;;  %v2062_v4 = vpop.f32.mrf.mxu1 }
 0x5f6   :  { %v2213_v10 = vadd.f32 %v1991_v50, %v9625_v3  ;;  %v2227_v62 = vadd.f32 %v7538_v54, %v2062_v4  ;;  %v9628_v3 = vld [vmem:[#allocation45_spill] sm:$0xff]  ;;  %v9635_v4 = vld [vmem:[#allocation83_spill] sm:$0xff] }
 0x5f7   :  { %v5367_v35 = vpop.f32.mrf.mxu1  ;;  %v1993_v17 = vpop.f32.mrf.mxu0 }
 0x5f8   :  { %v4542_v14 = vmul.f32 -1.442695, %v2213_v10  ;;  %v2220_v23 = vadd.f32 %v1993_v17, %v9626_v22 }
 0x5fa   :  { %5955 = vpow2.f32 %v4542_v14  ;;  %v4543_v28 = vmul.f32 -1.442695, %v2220_v23 }
 0x5fc   :  { %5957 = vpow2.f32 %v4543_v28  ;;  %v9636_v28 = vld [vmem:[#allocation84_spill] sm:$0xff] }
 0x607   :  { %v5956_v30 = vpop.eup %5955 }
 0x608   :  { %v2217_v34 = vadd.f32 1.0, %v5956_v30  ;;  %v9637_v30 = vld [vmem:[#allocation85_spill] sm:$0xff] }
 0x609   :  { %v5958_v31 = vpop.eup %5957 }
 0x60a   :  { %5959 = vrcp.f32 %v2217_v34  ;;  %v2224_v26 = vadd.f32 1.0, %v5958_v31  ;;  %v9633_v31 = vld [vmem:[#allocation52_spill] sm:$0xff] }
 0x60c   :  { %5961 = vrcp.f32 %v2224_v26  ;;  %v9632_v26 = vld [vmem:[#allocation51_spill] sm:$0xff] }
 0x616   :  { %v7937_v27 = vpop.f32.mrf.mxu1 }
 0x617   :  { %9627 = vst [vmem:[#allocation26_spill] sm:$0xff] %v7937_v27  ;;  %v5960_v18 = vpop.eup %5959  ;;  %v6165_v27 = vld [vmem:[#allocation4 + $0x158] sm:$0xff] }
 0x618   :  { %v2228_v2 = vmul.f32 %v5960_v18, %v2227_v62  ;;  %v5402_v50 = vpop.f32.mrf.mxu1  ;;  %v9631_v18 = vld [vmem:[#allocation50_spill] sm:$0xff]  ;;  %v9634_v62 = vld [vmem:[#allocation53_spill] sm:$0xff] }
 0x619   :  { %v5962_v35 = vpop.eup %5961  ;;  %v9638_v50 = vld [vmem:[#allocation86_spill] sm:$0xff] }
 0x61a   :  { %v2229_v10 = vadd.f32 %v2228_v2, %v9628_v3  ;;  %v2231_v14 = vsub.f32 1.0, %v5962_v35  ;;  %v2233_v23 = vmul.f32 %v5962_v35, %v7774_v44  ;;  %v9629_v44 = vld [vmem:[#allocation36_spill] sm:$0xff]  ;;  %v9630_v2 = vld [vmem:[#allocation49_spill] sm:$0xff]  ;;  %v9639_v3 = vld [vmem:[#allocation87_spill] sm:$0xff] }
 0x61b   :  { %v9641_v35 = vld [vmem:[#allocation35_spill] sm:$0xff] }
 0x61c   :  { %5963 = vtanh.f32 %v2229_v10  ;;  %v9640_v10 = vld [vmem:[#allocation88_spill] sm:$0xff] }
 0x629   :  { %v5964_v17 = vpop.eup %5963 }
 0x62a   :  { %v2232_v22 = vmul.f32 %v5964_v17, %v2231_v14  ;;  %v9642_v14 = vld [vmem:[#allocation46_spill] sm:$0xff]  ;;  %v6162_v17 = vld [vmem:[#allocation4 + $0x170] sm:$0xff] }
 0x62c   :  { %v7941_v34 = vadd.f32 %v2233_v23, %v2232_v22  ;;  %v6163_v22 = vld [vmem:[#allocation4 + $0x168] sm:$0xff]  ;;  %v6164_v23 = vld [vmem:[#allocation4 + $0x178] sm:$0xff] }
 0x62e   :  { %2300 = vmatmul.mubr.f32.vlgmr.msra.gmra.mxu0 %v7941_v34  ;;  %5436 = vmatmul.mubr.f32.vlgmr.msra.gmra.mxu1 %v7941_v34 }
 0x62f   :  { %2377 = vmatpush1.msra.mxu0 %v7549_v15  ;;  %5439 = vmatpush3.msra.mxu1 %v7552_v48 }
 0x630   :  { %2378 = vmatprep.subr.mxu0 %v7555_v8  ;;  %5440 = vmatprep.subr.mxu1 %v9364_v0 }
 0x631   :  { %2379 = vmatpush1.msra.mxu0 %v7559_v60  ;;  %5441 = vmatpush3.msra.mxu1 %v7562_v59 }
 0x632   :  { %2380 = vmatprep.subr.mxu0 %v7565_v58  ;;  %5442 = vmatprep.subr.mxu1 %v9364_v0 }
 0x633   :  { %2381 = vmatpush1.msra.mxu0 %v7569_v13  ;;  %5443 = vmatpush3.msra.mxu1 %v7572_v12 }
 0x634   :  { %2382 = vmatprep.subr.mxu0 %v7575_v61  ;;  %5444 = vmatprep.subr.mxu1 %v9364_v0 }
 0x635   :  { %2383 = vmatpush1.msra.mxu0 %v9572_v36  ;;  %5445 = vmatpush3.msra.mxu1 %v9573_v37 }
 0x636   :  { %2384 = vmatprep.subr.mxu0 %v9574_v39  ;;  %5446 = vmatprep.subr.mxu1 %v9364_v0 }
 0x637   :  { %2385 = vmatpush1.msra.mxu0 %v9575_v40  ;;  %5447 = vmatpush3.msra.mxu1 %v9576_v55 }
 0x638   :  { %2386 = vmatprep.subr.mxu0 %v9577_v49  ;;  %5448 = vmatprep.subr.mxu1 %v9364_v0 }
 0x639   :  { %2387 = vmatpush1.msra.mxu0 %v9578_v32  ;;  %5449 = vmatpush3.msra.mxu1 %v9579_v25 }
 0x63a   :  { %2388 = vmatprep.subr.mxu0 %v9580_v1  ;;  %5450 = vmatprep.subr.mxu1 %v9364_v0 }
 0x63b   :  { %2389 = vmatpush1.msra.mxu0 %v9629_v44  ;;  %5451 = vmatpush3.msra.mxu1 %v9630_v2 }
 0x63c   :  { %2390 = vmatprep.subr.mxu0 %v9631_v18  ;;  %5452 = vmatprep.subr.mxu1 %v9364_v0 }
 0x63d   :  { %2391 = vmatpush1.msra.mxu0 %v9632_v26  ;;  %5453 = vmatpush3.msra.mxu1 %v9633_v31 }
 0x63e   :  { %2392 = vmatprep.subr.mxu0 %v9634_v62  ;;  %5454 = vmatprep.subr.mxu1 %v9364_v0 }
 0x63f   :  { %2393 = vmatpush1.msra.mxu0 %v9587_v42  ;;  %5455 = vmatpush3.msra.mxu1 %v9588_v41 }
 0x640   :  { %2394 = vmatprep.subr.mxu0 %v9589_v45  ;;  %5456 = vmatprep.subr.mxu1 %v9364_v0 }
 0x641   :  { %2395 = vmatpush1.msra.mxu0 %v9590_v9  ;;  %5457 = vmatpush3.msra.mxu1 %v9591_v21 }
 0x642   :  { %2396 = vmatprep.subr.mxu0 %v9592_v38  ;;  %5458 = vmatprep.subr.mxu1 %v9364_v0 }
 0x643   :  { %2397 = vmatpush1.msra.mxu0 %v9593_v6  ;;  %5459 = vmatpush3.msra.mxu1 %v9635_v4 }
 0x644   :  { %2398 = vmatprep.subr.mxu0 %v9636_v28  ;;  %5460 = vmatprep.subr.mxu1 %v9364_v0 }
 0x645   :  { %2399 = vmatpush1.msra.mxu0 %v7659_v19  ;;  %5461 = vmatpush3.msra.mxu1 %v9637_v30 }
 0x646   :  { %2400 = vmatprep.subr.mxu0 %v7665_v52  ;;  %5462 = vmatprep.subr.mxu1 %v9364_v0 }
 0x647   :  { %2401 = vmatpush1.msra.mxu0 %v9638_v50  ;;  %5463 = vmatpush3.msra.mxu1 %v9639_v3 }
 0x648   :  { %2402 = vmatprep.subr.mxu0 %v9640_v10  ;;  %5464 = vmatprep.subr.mxu1 %v9364_v0 }
 0x649   :  { %2403 = vmatpush1.msra.mxu0 %v7830_v43  ;;  %5465 = vmatpush3.msra.mxu1 %v9641_v35 }
 0x64a   :  { %2404 = vmatprep.subr.mxu0 %v9642_v14  ;;  %5466 = vmatprep.subr.mxu1 %v9364_v0 }
 0x64b   :  { %2405 = vmatpush1.msra.mxu0 %v7840_v53  ;;  %5467 = vmatpush3.msra.mxu1 %v7843_v51  ;;  %v6169_v51 = vld [vmem:[#allocation4 + $0x138] sm:$0xff] }
 0x64c   :  { %2406 = vmatprep.subr.mxu0 %v7846_v57  ;;  %5468 = vmatprep.subr.mxu1 %v9364_v0  ;;  %v6168_v57 = vld [vmem:[#allocation4 + $0x140] sm:$0xff] }
 0x64d   :  { %2407 = vmatpush1.msra.mxu0 %v7850_v7  ;;  %2440 = vmatprep.mubr.f32.mxu0 %v9364_v0  ;;  %v6167_v7 = vld [vmem:[#allocation4 + $0x160] sm:$0xff] }
 0x64e   :  { %5469 = vmatpush3.msra.mxu1 %v7854_v56  ;;  %5470 = vmatprep.mubr.msk.f32.mxu1 %vm6425_vm1, %v9364_v0  ;;  %v6166_v56 = vld [vmem:[#allocation4 + $0x150] sm:$0xff] }
 0x64f   :  { %2441 = vmatmul.mubr.f32.vlgmr.msra.gmra.mxu0 %v7941_v34  ;;  %5471 = vmatmul.mubr.f32.vlgmr.msra.gmra.mxu1 %v7941_v34 }
 0x650   :  { %2545 = vmatprep.subr.mxu0 %v6162_v17  ;;  %5473 = vmatprep.subr.mxu1 %v9364_v0  ;;  %v6170_v17 = vld [vmem:[#allocation4 + $0x128] sm:$0xff] }
 0x651   :  { %2546 = vmatpush1.msra.mxu0 %v6163_v22  ;;  %5474 = vmatpush3.msra.mxu1 %v6164_v23  ;;  %v6171_v22 = vld [vmem:[#allocation4 + $0x120] sm:$0xff]  ;;  %v6180_v23 = vld [vmem:[#allocation4 + $0xb0] sm:$0xff] }
 0x652   :  { %2547 = vmatprep.subr.mxu0 %v6165_v27  ;;  %5475 = vmatprep.subr.mxu1 %v9364_v0  ;;  %v6172_v27 = vld [vmem:[#allocation4 + $0x110] sm:$0xff] }
 0x653   :  { %2548 = vmatpush1.msra.mxu0 %v6166_v56  ;;  %5476 = vmatpush3.msra.mxu1 %v6167_v7  ;;  %v6173_v56 = vld [vmem:[#allocation4 + $0x108] sm:$0xff] }
 0x654   :  { %2549 = vmatprep.subr.mxu0 %v6168_v57  ;;  %5477 = vmatprep.subr.mxu1 %v9364_v0  ;;  %v6174_v57 = vld [vmem:[#allocation4 + $0xf8] sm:$0xff]  ;;  %v6178_v7 = vld [vmem:[#allocation4 + $0xc8] sm:$0xff] }
 0x655   :  { %2550 = vmatpush1.msra.mxu0 %v6169_v51  ;;  %5478 = vmatpush3.msra.mxu1 %v7441_v63  ;;  %v6175_v63 = vld [vmem:[#allocation4 + $0xf0] sm:$0xff]  ;;  %v6176_v51 = vld [vmem:[#allocation4 + $0xe0] sm:$0xff] }
 0x656   :  { %2551 = vmatprep.subr.mxu0 %v6170_v17  ;;  %5479 = vmatprep.subr.mxu1 %v9364_v0  ;;  %v6182_v17 = vld [vmem:[#allocation4 + $0x98] sm:$0xff] }
 0x657   :  { %2552 = vmatpush1.msra.mxu0 %v6171_v22  ;;  %5480 = vmatpush3.msra.mxu1 %v7447_v11  ;;  %v6177_v11 = vld [vmem:[#allocation4 + $0xd8] sm:$0xff]  ;;  %v6184_v22 = vld [vmem:[#allocation4 + $0x80] sm:$0xff] }
 0x658   :  { %2553 = vmatprep.subr.mxu0 %v6172_v27  ;;  %5481 = vmatprep.subr.mxu1 %v9364_v0  ;;  %v6186_v27 = vld [vmem:[#allocation4 + $0x68] sm:$0xff] }
 0x659   :  { %2554 = vmatpush1.msra.mxu0 %v6173_v56  ;;  %5482 = vmatpush3.msra.mxu1 %v7453_v16  ;;  %v6179_v16 = vld [vmem:[#allocation4 + $0xc0] sm:$0xff]  ;;  %v6188_v56 = vld [vmem:[#allocation4 + $0x50] sm:$0xff] }
 0x65a   :  { %2555 = vmatprep.subr.mxu0 %v6174_v57  ;;  %5483 = vmatprep.subr.mxu1 %v9364_v0  ;;  %v9643_v57 = vld [vmem:[#allocation31_spill] sm:$0xff] }
 0x65b   :  { %2556 = vmatpush1.msra.mxu0 %v6175_v63  ;;  %5484 = vmatpush3.msra.mxu1 %v7459_v20  ;;  %v6181_v20 = vld [vmem:[#allocation4 + $0xa8] sm:$0xff]  ;;  %v6190_v63 = vld [vmem:[#allocation4 + $0x38] sm:$0xff] }
 0x65c   :  { %2557 = vmatprep.subr.mxu0 %v6176_v51  ;;  %5485 = vmatprep.subr.mxu1 %v9364_v0  ;;  %v9644_v51 = vld [vmem:[#allocation44_spill] sm:$0xff] }
 0x65d   :  { %2558 = vmatpush1.msra.mxu0 %v6177_v11  ;;  %5486 = vmatpush3.msra.mxu1 %v7465_v24  ;;  %v6183_v24 = vld [vmem:[#allocation4 + $0x90] sm:$0xff]  ;;  %v6192_v11 = vld [vmem:[#allocation4 + $0x20] sm:$0xff] }
 0x65e   :  { %2559 = vmatprep.subr.mxu0 %v6178_v7  ;;  %5487 = vmatprep.subr.mxu1 %v9364_v0  ;;  %v9645_v7 = vld [vmem:[#allocation68_spill] sm:$0xff] }
 0x65f   :  { %2560 = vmatpush1.msra.mxu0 %v6179_v16  ;;  %5488 = vmatpush3.msra.mxu1 %v7471_v29  ;;  %v6185_v29 = vld [vmem:[#allocation4 + $0x78] sm:$0xff]  ;;  %v6194_v16 = vld [vmem:[#allocation4 + $0x8] sm:$0xff] }
 0x660   :  { %2561 = vmatprep.subr.mxu0 %v6180_v23  ;;  %5489 = vmatprep.subr.mxu1 %v9364_v0  ;;  %v6195_v23 = vld [vmem:[#allocation4] sm:$0xff] }
 0x661   :  { %2562 = vmatpush1.msra.mxu0 %v6181_v20  ;;  %5490 = vmatpush3.msra.mxu1 %v7477_v33  ;;  %v6187_v33 = vld [vmem:[#allocation4 + $0x60] sm:$0xff] }
 0x662   :  { %2563 = vmatprep.subr.mxu0 %v6182_v17  ;;  %5491 = vmatprep.subr.mxu1 %v9364_v0  ;;  %v9646_v20 = vld [vmem:[#allocation77_spill] sm:$0xff]  ;;  %v9647_v17 = vld [vmem:[#allocation78_spill] sm:$0xff] }
 0x663   :  { %2564 = vmatpush1.msra.mxu0 %v6183_v24  ;;  %5492 = vmatpush3.msra.mxu1 %v9603_v47  ;;  %v6189_v47 = vld [vmem:[#allocation4 + $0x48] sm:$0xff]  ;;  %v8047_v24 = vpop.f32.mrf.mxu0 }
 0x664   :  { %2565 = vmatprep.subr.mxu0 %v6184_v22  ;;  %5493 = vmatprep.subr.mxu1 %v9364_v0  ;;  %9648 = vst [vmem:[#allocation28_spill] sm:$0xff] %v8047_v24 }
 0x665   :  { %2566 = vmatpush1.msra.mxu0 %v6185_v29  ;;  %5494 = vmatpush3.msra.mxu1 %v9606_v46  ;;  %v6191_v46 = vld [vmem:[#allocation4 + $0x30] sm:$0xff]  ;;  %v8049_v22 = vpop.f32.mrf.mxu0 }
 0x666   :  { %2567 = vmatprep.subr.mxu0 %v6186_v27  ;;  %5495 = vmatprep.subr.mxu1 %v9364_v0  ;;  %9649 = vst [vmem:[#allocation29_spill] sm:$0xff] %v8049_v22 }
 0x667   :  { %2568 = vmatpush1.msra.mxu0 %v6187_v33  ;;  %5496 = vmatpush3.msra.mxu1 %v9609_v5  ;;  %v6193_v5 = vld [vmem:[#allocation4 + $0x18] sm:$0xff]  ;;  %v9650_v33 = vld [vmem:[#allocation39_spill] sm:$0xff] }
 0x668   :  { %2569 = vmatprep.subr.mxu0 %v6188_v56  ;;  %5497 = vmatprep.subr.mxu1 %v9364_v0 }
 0x669   :  { %2570 = vmatpush1.msra.mxu0 %v6189_v47  ;;  %5498 = vmatpush3.msra.mxu1 %v9643_v57 }
 0x66a   :  { %2571 = vmatprep.subr.mxu0 %v6190_v63  ;;  %5499 = vmatprep.subr.mxu1 %v9364_v0 }
 0x66b   :  { %2572 = vmatpush1.msra.mxu0 %v6191_v46  ;;  %5500 = vmatpush3.msra.mxu1 %v9644_v51  ;;  %v9651_v46 = vld [vmem:[#allocation40_spill] sm:$0xff] }
 0x66c   :  { %2573 = vmatprep.subr.mxu0 %v6192_v11  ;;  %5501 = vmatprep.subr.mxu1 %v9364_v0 }
 0x66d   :  { %2574 = vmatpush1.msra.mxu0 %v6193_v5  ;;  %5502 = vmatpush3.msra.mxu1 %v9645_v7 }
 0x66e   :  { %2575 = vmatprep.subr.mxu0 %v6194_v16  ;;  %5503 = vmatprep.subr.mxu1 %v9364_v0 }
 0x66f   :  { %2576 = vmatpush1.msra.mxu0 %v6195_v23  ;;  %5504 = vmatpush3.msra.mxu1 %v9646_v20 }
 0x670   :  { %2609 = vmatprep.mubr.f32.mxu0 %v9364_v0  ;;  %5505 = vmatprep.mubr.msk.f32.mxu1 %vm6425_vm1, %v9364_v0 }
 0x671   :  { %2686 = vmatprep.subr.mxu0 %v9647_v17  ;;  %5508 = vmatprep.subr.mxu1 %v9364_v0 }
 0x6ee   :  { %v2301_v29 = vpop.f32.mrf.mxu0  ;;  %v2372_v27 = vpop.f32.mrf.mxu1 }
 0x6ef   :  { %v2523_v56 = vadd.f32 %v2301_v29, %v9650_v33  ;;  %v2537_v20 = vadd.f32 %v7538_v54, %v2372_v27  ;;  %v9653_v33 = vld [vmem:[#allocation48_spill] sm:$0xff]  ;;  %v9654_v54 = vld [vmem:[#allocation82_spill] sm:$0xff] }
 0x6f0   :  { %v5437_v47 = vpop.f32.mrf.mxu1  ;;  %v2303_v63 = vpop.f32.mrf.mxu0  ;;  %v6235_v27 = vld [vmem:[#allocation7 + $0x38] sm:$0xff] }
 0x6f1   :  { %v4544_v57 = vmul.f32 -1.442695, %v2523_v56  ;;  %v2530_v51 = vadd.f32 %v2303_v63, %v9651_v46 }
 0x6f3   :  { %5965 = vpow2.f32 %v4544_v57  ;;  %v4545_v11 = vmul.f32 -1.442695, %v2530_v51 }
 0x6f5   :  { %5967 = vpow2.f32 %v4545_v11 }
 0x700   :  { %v5966_v5 = vpop.eup %5965 }
 0x701   :  { %v2527_v7 = vadd.f32 1.0, %v5966_v5 }
 0x702   :  { %v5968_v16 = vpop.eup %5967 }
 0x703   :  { %5969 = vrcp.f32 %v2527_v7  ;;  %v2534_v23 = vadd.f32 1.0, %v5968_v16  ;;  %v9661_v7 = vld [vmem:[#allocation41_spill] sm:$0xff] }
 0x705   :  { %5971 = vrcp.f32 %v2534_v23 }
 0x70f   :  { %v8054_v17 = vpop.f32.mrf.mxu1 }
 0x710   :  { %9652 = vst [vmem:[#allocation54_spill] sm:$0xff] %v8054_v17  ;;  %v5970_v22 = vpop.eup %5969 }
 0x711   :  { %v2538_v24 = vmul.f32 %v5970_v22, %v2537_v20  ;;  %v5472_v29 = vpop.f32.mrf.mxu1  ;;  %v6234_v22 = vld [vmem:[#allocation7 + $0x58] sm:$0xff] }
 0x712   :  { %v5972_v47 = vpop.eup %5971 }
 0x713   :  { %v2539_v56 = vadd.f32 %v2538_v24, %v9653_v33  ;;  %v2541_v57 = vsub.f32 1.0, %v5972_v47  ;;  %v2543_v51 = vmul.f32 %v5972_v47, %v7941_v34  ;;  %v6220_v34 = vld [vmem:[#allocation7 + $0xb0] sm:$0xff]  ;;  %v6233_v24 = vld [vmem:[#allocation7 + $0x48] sm:$0xff] }
 0x714   :  { %v9662_v33 = vld [vmem:[#allocation42_spill] sm:$0xff] }
 0x715   :  { %5973 = vtanh.f32 %v2539_v56 }
 0x722   :  { %v5974_v63 = vpop.eup %5973 }
 0x723   :  { %v2542_v46 = vmul.f32 %v5974_v63, %v2541_v57 }
 0x725   :  { %v8058_v11 = vadd.f32 %v2543_v51, %v2542_v46 }
 0x727   :  { %2610 = vmatmul.mubr.f32.vlgmr.msra.gmra.mxu0 %v8058_v11  ;;  %5506 = vmatmul.mubr.f32.vlgmr.msra.gmra.mxu1 %v8058_v11 }
 0x728   :  { %2687 = vmatpush1.msra.mxu0 %v7549_v15  ;;  %5509 = vmatpush3.msra.mxu1 %v7552_v48  ;;  %v9655_v15 = vld [vmem:[#allocation21_spill] sm:$0xff]  ;;  %v9656_v48 = vld [vmem:[#allocation24_spill] sm:$0xff] }
 0x729   :  { %2688 = vmatprep.subr.mxu0 %v7555_v8  ;;  %5510 = vmatprep.subr.mxu1 %v9364_v0  ;;  %v9657_v8 = vld [vmem:[#allocation22_spill] sm:$0xff] }
 0x72a   :  { %2689 = vmatpush1.msra.mxu0 %v7559_v60  ;;  %5511 = vmatpush3.msra.mxu1 %v7562_v59  ;;  %v6196_v60 = vld [vmem:[#allocation7 + $0x170] sm:$0xff]  ;;  %v6197_v59 = vld [vmem:[#allocation7 + $0x168] sm:$0xff] }
 0x72b   :  { %2690 = vmatprep.subr.mxu0 %v7565_v58  ;;  %5512 = vmatprep.subr.mxu1 %v9364_v0  ;;  %v6198_v58 = vld [vmem:[#allocation7 + $0x178] sm:$0xff] }
 0x72c   :  { %2691 = vmatpush1.msra.mxu0 %v7569_v13  ;;  %5513 = vmatpush3.msra.mxu1 %v7572_v12  ;;  %v6199_v13 = vld [vmem:[#allocation7 + $0x158] sm:$0xff]  ;;  %v6200_v12 = vld [vmem:[#allocation7 + $0x150] sm:$0xff] }
 0x72d   :  { %2692 = vmatprep.subr.mxu0 %v7575_v61  ;;  %5514 = vmatprep.subr.mxu1 %v9364_v0  ;;  %v6201_v61 = vld [vmem:[#allocation7 + $0x160] sm:$0xff] }
 0x72e   :  { %2693 = vmatpush1.msra.mxu0 %v9572_v36  ;;  %5515 = vmatpush3.msra.mxu1 %v9573_v37  ;;  %v6205_v36 = vld [vmem:[#allocation7 + $0x128] sm:$0xff]  ;;  %v6206_v37 = vld [vmem:[#allocation7 + $0x120] sm:$0xff] }
 0x72f   :  { %2694 = vmatprep.subr.mxu0 %v9574_v39  ;;  %5516 = vmatprep.subr.mxu1 %v9364_v0  ;;  %v6207_v39 = vld [vmem:[#allocation7 + $0x130] sm:$0xff] }
 0x730   :  { %2695 = vmatpush1.msra.mxu0 %v9575_v40  ;;  %5517 = vmatpush3.msra.mxu1 %v9576_v55  ;;  %v6208_v40 = vld [vmem:[#allocation7 + $0x110] sm:$0xff]  ;;  %v6209_v55 = vld [vmem:[#allocation7 + $0x108] sm:$0xff] }
 0x731   :  { %2696 = vmatprep.subr.mxu0 %v9577_v49  ;;  %5518 = vmatprep.subr.mxu1 %v9364_v0  ;;  %v6210_v49 = vld [vmem:[#allocation7 + $0x118] sm:$0xff] }
 0x732   :  { %2697 = vmatpush1.msra.mxu0 %v9578_v32  ;;  %5519 = vmatpush3.msra.mxu1 %v9579_v25  ;;  %v6211_v32 = vld [vmem:[#allocation7 + $0xf8] sm:$0xff]  ;;  %v6212_v25 = vld [vmem:[#allocation7 + $0xf0] sm:$0xff] }
 0x733   :  { %2698 = vmatprep.subr.mxu0 %v9580_v1  ;;  %5520 = vmatprep.subr.mxu1 %v9364_v0  ;;  %v6213_v1 = vld [vmem:[#allocation7 + $0x100] sm:$0xff] }
 0x734   :  { %2699 = vmatpush1.msra.mxu0 %v9629_v44  ;;  %5521 = vmatpush3.msra.mxu1 %v9630_v2  ;;  %v6221_v44 = vld [vmem:[#allocation7 + $0xa8] sm:$0xff]  ;;  %v6222_v2 = vld [vmem:[#allocation7 + $0xb8] sm:$0xff] }
 0x735   :  { %2700 = vmatprep.subr.mxu0 %v9631_v18  ;;  %5522 = vmatprep.subr.mxu1 %v9364_v0  ;;  %v6223_v18 = vld [vmem:[#allocation7 + $0x98] sm:$0xff] }
 0x736   :  { %2701 = vmatpush1.msra.mxu0 %v9632_v26  ;;  %5523 = vmatpush3.msra.mxu1 %v9633_v31  ;;  %v6224_v26 = vld [vmem:[#allocation7 + $0x90] sm:$0xff]  ;;  %v6225_v31 = vld [vmem:[#allocation7 + $0xa0] sm:$0xff] }
 0x737   :  { %2702 = vmatprep.subr.mxu0 %v9634_v62  ;;  %5524 = vmatprep.subr.mxu1 %v9364_v0  ;;  %v6226_v62 = vld [vmem:[#allocation7 + $0x80] sm:$0xff] }
 0x738   :  { %2703 = vmatpush1.msra.mxu0 %v9587_v42  ;;  %5525 = vmatpush3.msra.mxu1 %v9588_v41  ;;  %v6218_v42 = vld [vmem:[#allocation7 + $0xc0] sm:$0xff]  ;;  %v6219_v41 = vld [vmem:[#allocation7 + $0xd0] sm:$0xff] }
 0x739   :  { %2704 = vmatprep.subr.mxu0 %v9589_v45  ;;  %5526 = vmatprep.subr.mxu1 %v9364_v0  ;;  %v6204_v45 = vld [vmem:[#allocation7 + $0x148] sm:$0xff] }
 0x73a   :  { %2705 = vmatpush1.msra.mxu0 %v9590_v9  ;;  %5527 = vmatpush3.msra.mxu1 %v9591_v21  ;;  %v6215_v9 = vld [vmem:[#allocation7 + $0xd8] sm:$0xff]  ;;  %v6216_v21 = vld [vmem:[#allocation7 + $0xe8] sm:$0xff] }
 0x73b   :  { %2706 = vmatprep.subr.mxu0 %v9592_v38  ;;  %5528 = vmatprep.subr.mxu1 %v9364_v0  ;;  %v6214_v38 = vld [vmem:[#allocation7 + $0xe0] sm:$0xff] }
 0x73c   :  { %2707 = vmatpush1.msra.mxu0 %v9593_v6  ;;  %5529 = vmatpush3.msra.mxu1 %v9635_v4  ;;  %v6217_v6 = vld [vmem:[#allocation7 + $0xc8] sm:$0xff]  ;;  %v6227_v4 = vld [vmem:[#allocation7 + $0x78] sm:$0xff] }
 0x73d   :  { %2708 = vmatprep.subr.mxu0 %v9636_v28  ;;  %5530 = vmatprep.subr.mxu1 %v9364_v0  ;;  %v6228_v28 = vld [vmem:[#allocation7 + $0x88] sm:$0xff] }
 0x73e   :  { %2709 = vmatpush1.msra.mxu0 %v7659_v19  ;;  %5531 = vmatpush3.msra.mxu1 %v9637_v30  ;;  %v6203_v19 = vld [vmem:[#allocation7 + $0x138] sm:$0xff]  ;;  %v6229_v30 = vld [vmem:[#allocation7 + $0x68] sm:$0xff] }
 0x73f   :  { %2710 = vmatprep.subr.mxu0 %v7665_v52  ;;  %5532 = vmatprep.subr.mxu1 %v9364_v0  ;;  %v6202_v52 = vld [vmem:[#allocation7 + $0x140] sm:$0xff] }
 0x740   :  { %2711 = vmatpush1.msra.mxu0 %v9638_v50  ;;  %5533 = vmatpush3.msra.mxu1 %v9639_v3  ;;  %v6230_v50 = vld [vmem:[#allocation7 + $0x60] sm:$0xff]  ;;  %v6231_v3 = vld [vmem:[#allocation7 + $0x70] sm:$0xff] }
 0x741   :  { %2712 = vmatprep.subr.mxu0 %v9640_v10  ;;  %5534 = vmatprep.subr.mxu1 %v9364_v0  ;;  %v6232_v10 = vld [vmem:[#allocation7 + $0x50] sm:$0xff] }
 0x742   :  { %2713 = vmatpush1.msra.mxu0 %v7830_v43  ;;  %5535 = vmatpush3.msra.mxu1 %v9641_v35 }
 0x743   :  { %2714 = vmatprep.subr.mxu0 %v9642_v14  ;;  %5536 = vmatprep.subr.mxu1 %v9364_v0 }
 0x744   :  { %2715 = vmatpush1.msra.mxu0 %v7840_v53  ;;  %5537 = vmatpush3.msra.mxu1 %v9654_v54 }
 0x745   :  { %2716 = vmatprep.subr.mxu0 %v9655_v15  ;;  %5538 = vmatprep.subr.mxu1 %v9364_v0 }
 0x746   :  { %2717 = vmatpush1.msra.mxu0 %v9656_v48  ;;  %2750 = vmatprep.mubr.f32.mxu0 %v9364_v0 }
 0x747   :  { %5539 = vmatpush3.msra.mxu1 %v9657_v8  ;;  %5540 = vmatprep.mubr.msk.f32.mxu1 %vm6425_vm1, %v9364_v0 }
 0x748   :  { %2751 = vmatmul.mubr.f32.vlgmr.msra.gmra.mxu0 %v8058_v11  ;;  %5541 = vmatmul.mubr.f32.vlgmr.msra.gmra.mxu1 %v8058_v11 }
 0x749   :  { %2855 = vmatprep.subr.mxu0 %v6196_v60  ;;  %5543 = vmatprep.subr.mxu1 %v9364_v0 }
 0x74a   :  { %2856 = vmatpush1.msra.mxu0 %v6197_v59  ;;  %5544 = vmatpush3.msra.mxu1 %v6198_v58  ;;  %v9664_v58 = vld [vmem:[#allocation47_spill] sm:$0xff] }
 0x74b   :  { %2857 = vmatprep.subr.mxu0 %v6199_v13  ;;  %5545 = vmatprep.subr.mxu1 %v9364_v0 }
 0x74c   :  { %2858 = vmatpush1.msra.mxu0 %v6200_v12  ;;  %5546 = vmatpush3.msra.mxu1 %v6201_v61 }
 0x74d   :  { %2859 = vmatprep.subr.mxu0 %v6202_v52  ;;  %5547 = vmatprep.subr.mxu1 %v9364_v0 }
 0x74e   :  { %2860 = vmatpush1.msra.mxu0 %v6203_v19  ;;  %5548 = vmatpush3.msra.mxu1 %v6204_v45 }
 0x74f   :  { %2861 = vmatprep.subr.mxu0 %v6205_v36  ;;  %5549 = vmatprep.subr.mxu1 %v9364_v0 }
 0x750   :  { %2862 = vmatpush1.msra.mxu0 %v6206_v37  ;;  %5550 = vmatpush3.msra.mxu1 %v6207_v39  ;;  %v8173_v37 = vld [vmem:[#allocation9 + $0x168] sm:$0xff]  ;;  %v8175_v39 = vld [vmem:[#allocation9 + $0x158] sm:$0xff] }
 0x751   :  { %2863 = vmatprep.subr.mxu0 %v6208_v40  ;;  %5551 = vmatprep.subr.mxu1 %v9364_v0  ;;  %v8177_v40 = vld [vmem:[#allocation9 + $0x178] sm:$0xff] }
 0x752   :  { %2864 = vmatpush1.msra.mxu0 %v6209_v55  ;;  %5552 = vmatpush3.msra.mxu1 %v6210_v49  ;;  %v8179_v55 = vld [vmem:[#allocation9 + $0x150] sm:$0xff]  ;;  %v8182_v49 = vld [vmem:[#allocation9 + $0x140] sm:$0xff] }
 0x753   :  { %2865 = vmatprep.subr.mxu0 %v6211_v32  ;;  %5553 = vmatprep.subr.mxu1 %v9364_v0  ;;  %v8185_v32 = vld [vmem:[#allocation9 + $0x160] sm:$0xff] }
 0x754   :  { %2866 = vmatpush1.msra.mxu0 %v6212_v25  ;;  %5554 = vmatpush3.msra.mxu1 %v6213_v1  ;;  %v8192_v25 = vld [vmem:[#allocation9 + $0x128] sm:$0xff] }
 0x755   :  { %2867 = vmatprep.subr.mxu0 %v6214_v38  ;;  %5555 = vmatprep.subr.mxu1 %v9364_v0  ;;  %v8195_v1 = vld [vmem:[#allocation9 + $0x148] sm:$0xff]  ;;  %v8198_v38 = vld [vmem:[#allocation9 + $0x120] sm:$0xff] }
 0x756   :  { %2868 = vmatpush1.msra.mxu0 %v6215_v9  ;;  %5556 = vmatpush3.msra.mxu1 %v6216_v21  ;;  %v8202_v9 = vld [vmem:[#allocation9 + $0x110] sm:$0xff] }
 0x757   :  { %2869 = vmatprep.subr.mxu0 %v6217_v6  ;;  %5557 = vmatprep.subr.mxu1 %v9364_v0  ;;  %v8205_v21 = vld [vmem:[#allocation9 + $0x130] sm:$0xff]  ;;  %v8208_v6 = vld [vmem:[#allocation9 + $0x108] sm:$0xff] }
 0x758   :  { %2870 = vmatpush1.msra.mxu0 %v6218_v42  ;;  %5558 = vmatpush3.msra.mxu1 %v6219_v41  ;;  %v8212_v42 = vld [vmem:[#allocation9 + $0xf8] sm:$0xff] }
 0x759   :  { %2871 = vmatprep.subr.mxu0 %v6220_v34  ;;  %5559 = vmatprep.subr.mxu1 %v9364_v0  ;;  %v8215_v41 = vld [vmem:[#allocation9 + $0x118] sm:$0xff]  ;;  %v8218_v34 = vld [vmem:[#allocation9 + $0xf0] sm:$0xff] }
 0x75a   :  { %2872 = vmatpush1.msra.mxu0 %v6221_v44  ;;  %5560 = vmatpush3.msra.mxu1 %v6222_v2  ;;  %v8222_v44 = vld [vmem:[#allocation9 + $0xe0] sm:$0xff] }
 0x75b   :  { %2873 = vmatprep.subr.mxu0 %v6223_v18  ;;  %5561 = vmatprep.subr.mxu1 %v9364_v0  ;;  %v8225_v2 = vld [vmem:[#allocation9 + $0x100] sm:$0xff]  ;;  %v8228_v18 = vld [vmem:[#allocation9 + $0xd8] sm:$0xff] }
 0x75c   :  { %2874 = vmatpush1.msra.mxu0 %v6224_v26  ;;  %5562 = vmatpush3.msra.mxu1 %v6225_v31  ;;  %v8232_v26 = vld [vmem:[#allocation9 + $0xc8] sm:$0xff] }
 0x75d   :  { %2875 = vmatprep.subr.mxu0 %v6226_v62  ;;  %5563 = vmatprep.subr.mxu1 %v9364_v0  ;;  %v8235_v31 = vld [vmem:[#allocation9 + $0xe8] sm:$0xff]  ;;  %v8238_v62 = vld [vmem:[#allocation9 + $0xc0] sm:$0xff] }
 0x75e   :  { %2876 = vmatpush1.msra.mxu0 %v6227_v4  ;;  %5564 = vmatpush3.msra.mxu1 %v6228_v28  ;;  %v8242_v4 = vld [vmem:[#allocation9 + $0xb0] sm:$0xff] }
 0x75f   :  { %2877 = vmatprep.subr.mxu0 %v6229_v30  ;;  %5565 = vmatprep.subr.mxu1 %v9364_v0  ;;  %v8245_v28 = vld [vmem:[#allocation9 + $0xd0] sm:$0xff]  ;;  %v8248_v30 = vld [vmem:[#allocation9 + $0xa8] sm:$0xff] }
 0x760   :  { %2878 = vmatpush1.msra.mxu0 %v6230_v50  ;;  %5566 = vmatpush3.msra.mxu1 %v6231_v3  ;;  %v8252_v50 = vld [vmem:[#allocation9 + $0x98] sm:$0xff] }
 0x761   :  { %2879 = vmatprep.subr.mxu0 %v6232_v10  ;;  %5567 = vmatprep.subr.mxu1 %v9364_v0  ;;  %v8255_v3 = vld [vmem:[#allocation9 + $0xb8] sm:$0xff]  ;;  %v8258_v10 = vld [vmem:[#allocation9 + $0x90] sm:$0xff] }
 0x762   :  { %2880 = vmatpush1.msra.mxu0 %v6233_v24  ;;  %5568 = vmatpush3.msra.mxu1 %v6234_v22  ;;  %v8262_v24 = vld [vmem:[#allocation9 + $0x80] sm:$0xff] }
 0x763   :  { %2881 = vmatprep.subr.mxu0 %v6235_v27  ;;  %5569 = vmatprep.subr.mxu1 %v9364_v0  ;;  %v8265_v22 = vld [vmem:[#allocation9 + $0xa0] sm:$0xff]  ;;  %v8268_v27 = vld [vmem:[#allocation9 + $0x78] sm:$0xff] }
 0x764   :  { %2882 = vmatpush1.msra.mxu0 %v7830_v43  ;;  %5570 = vmatpush3.msra.mxu1 %v9641_v35  ;;  %v8157_v43 = vld [vmem:[#allocation9 + $0x170] sm:$0xff] }
 0x765   :  { %2883 = vmatprep.subr.mxu0 %v9642_v14  ;;  %5571 = vmatprep.subr.mxu1 %v9364_v0  ;;  %9658 = vst [vmem:[#allocation55_spill] sm:$0xff] %v8157_v43 }
 0x766   :  { %2884 = vmatpush1.msra.mxu0 %v7840_v53  ;;  %5572 = vmatpush3.msra.mxu1 %v9654_v54  ;;  %v8160_v53 = vpop.f32.mrf.mxu0  ;;  %v6236_v54 = vld [vmem:[%s9066_s5] ss:$0 sm:$0xff] }
 0x767   :  { %2885 = vmatprep.subr.mxu0 %v9655_v15  ;;  %5573 = vmatprep.subr.mxu1 %v9364_v0  ;;  %9659 = vst [vmem:[#allocation56_spill] sm:$0xff] %v8160_v53 }
 0x768   :  { %2886 = vmatpush1.msra.mxu0 %v9656_v48  ;;  %2919 = vmatprep.mubr.f32.mxu0 %v9364_v0  ;;  %v8162_v35 = vpop.f32.mrf.mxu0 }
 0x769   :  { %5574 = vmatpush3.msra.mxu1 %v9657_v8  ;;  %5575 = vmatprep.mubr.msk.f32.mxu1 %vm6425_vm1, %v9364_v0  ;;  %9660 = vst [vmem:[#allocation57_spill] sm:$0xff] %v8162_v35 }
 0x76a   :  { %5578 = vmatprep.subr.mxu1 %v9364_v0  ;;  %3057 = vmatprep.subr.mxu0 %v8157_v43 }
 0x7e7   :  { %v2611_v14 = vpop.f32.mrf.mxu0  ;;  %v2682_v5 = vpop.f32.mrf.mxu1 }
 0x7e8   :  { %v2833_v16 = vadd.f32 %v2611_v14, %v9661_v7  ;;  %v2847_v15 = vadd.f32 %v6236_v54, %v2682_v5  ;;  %v8272_v14 = vld [vmem:[#allocation9 + $0x68] sm:$0xff]  ;;  %v8278_v7 = vld [vmem:[#allocation9 + $0x60] sm:$0xff] }
 0x7e9   :  { %v5507_v23 = vpop.f32.mrf.mxu1  ;;  %v2613_v29 = vpop.f32.mrf.mxu0  ;;  %v8275_v5 = vld [vmem:[#allocation9 + $0x88] sm:$0xff]  ;;  %v8318_v54 = vld [vmem:[#allocation9] sm:$0xff] }
 0x7ea   :  { %v4546_v20 = vmul.f32 -1.442695, %v2833_v16  ;;  %v2840_v56 = vadd.f32 %v2613_v29, %v9662_v33  ;;  %v8282_v16 = vld [vmem:[#allocation9 + $0x50] sm:$0xff]  ;;  %v8292_v29 = vld [vmem:[#allocation9 + $0x38] sm:$0xff]  ;;  %9668 = vst [vmem:[#allocation75_spill] sm:$0xff] %v8318_v54 }
 0x7eb   :  { %v8285_v23 = vld [vmem:[#allocation9 + $0x70] sm:$0xff]  ;;  %v8295_v33 = vld [vmem:[#allocation9 + $0x58] sm:$0xff] }
 0x7ec   :  { %5975 = vpow2.f32 %v4546_v20  ;;  %v4547_v47 = vmul.f32 -1.442695, %v2840_v56  ;;  %v8288_v20 = vld [vmem:[#allocation9 + $0x48] sm:$0xff]  ;;  %v8298_v56 = vld [vmem:[#allocation9 + $0x30] sm:$0xff] }
 0x7ee   :  { %5977 = vpow2.f32 %v4547_v47  ;;  %v8302_v47 = vld [vmem:[#allocation9 + $0x20] sm:$0xff] }
 0x7f9   :  { %v5976_v57 = vpop.eup %5975 }
 0x7fa   :  { %v2837_v63 = vadd.f32 1.0, %v5976_v57  ;;  %v8305_v57 = vld [vmem:[#allocation9 + $0x40] sm:$0xff] }
 0x7fb   :  { %v5978_v46 = vpop.eup %5977 }
 0x7fc   :  { %5979 = vrcp.f32 %v2837_v63  ;;  %v2844_v51 = vadd.f32 1.0, %v5978_v46  ;;  %v8308_v63 = vld [vmem:[#allocation9 + $0x18] sm:$0xff]  ;;  %v8312_v46 = vld [vmem:[#allocation9 + $0x8] sm:$0xff] }
 0x7fd   :  { %9665 = vst [vmem:[#allocation33_spill] sm:$0xff] %v8308_v63  ;;  %9666 = vst [vmem:[#allocation43_spill] sm:$0xff] %v8312_v46 }
 0x7fe   :  { %5981 = vrcp.f32 %v2844_v51  ;;  %v8315_v51 = vld [vmem:[#allocation9 + $0x28] sm:$0xff] }
 0x7ff   :  { %9667 = vst [vmem:[#allocation58_spill] sm:$0xff] %v8315_v51 }
 0x808   :  { %v8169_v48 = vpop.f32.mrf.mxu1 }
 0x809   :  { %9663 = vst [vmem:[#allocation32_spill] sm:$0xff] %v8169_v48  ;;  %v5980_v8 = vpop.eup %5979  ;;  %v9678_v48 = vld [vmem:[#allocation72_spill] sm:$0xff] }
 0x80a   :  { %v2848_v60 = vmul.f32 %v5980_v8, %v2847_v15  ;;  %v5542_v59 = vpop.f32.mrf.mxu1  ;;  %v8325_v15 = vld [vmem:[%s9062_s1 + $0x8] sm:$0xff]  ;;  %v8328_v8 = vld [vmem:[#allocation9 + $0x10] sm:$0xff] }
 0x80b   :  { %v5982_v12 = vpop.eup %5981  ;;  %9669 = vst [vmem:[#allocation59_spill] sm:$0xff] %v8328_v8 }
 0x80c   :  { %v2849_v13 = vadd.f32 %v2848_v60, %v9664_v58  ;;  %v2851_v61 = vsub.f32 1.0, %v5982_v12  ;;  %v2853_v45 = vmul.f32 %v5982_v12, %v8058_v11  ;;  %v8188_v11 = vld [vmem:[#allocation9 + $0x138] sm:$0xff]  ;;  %v8410_v58 = vpop.f32.mrf.mxu0 }
 0x80d   :  { %9671 = vst [vmem:[#allocation76_spill] sm:$0xff] %v8410_v58 }
 0x80e   :  { %5983 = vtanh.f32 %v2849_v13  ;;  %v643_v13 = vld [vmem:[%s9069_s8] sm:$0x7]  ;;  %v8415_v12 = vpop.f32.mrf.mxu0 }
 0x80f   :  { %9672 = vst [vmem:[#allocation61_spill] sm:$0xff] %v8415_v12 }
 0x81b   :  { %v5984_v52 = vpop.eup %5983 }
 0x81c   :  { %v2852_v19 = vmul.f32 %v5984_v52, %v2851_v61  ;;  %v9674_v52 = vld [vmem:[#allocation27_spill] sm:$0xff] }
 0x81d   :  { %v9679_v58 = vsub.s32 1, %v9674_v52 }
 0x81e   :  { %v2854_v36 = vadd.f32 %v2853_v45, %v2852_v19  ;;  %v9675_v19 = vsub.s32 0, %v9674_v52 }
 0x81f   :  { %v8429_v17 = vrot.slane %v643_v13, %v9679_v58  ;;  %v8436_v58 = vld [vmem:[%s9070_s9] ss:$0 sm:$0xff] }
 0x820   :  { %2920 = vmatmul.mubr.f32.vlgmr.msra.gmra.mxu0 %v2854_v36  ;;  %2999 = vst [vmem:[#allocation13] sm:$0xff] %v2854_v36  ;;  %5576 = vmatmul.mubr.f32.vlgmr.msra.gmra.mxu1 %v2854_v36  ;;  %v8421_v45 = vrot.slane %v643_v13, %v9675_v19 }
 0x821   :  { %3058 = vmatpush1.msra.mxu0 %v8173_v37  ;;  %3121 = vmatprep.mubr.f32.mxu0 %v9364_v0  ;;  %9680 = vst [vmem:[#allocation64_spill] sm:$0xff] %v8429_v17 }
 0x822   :  { %3059 = vmatprep.subr.mxu0 %v8175_v39  ;;  %5579 = vmatpush3.msra.mxu1 %v8177_v40  ;;  %9676 = vst [vmem:[#allocation30_spill] sm:$0xff] %v8421_v45 }
 0x823   :  { %3060 = vmatpush1.msra.mxu0 %v8179_v55  ;;  %5580 = vmatprep.subr.mxu1 %v9364_v0 }
 0x824   :  { %3061 = vmatprep.subr.mxu0 %v8182_v49  ;;  %5581 = vmatpush3.msra.mxu1 %v8185_v32 }
 0x825   :  { %3062 = vmatpush1.msra.mxu0 %v8188_v11  ;;  %5582 = vmatprep.subr.mxu1 %v9364_v0 }
 0x826   :  { %3063 = vmatprep.subr.mxu0 %v8192_v25  ;;  %5583 = vmatpush3.msra.mxu1 %v8195_v1 }
 0x827   :  { %3064 = vmatpush1.msra.mxu0 %v8198_v38  ;;  %5584 = vmatprep.subr.mxu1 %v9364_v0 }
 0x828   :  { %3065 = vmatprep.subr.mxu0 %v8202_v9  ;;  %5585 = vmatpush3.msra.mxu1 %v8205_v21 }
 0x829   :  { %3066 = vmatpush1.msra.mxu0 %v8208_v6  ;;  %5586 = vmatprep.subr.mxu1 %v9364_v0 }
 0x82a   :  { %3067 = vmatprep.subr.mxu0 %v8212_v42  ;;  %5587 = vmatpush3.msra.mxu1 %v8215_v41 }
 0x82b   :  { %3068 = vmatpush1.msra.mxu0 %v8218_v34  ;;  %5588 = vmatprep.subr.mxu1 %v9364_v0 }
 0x82c   :  { %3069 = vmatprep.subr.mxu0 %v8222_v44  ;;  %5589 = vmatpush3.msra.mxu1 %v8225_v2 }
 0x82d   :  { %3070 = vmatpush1.msra.mxu0 %v8228_v18  ;;  %5590 = vmatprep.subr.mxu1 %v9364_v0 }
 0x82e   :  { %3071 = vmatprep.subr.mxu0 %v8232_v26  ;;  %5591 = vmatpush3.msra.mxu1 %v8235_v31 }
 0x82f   :  { %3072 = vmatpush1.msra.mxu0 %v8238_v62  ;;  %5592 = vmatprep.subr.mxu1 %v9364_v0 }
 0x830   :  { %3073 = vmatprep.subr.mxu0 %v8242_v4  ;;  %5593 = vmatpush3.msra.mxu1 %v8245_v28 }
 0x831   :  { %3074 = vmatpush1.msra.mxu0 %v8248_v30  ;;  %5594 = vmatprep.subr.mxu1 %v9364_v0 }
 0x832   :  { %3075 = vmatprep.subr.mxu0 %v8252_v50  ;;  %5595 = vmatpush3.msra.mxu1 %v8255_v3 }
 0x833   :  { %3076 = vmatpush1.msra.mxu0 %v8258_v10  ;;  %5596 = vmatprep.subr.mxu1 %v9364_v0 }
 0x834   :  { %3077 = vmatprep.subr.mxu0 %v8262_v24  ;;  %5597 = vmatpush3.msra.mxu1 %v8265_v22 }
 0x835   :  { %3078 = vmatpush1.msra.mxu0 %v8268_v27  ;;  %5598 = vmatprep.subr.mxu1 %v9364_v0 }
 0x836   :  { %3079 = vmatprep.subr.mxu0 %v8272_v14  ;;  %5599 = vmatpush3.msra.mxu1 %v8275_v5 }
 0x837   :  { %3080 = vmatpush1.msra.mxu0 %v8278_v7  ;;  %5600 = vmatprep.subr.mxu1 %v9364_v0 }
 0x838   :  { %3081 = vmatprep.subr.mxu0 %v8282_v16  ;;  %5601 = vmatpush3.msra.mxu1 %v8285_v23 }
 0x839   :  { %3082 = vmatpush1.msra.mxu0 %v8288_v20  ;;  %5602 = vmatprep.subr.mxu1 %v9364_v0 }
 0x83a   :  { %3083 = vmatprep.subr.mxu0 %v8292_v29  ;;  %5603 = vmatpush3.msra.mxu1 %v8295_v33 }
 0x83b   :  { %3084 = vmatpush1.msra.mxu0 %v8298_v56  ;;  %5604 = vmatprep.subr.mxu1 %v9364_v0 }
 0x83c   :  { %3085 = vmatprep.subr.mxu0 %v8302_v47  ;;  %5605 = vmatpush3.msra.mxu1 %v8305_v57 }
 0x83d   :  { %3086 = vmatpush1.msra.mxu0 %v8308_v63  ;;  %5606 = vmatprep.subr.mxu1 %v9364_v0 }
 0x83e   :  { %3087 = vmatprep.subr.mxu0 %v8312_v46  ;;  %5607 = vmatpush3.msra.mxu1 %v8315_v51 }
 0x83f   :  { %3088 = vmatpush1.msra.mxu0 %v8318_v54  ;;  %5608 = vmatprep.subr.mxu1 %v9364_v0 }
 0x840   :  { %3122 = vmatmul.mubr.f32.vlgmr.msra.gmra.mxu0 %v8325_v15  ;;  %5609 = vmatpush3.msra.mxu1 %v8328_v8 }
 0x841   :  { %5610 = vmatprep.mubr.msk.f32.mxu1 %vm6425_vm1, %v9364_v0  ;;  %3223 = vmatprep.subr.mxu0 %v8157_v43 }
 0x842   :  { %5611 = vmatmul.mubr.f32.vlgmr.msra.gmra.mxu1 %v8325_v15  ;;  %5613 = vmatprep.subr.mxu1 %v9364_v0 }
 0x843   :  { %3224 = vmatpush1.msra.mxu0 %v8173_v37  ;;  %5614 = vmatpush3.msra.mxu1 %v8177_v40 }
 0x844   :  { %3225 = vmatprep.subr.mxu0 %v8175_v39  ;;  %5615 = vmatprep.subr.mxu1 %v9364_v0 }
 0x845   :  { %3226 = vmatpush1.msra.mxu0 %v8179_v55  ;;  %5616 = vmatpush3.msra.mxu1 %v8185_v32 }
 0x846   :  { %3227 = vmatprep.subr.mxu0 %v8182_v49  ;;  %5617 = vmatprep.subr.mxu1 %v9364_v0 }
 0x847   :  { %3228 = vmatpush1.msra.mxu0 %v8188_v11  ;;  %5618 = vmatpush3.msra.mxu1 %v8195_v1 }
 0x848   :  { %3229 = vmatprep.subr.mxu0 %v8192_v25  ;;  %5619 = vmatprep.subr.mxu1 %v9364_v0 }
 0x849   :  { %3230 = vmatpush1.msra.mxu0 %v8198_v38  ;;  %5620 = vmatpush3.msra.mxu1 %v8205_v21 }
 0x84a   :  { %3231 = vmatprep.subr.mxu0 %v8202_v9  ;;  %5621 = vmatprep.subr.mxu1 %v9364_v0 }
 0x84b   :  { %3232 = vmatpush1.msra.mxu0 %v8208_v6  ;;  %5622 = vmatpush3.msra.mxu1 %v8215_v41 }
 0x84c   :  { %3233 = vmatprep.subr.mxu0 %v8212_v42  ;;  %5623 = vmatprep.subr.mxu1 %v9364_v0 }
 0x84d   :  { %3234 = vmatpush1.msra.mxu0 %v8218_v34  ;;  %5624 = vmatpush3.msra.mxu1 %v8225_v2 }
 0x84e   :  { %3235 = vmatprep.subr.mxu0 %v8222_v44  ;;  %5625 = vmatprep.subr.mxu1 %v9364_v0 }
 0x84f   :  { %3236 = vmatpush1.msra.mxu0 %v8228_v18  ;;  %5626 = vmatpush3.msra.mxu1 %v8235_v31 }
 0x850   :  { %3237 = vmatprep.subr.mxu0 %v8232_v26  ;;  %5627 = vmatprep.subr.mxu1 %v9364_v0 }
 0x851   :  { %3238 = vmatpush1.msra.mxu0 %v8238_v62  ;;  %5628 = vmatpush3.msra.mxu1 %v8245_v28 }
 0x852   :  { %3239 = vmatprep.subr.mxu0 %v8242_v4  ;;  %5629 = vmatprep.subr.mxu1 %v9364_v0 }
 0x853   :  { %3240 = vmatpush1.msra.mxu0 %v8248_v30  ;;  %5630 = vmatpush3.msra.mxu1 %v8255_v3 }
 0x854   :  { %3241 = vmatprep.subr.mxu0 %v8252_v50  ;;  %5631 = vmatprep.subr.mxu1 %v9364_v0 }
 0x855   :  { %3242 = vmatpush1.msra.mxu0 %v8258_v10  ;;  %5632 = vmatpush3.msra.mxu1 %v8265_v22 }
 0x856   :  { %3243 = vmatprep.subr.mxu0 %v8262_v24  ;;  %5633 = vmatprep.subr.mxu1 %v9364_v0 }
 0x857   :  { %3244 = vmatpush1.msra.mxu0 %v8268_v27  ;;  %5634 = vmatpush3.msra.mxu1 %v8275_v5 }
 0x858   :  { %3245 = vmatprep.subr.mxu0 %v8272_v14  ;;  %5635 = vmatprep.subr.mxu1 %v9364_v0 }
 0x859   :  { %3246 = vmatpush1.msra.mxu0 %v8278_v7  ;;  %5636 = vmatpush3.msra.mxu1 %v8285_v23 }
 0x85a   :  { %3247 = vmatprep.subr.mxu0 %v8282_v16  ;;  %5637 = vmatprep.subr.mxu1 %v9364_v0 }
 0x85b   :  { %3248 = vmatpush1.msra.mxu0 %v8288_v20  ;;  %5638 = vmatpush3.msra.mxu1 %v8295_v33 }
 0x85c   :  { %3249 = vmatprep.subr.mxu0 %v8292_v29  ;;  %5639 = vmatprep.subr.mxu1 %v9364_v0 }
 0x85d   :  { %3250 = vmatpush1.msra.mxu0 %v8298_v56  ;;  %5640 = vmatpush3.msra.mxu1 %v8305_v57 }
 0x85e   :  { %3251 = vmatprep.subr.mxu0 %v8302_v47  ;;  %5641 = vmatprep.subr.mxu1 %v9364_v0 }
 0x85f   :  { %3252 = vmatpush1.msra.mxu0 %v8308_v63  ;;  %5642 = vmatpush3.msra.mxu1 %v8315_v51 }
 0x860   :  { %3253 = vmatprep.subr.mxu0 %v8312_v46  ;;  %5643 = vmatprep.subr.mxu1 %v9364_v0 }
 0x861   :  { %3254 = vmatpush1.msra.mxu0 %v8318_v54  ;;  %3287 = vmatprep.mubr.f32.mxu0 %v9364_v0 }
 0x862   :  { %5644 = vmatpush3.msra.mxu1 %v8328_v8  ;;  %5645 = vmatprep.mubr.msk.f32.mxu1 %vm6425_vm1, %v9364_v0 }
 0x863   :  { %3389 = vmatprep.subr.mxu0 %v8157_v43  ;;  %5648 = vmatprep.subr.mxu1 %v9364_v0 }
 0x8e0   :  { %v8408_v60 = vpop.f32.mrf.mxu1  ;;  %v8417_v61 = vpop.f32.mrf.mxu0 }
 0x8e1   :  { %9670 = vst [vmem:[#allocation60_spill] sm:$0xff] %v8408_v60  ;;  %9673 = vst [vmem:[#allocation62_spill] sm:$0xff] %v8417_v61  ;;  %v893_v60 = vadd.f32 %v9678_v48, %v8421_v45  ;;  %v9681_v61 = vld [vmem:[#allocation73_spill] sm:$0xff] }
 0x8e2   :  { %v5577_v59 = vpop.f32.mrf.mxu1  ;;  %v8423_v36 = vpop.f32.mrf.mxu0  ;;  %v895_v54 = vadd.f32 %v9681_v61, %v8429_v17 }
 0x8e3   :  { %9677 = vst [vmem:[#allocation63_spill] sm:$0xff] %v8423_v36 }
 0x900   :  { %v3123_v59 = vpop.f32.mrf.mxu0 }
 0x901   :  { %v3201_v35 = vadd.f32 %v3123_v59, %v893_v60 }
 0x902   :  { %v3194_v53 = vpop.f32.mrf.mxu1  ;;  %v3125_v12 = vpop.f32.mrf.mxu0 }
 0x903   :  { %v4550_v43 = vmul.f32 -1.442695, %v3201_v35  ;;  %v3208_v19 = vadd.f32 %v3125_v12, %v895_v54  ;;  %v9682_v35 = vsub.s32 2, %v9674_v52  ;;  %v3215_v61 = vadd.f32 %v8436_v58, %v3194_v53  ;;  %v9683_v54 = vld [vmem:[#allocation20_spill] sm:$0xff]  ;;  %v9685_v53 = vld [vmem:[#allocation43_spill] sm:$0xff] }
 0x904   :  { %v5612_v8 = vpop.f32.mrf.mxu1 }
 0x905   :  { %5985 = vpow2.f32 %v4550_v43  ;;  %v4551_v46 = vmul.f32 -1.442695, %v3208_v19  ;;  %v8440_v60 = vrot.slane %v643_v13, %v9682_v35  ;;  %v9687_v13 = vld [vmem:[#allocation59_spill] sm:$0xff] }
 0x906   :  { %v9690_v35 = vld [vmem:[#allocation79_spill] sm:$0xff] }
 0x907   :  { %5987 = vpow2.f32 %v4551_v46  ;;  %v964_v46 = vadd.f32 %v9683_v54, %v8440_v60 }
 0x912   :  { %v5986_v36 = vpop.eup %5985 }
 0x913   :  { %v3205_v51 = vadd.f32 1.0, %v5986_v36 }
 0x914   :  { %v5988_v48 = vpop.eup %5987 }
 0x915   :  { %5989 = vrcp.f32 %v3205_v51  ;;  %v3212_v8 = vadd.f32 1.0, %v5988_v48  ;;  %v9689_v48 = vld [vmem:[#allocation30_spill] sm:$0xff] }
 0x917   :  { %5991 = vrcp.f32 %v3212_v8  ;;  %v1203_v8 = vadd.f32 %v9690_v35, %v9689_v48 }
 0x922   :  { %v5990_v43 = vpop.eup %5989 }
 0x923   :  { %v3216_v12 = vmul.f32 %v5990_v43, %v3215_v61 }
 0x924   :  { %v5992_v36 = vpop.eup %5991 }
 0x925   :  { %v3217_v51 = vadd.f32 %v3216_v12, %v964_v46  ;;  %v3219_v59 = vsub.f32 1.0, %v5992_v36  ;;  %v3221_v45 = vmul.f32 %v5992_v36, %v8325_v15  ;;  %v9686_v15 = vld [vmem:[#allocation75_spill] sm:$0xff]  ;;  %v9691_v36 = vld [vmem:[#allocation64_spill] sm:$0xff] }
 0x927   :  { %5993 = vtanh.f32 %v3217_v51 }
 0x934   :  { %v5994_v19 = vpop.eup %5993 }
 0x935   :  { %v3220_v17 = vmul.f32 %v5994_v19, %v3219_v59  ;;  %v9692_v59 = vld [vmem:[#allocation80_spill] sm:$0xff] }
 0x936   :  { %v1205_v19 = vadd.f32 %v9692_v59, %v9691_v36 }
 0x937   :  { %v8446_v52 = vadd.f32 %v3221_v45, %v3220_v17  ;;  %v9684_v17 = vld [vmem:[#allocation58_spill] sm:$0xff]  ;;  %v9688_v45 = vld [vmem:[#allocation55_spill] sm:$0xff] }
 0x939   :  { %3288 = vmatmul.mubr.f32.vlgmr.msra.gmra.mxu0 %v8446_v52  ;;  %5646 = vmatmul.mubr.f32.vlgmr.msra.gmra.mxu1 %v8446_v52 }
 0x93a   :  { %3390 = vmatpush1.msra.mxu0 %v8173_v37  ;;  %5649 = vmatpush3.msra.mxu1 %v8177_v40 }
 0x93b   :  { %3391 = vmatprep.subr.mxu0 %v8175_v39  ;;  %5650 = vmatprep.subr.mxu1 %v9364_v0 }
 0x93c   :  { %3392 = vmatpush1.msra.mxu0 %v8179_v55  ;;  %5651 = vmatpush3.msra.mxu1 %v8185_v32 }
 0x93d   :  { %3393 = vmatprep.subr.mxu0 %v8182_v49  ;;  %5652 = vmatprep.subr.mxu1 %v9364_v0 }
 0x93e   :  { %3394 = vmatpush1.msra.mxu0 %v8188_v11  ;;  %5653 = vmatpush3.msra.mxu1 %v8195_v1 }
 0x93f   :  { %3395 = vmatprep.subr.mxu0 %v8192_v25  ;;  %5654 = vmatprep.subr.mxu1 %v9364_v0 }
 0x940   :  { %3396 = vmatpush1.msra.mxu0 %v8198_v38  ;;  %5655 = vmatpush3.msra.mxu1 %v8205_v21 }
 0x941   :  { %3397 = vmatprep.subr.mxu0 %v8202_v9  ;;  %5656 = vmatprep.subr.mxu1 %v9364_v0 }
 0x942   :  { %3398 = vmatpush1.msra.mxu0 %v8208_v6  ;;  %5657 = vmatpush3.msra.mxu1 %v8215_v41 }
 0x943   :  { %3399 = vmatprep.subr.mxu0 %v8212_v42  ;;  %5658 = vmatprep.subr.mxu1 %v9364_v0 }
 0x944   :  { %3400 = vmatpush1.msra.mxu0 %v8218_v34  ;;  %5659 = vmatpush3.msra.mxu1 %v8225_v2 }
 0x945   :  { %3401 = vmatprep.subr.mxu0 %v8222_v44  ;;  %5660 = vmatprep.subr.mxu1 %v9364_v0 }
 0x946   :  { %3402 = vmatpush1.msra.mxu0 %v8228_v18  ;;  %5661 = vmatpush3.msra.mxu1 %v8235_v31 }
 0x947   :  { %3403 = vmatprep.subr.mxu0 %v8232_v26  ;;  %5662 = vmatprep.subr.mxu1 %v9364_v0 }
 0x948   :  { %3404 = vmatpush1.msra.mxu0 %v8238_v62  ;;  %5663 = vmatpush3.msra.mxu1 %v8245_v28 }
 0x949   :  { %3405 = vmatprep.subr.mxu0 %v8242_v4  ;;  %5664 = vmatprep.subr.mxu1 %v9364_v0 }
 0x94a   :  { %3406 = vmatpush1.msra.mxu0 %v8248_v30  ;;  %5665 = vmatpush3.msra.mxu1 %v8255_v3 }
 0x94b   :  { %3407 = vmatprep.subr.mxu0 %v8252_v50  ;;  %5666 = vmatprep.subr.mxu1 %v9364_v0 }
 0x94c   :  { %3408 = vmatpush1.msra.mxu0 %v8258_v10  ;;  %5667 = vmatpush3.msra.mxu1 %v8265_v22 }
 0x94d   :  { %3409 = vmatprep.subr.mxu0 %v8262_v24  ;;  %5668 = vmatprep.subr.mxu1 %v9364_v0 }
 0x94e   :  { %3410 = vmatpush1.msra.mxu0 %v8268_v27  ;;  %5669 = vmatpush3.msra.mxu1 %v8275_v5 }
 0x94f   :  { %3411 = vmatprep.subr.mxu0 %v8272_v14  ;;  %5670 = vmatprep.subr.mxu1 %v9364_v0 }
 0x950   :  { %3412 = vmatpush1.msra.mxu0 %v8278_v7  ;;  %5671 = vmatpush3.msra.mxu1 %v8285_v23 }
 0x951   :  { %3413 = vmatprep.subr.mxu0 %v8282_v16  ;;  %5672 = vmatprep.subr.mxu1 %v9364_v0 }
 0x952   :  { %3414 = vmatpush1.msra.mxu0 %v8288_v20  ;;  %5673 = vmatpush3.msra.mxu1 %v8295_v33 }
 0x953   :  { %3415 = vmatprep.subr.mxu0 %v8292_v29  ;;  %5674 = vmatprep.subr.mxu1 %v9364_v0 }
 0x954   :  { %3416 = vmatpush1.msra.mxu0 %v8298_v56  ;;  %5675 = vmatpush3.msra.mxu1 %v8305_v57 }
 0x955   :  { %3417 = vmatprep.subr.mxu0 %v8302_v47  ;;  %5676 = vmatprep.subr.mxu1 %v9364_v0 }
 0x956   :  { %3418 = vmatpush1.msra.mxu0 %v8308_v63  ;;  %5677 = vmatpush3.msra.mxu1 %v9684_v17 }
 0x957   :  { %3419 = vmatprep.subr.mxu0 %v9685_v53  ;;  %5678 = vmatprep.subr.mxu1 %v9364_v0 }
 0x958   :  { %3420 = vmatpush1.msra.mxu0 %v9686_v15  ;;  %3453 = vmatprep.mubr.f32.mxu0 %v9364_v0 }
 0x959   :  { %5679 = vmatpush3.msra.mxu1 %v9687_v13  ;;  %5680 = vmatprep.mubr.msk.f32.mxu1 %vm6425_vm1, %v9364_v0 }
 0x95a   :  { %3555 = vmatprep.subr.mxu0 %v9688_v45  ;;  %5683 = vmatprep.subr.mxu1 %v9364_v0 }
 0x9f9   :  { %v3289_v61 = vpop.f32.mrf.mxu0  ;;  %v3360_v43 = vpop.f32.mrf.mxu1 }
 0x9fa   :  { %v3367_v54 = vadd.f32 %v3289_v61, %v1203_v8  ;;  %v3381_v35 = vadd.f32 %v8436_v58, %v3360_v43  ;;  %v9693_v8 = vld [vmem:[#allocation74_spill] sm:$0xff]  ;;  %v9699_v43 = vld [vmem:[#allocation55_spill] sm:$0xff] }
 0x9fb   :  { %v5647_v46 = vpop.f32.mrf.mxu1  ;;  %v3291_v51 = vpop.f32.mrf.mxu0  ;;  %v1274_v61 = vadd.f32 %v9693_v8, %v8440_v60 }
 0x9fc   :  { %v4552_v12 = vmul.f32 -1.442695, %v3367_v54  ;;  %v3374_v13 = vadd.f32 %v3291_v51, %v1205_v19  ;;  %v9700_v19 = vld [vmem:[#allocation30_spill] sm:$0xff] }
 0x9fe   :  { %5995 = vpow2.f32 %v4552_v12  ;;  %v4553_v15 = vmul.f32 -1.442695, %v3374_v13 }
 0xa00   :  { %5997 = vpow2.f32 %v4553_v15 }
 0xa0b   :  { %v5996_v53 = vpop.eup %5995 }
 0xa0c   :  { %v3371_v45 = vadd.f32 1.0, %v5996_v53 }
 0xa0d   :  { %v5998_v17 = vpop.eup %5997 }
 0xa0e   :  { %5999 = vrcp.f32 %v3371_v45  ;;  %v3378_v63 = vadd.f32 1.0, %v5998_v17  ;;  %v9696_v17 = vld [vmem:[#allocation43_spill] sm:$0xff] }
 0xa0f   :  { %v9697_v45 = vld [vmem:[#allocation75_spill] sm:$0xff] }
 0xa10   :  { %6001 = vrcp.f32 %v3378_v63  ;;  %v9694_v63 = vld [vmem:[#allocation33_spill] sm:$0xff] }
 0xa1b   :  { %v6000_v48 = vpop.eup %5999 }
 0xa1c   :  { %v3382_v54 = vmul.f32 %v6000_v48, %v3381_v35  ;;  %v9698_v48 = vld [vmem:[#allocation59_spill] sm:$0xff]  ;;  %v9701_v35 = vld [vmem:[#allocation89_spill] sm:$0xff] }
 0xa1d   :  { %v6002_v59 = vpop.eup %6001  ;;  %v1513_v8 = vadd.f32 %v9701_v35, %v9700_v19 }
 0xa1e   :  { %v3383_v46 = vadd.f32 %v3382_v54, %v1274_v61  ;;  %v3385_v12 = vsub.f32 1.0, %v6002_v59  ;;  %v3387_v15 = vmul.f32 %v6002_v59, %v8446_v52  ;;  %v9695_v52 = vld [vmem:[#allocation58_spill] sm:$0xff] }
 0xa20   :  { %6003 = vtanh.f32 %v3383_v46 }
 0xa2d   :  { %v6004_v51 = vpop.eup %6003 }
 0xa2e   :  { %v3386_v13 = vmul.f32 %v6004_v51, %v3385_v12 }
 0xa30   :  { %v8525_v53 = vadd.f32 %v3387_v15, %v3386_v13  ;;  %v9702_v13 = vld [vmem:[#allocation90_spill] sm:$0xff] }
 0xa31   :  { %v1515_v15 = vadd.f32 %v9702_v13, %v9691_v36 }
 0xa32   :  { %3454 = vmatmul.mubr.f32.vlgmr.msra.gmra.mxu0 %v8525_v53  ;;  %5681 = vmatmul.mubr.f32.vlgmr.msra.gmra.mxu1 %v8525_v53 }
 0xa33   :  { %3556 = vmatpush1.msra.mxu0 %v8173_v37  ;;  %5684 = vmatpush3.msra.mxu1 %v8177_v40 }
 0xa34   :  { %3557 = vmatprep.subr.mxu0 %v8175_v39  ;;  %5685 = vmatprep.subr.mxu1 %v9364_v0 }
 0xa35   :  { %3558 = vmatpush1.msra.mxu0 %v8179_v55  ;;  %5686 = vmatpush3.msra.mxu1 %v8185_v32 }
 0xa36   :  { %3559 = vmatprep.subr.mxu0 %v8182_v49  ;;  %5687 = vmatprep.subr.mxu1 %v9364_v0 }
 0xa37   :  { %3560 = vmatpush1.msra.mxu0 %v8188_v11  ;;  %5688 = vmatpush3.msra.mxu1 %v8195_v1 }
 0xa38   :  { %3561 = vmatprep.subr.mxu0 %v8192_v25  ;;  %5689 = vmatprep.subr.mxu1 %v9364_v0 }
 0xa39   :  { %3562 = vmatpush1.msra.mxu0 %v8198_v38  ;;  %5690 = vmatpush3.msra.mxu1 %v8205_v21 }
 0xa3a   :  { %3563 = vmatprep.subr.mxu0 %v8202_v9  ;;  %5691 = vmatprep.subr.mxu1 %v9364_v0 }
 0xa3b   :  { %3564 = vmatpush1.msra.mxu0 %v8208_v6  ;;  %5692 = vmatpush3.msra.mxu1 %v8215_v41 }
 0xa3c   :  { %3565 = vmatprep.subr.mxu0 %v8212_v42  ;;  %5693 = vmatprep.subr.mxu1 %v9364_v0 }
 0xa3d   :  { %3566 = vmatpush1.msra.mxu0 %v8218_v34  ;;  %5694 = vmatpush3.msra.mxu1 %v8225_v2 }
 0xa3e   :  { %3567 = vmatprep.subr.mxu0 %v8222_v44  ;;  %5695 = vmatprep.subr.mxu1 %v9364_v0 }
 0xa3f   :  { %3568 = vmatpush1.msra.mxu0 %v8228_v18  ;;  %5696 = vmatpush3.msra.mxu1 %v8235_v31 }
 0xa40   :  { %3569 = vmatprep.subr.mxu0 %v8232_v26  ;;  %5697 = vmatprep.subr.mxu1 %v9364_v0 }
 0xa41   :  { %3570 = vmatpush1.msra.mxu0 %v8238_v62  ;;  %5698 = vmatpush3.msra.mxu1 %v8245_v28 }
 0xa42   :  { %3571 = vmatprep.subr.mxu0 %v8242_v4  ;;  %5699 = vmatprep.subr.mxu1 %v9364_v0 }
 0xa43   :  { %3572 = vmatpush1.msra.mxu0 %v8248_v30  ;;  %5700 = vmatpush3.msra.mxu1 %v8255_v3 }
 0xa44   :  { %3573 = vmatprep.subr.mxu0 %v8252_v50  ;;  %5701 = vmatprep.subr.mxu1 %v9364_v0 }
 0xa45   :  { %3574 = vmatpush1.msra.mxu0 %v8258_v10  ;;  %5702 = vmatpush3.msra.mxu1 %v8265_v22 }
 0xa46   :  { %3575 = vmatprep.subr.mxu0 %v8262_v24  ;;  %5703 = vmatprep.subr.mxu1 %v9364_v0 }
 0xa47   :  { %3576 = vmatpush1.msra.mxu0 %v8268_v27  ;;  %5704 = vmatpush3.msra.mxu1 %v8275_v5 }
 0xa48   :  { %3577 = vmatprep.subr.mxu0 %v8272_v14  ;;  %5705 = vmatprep.subr.mxu1 %v9364_v0 }
 0xa49   :  { %3578 = vmatpush1.msra.mxu0 %v8278_v7  ;;  %5706 = vmatpush3.msra.mxu1 %v8285_v23 }
 0xa4a   :  { %3579 = vmatprep.subr.mxu0 %v8282_v16  ;;  %5707 = vmatprep.subr.mxu1 %v9364_v0 }
 0xa4b   :  { %3580 = vmatpush1.msra.mxu0 %v8288_v20  ;;  %5708 = vmatpush3.msra.mxu1 %v8295_v33 }
 0xa4c   :  { %3581 = vmatprep.subr.mxu0 %v8292_v29  ;;  %5709 = vmatprep.subr.mxu1 %v9364_v0 }
 0xa4d   :  { %3582 = vmatpush1.msra.mxu0 %v8298_v56  ;;  %5710 = vmatpush3.msra.mxu1 %v8305_v57 }
 0xa4e   :  { %3583 = vmatprep.subr.mxu0 %v8302_v47  ;;  %5711 = vmatprep.subr.mxu1 %v9364_v0 }
 0xa4f   :  { %3584 = vmatpush1.msra.mxu0 %v9694_v63  ;;  %5712 = vmatpush3.msra.mxu1 %v9695_v52 }
 0xa50   :  { %3585 = vmatprep.subr.mxu0 %v9696_v17  ;;  %5713 = vmatprep.subr.mxu1 %v9364_v0 }
 0xa51   :  { %3586 = vmatpush1.msra.mxu0 %v9697_v45  ;;  %3619 = vmatprep.mubr.f32.mxu0 %v9364_v0 }
 0xa52   :  { %5714 = vmatpush3.msra.mxu1 %v9698_v48  ;;  %5715 = vmatprep.mubr.msk.f32.mxu1 %vm6425_vm1, %v9364_v0 }
 0xa53   :  { %3721 = vmatprep.subr.mxu0 %v9699_v43  ;;  %5718 = vmatprep.subr.mxu1 %v9364_v0 }
 0xaf2   :  { %v3455_v61 = vpop.f32.mrf.mxu0  ;;  %v3526_v54 = vpop.f32.mrf.mxu1 }
 0xaf3   :  { %v3533_v46 = vadd.f32 %v3455_v61, %v1513_v8  ;;  %v3547_v35 = vadd.f32 %v8436_v58, %v3526_v54  ;;  %v9703_v8 = vld [vmem:[#allocation81_spill] sm:$0xff] }
 0xaf4   :  { %v5682_v59 = vpop.f32.mrf.mxu1  ;;  %v3457_v51 = vpop.f32.mrf.mxu0  ;;  %v1584_v61 = vadd.f32 %v9703_v8, %v8440_v60 }
 0xaf5   :  { %v4554_v12 = vmul.f32 -1.442695, %v3533_v46  ;;  %v3540_v48 = vadd.f32 %v3457_v51, %v1515_v15 }
 0xaf7   :  { %6005 = vpow2.f32 %v4554_v12  ;;  %v4555_v45 = vmul.f32 -1.442695, %v3540_v48 }
 0xaf9   :  { %6007 = vpow2.f32 %v4555_v45 }
 0xb04   :  { %v6006_v17 = vpop.eup %6005 }
 0xb05   :  { %v3537_v43 = vadd.f32 1.0, %v6006_v17 }
 0xb06   :  { %v6008_v52 = vpop.eup %6007 }
 0xb07   :  { %6009 = vrcp.f32 %v3537_v43  ;;  %v3544_v63 = vadd.f32 1.0, %v6008_v52 }
 0xb09   :  { %6011 = vrcp.f32 %v3544_v63 }
 0xb14   :  { %v6010_v19 = vpop.eup %6009 }
 0xb15   :  { %v3548_v46 = vmul.f32 %v6010_v19, %v3547_v35  ;;  %v9711_v19 = vld [vmem:[#allocation25_spill] sm:$0xff] }
 0xb16   :  { %v6012_v13 = vpop.eup %6011  ;;  %v1825_v54 = vadd.f32 %v9711_v19, %v9691_v36  ;;  %v8695_v19 = vld [vmem:[#allocation9 + $0x158] sm:$0xff] }
 0xb17   :  { %v3549_v59 = vadd.f32 %v3548_v46, %v1584_v61  ;;  %v3551_v12 = vsub.f32 1.0, %v6012_v13  ;;  %v3553_v45 = vmul.f32 %v6012_v13, %v8525_v53 }
 0xb19   :  { %6013 = vtanh.f32 %v3549_v59 }
 0xb26   :  { %v6014_v51 = vpop.eup %6013 }
 0xb27   :  { %v3552_v48 = vmul.f32 %v6014_v51, %v3551_v12  ;;  %v9712_v12 = vld [vmem:[#allocation34_spill] sm:$0xff] }
 0xb28   :  { %v1894_v51 = vadd.f32 %v9712_v12, %v8440_v60  ;;  %v8834_v12 = vld [vmem:[#allocation9 + $0xc8] sm:$0xff] }
 0xb29   :  { %v8604_v17 = vadd.f32 %v3553_v45, %v3552_v48 }
 0xb2b   :  { %3620 = vmatmul.mubr.f32.vlgmr.msra.gmra.mxu0 %v8604_v17  ;;  %5716 = vmatmul.mubr.f32.vlgmr.msra.gmra.mxu1 %v8604_v17 }
 0xb2c   :  { %3722 = vmatpush1.msra.mxu0 %v8173_v37  ;;  %5719 = vmatpush3.msra.mxu1 %v8177_v40  ;;  %v9704_v37 = vld [vmem:[#allocation33_spill] sm:$0xff]  ;;  %v9706_v40 = vld [vmem:[#allocation43_spill] sm:$0xff] }
 0xb2d   :  { %3723 = vmatprep.subr.mxu0 %v8175_v39  ;;  %5720 = vmatprep.subr.mxu1 %v9364_v0  ;;  %v9705_v39 = vld [vmem:[#allocation58_spill] sm:$0xff] }
 0xb2e   :  { %3724 = vmatpush1.msra.mxu0 %v8179_v55  ;;  %5721 = vmatpush3.msra.mxu1 %v8185_v32  ;;  %v9707_v55 = vld [vmem:[#allocation75_spill] sm:$0xff] }
 0xb2f   :  { %3725 = vmatprep.subr.mxu0 %v8182_v49  ;;  %5722 = vmatprep.subr.mxu1 %v9364_v0  ;;  %v9708_v49 = vld [vmem:[#allocation59_spill] sm:$0xff] }
 0xb30   :  { %3726 = vmatpush1.msra.mxu0 %v8188_v11  ;;  %5723 = vmatpush3.msra.mxu1 %v8195_v1  ;;  %v8673_v32 = vld [vmem:[#allocation9 + $0x170] sm:$0xff]  ;;  %v9709_v11 = vld [vmem:[#allocation30_spill] sm:$0xff] }
 0xb31   :  { %3727 = vmatprep.subr.mxu0 %v8192_v25  ;;  %5724 = vmatprep.subr.mxu1 %v9364_v0  ;;  %v9710_v25 = vld [vmem:[#allocation23_spill] sm:$0xff] }
 0xb32   :  { %3728 = vmatpush1.msra.mxu0 %v8198_v38  ;;  %5725 = vmatpush3.msra.mxu1 %v8205_v21  ;;  %v1823_v1 = vadd.f32 %v9710_v25, %v9709_v11 }
 0xb33   :  { %3729 = vmatprep.subr.mxu0 %v8202_v9  ;;  %5726 = vmatprep.subr.mxu1 %v9364_v0 }
 0xb34   :  { %3730 = vmatpush1.msra.mxu0 %v8208_v6  ;;  %5727 = vmatpush3.msra.mxu1 %v8215_v41 }
 0xb35   :  { %3731 = vmatprep.subr.mxu0 %v8212_v42  ;;  %5728 = vmatprep.subr.mxu1 %v9364_v0 }
 0xb36   :  { %3732 = vmatpush1.msra.mxu0 %v8218_v34  ;;  %5729 = vmatpush3.msra.mxu1 %v8225_v2 }
 0xb37   :  { %3733 = vmatprep.subr.mxu0 %v8222_v44  ;;  %5730 = vmatprep.subr.mxu1 %v9364_v0 }
 0xb38   :  { %3734 = vmatpush1.msra.mxu0 %v8228_v18  ;;  %5731 = vmatpush3.msra.mxu1 %v8235_v31 }
 0xb39   :  { %3735 = vmatprep.subr.mxu0 %v8232_v26  ;;  %5732 = vmatprep.subr.mxu1 %v9364_v0 }
 0xb3a   :  { %3736 = vmatpush1.msra.mxu0 %v8238_v62  ;;  %5733 = vmatpush3.msra.mxu1 %v8245_v28 }
 0xb3b   :  { %3737 = vmatprep.subr.mxu0 %v8242_v4  ;;  %5734 = vmatprep.subr.mxu1 %v9364_v0 }
 0xb3c   :  { %3738 = vmatpush1.msra.mxu0 %v8248_v30  ;;  %5735 = vmatpush3.msra.mxu1 %v8255_v3 }
 0xb3d   :  { %3739 = vmatprep.subr.mxu0 %v8252_v50  ;;  %5736 = vmatprep.subr.mxu1 %v9364_v0 }
 0xb3e   :  { %3740 = vmatpush1.msra.mxu0 %v8258_v10  ;;  %5737 = vmatpush3.msra.mxu1 %v8265_v22 }
 0xb3f   :  { %3741 = vmatprep.subr.mxu0 %v8262_v24  ;;  %5738 = vmatprep.subr.mxu1 %v9364_v0 }
 0xb40   :  { %3742 = vmatpush1.msra.mxu0 %v8268_v27  ;;  %5739 = vmatpush3.msra.mxu1 %v8275_v5 }
 0xb41   :  { %3743 = vmatprep.subr.mxu0 %v8272_v14  ;;  %5740 = vmatprep.subr.mxu1 %v9364_v0 }
 0xb42   :  { %3744 = vmatpush1.msra.mxu0 %v8278_v7  ;;  %5741 = vmatpush3.msra.mxu1 %v8285_v23 }
 0xb43   :  { %3745 = vmatprep.subr.mxu0 %v8282_v16  ;;  %5742 = vmatprep.subr.mxu1 %v9364_v0 }
 0xb44   :  { %3746 = vmatpush1.msra.mxu0 %v8288_v20  ;;  %5743 = vmatpush3.msra.mxu1 %v8295_v33 }
 0xb45   :  { %3747 = vmatprep.subr.mxu0 %v8292_v29  ;;  %5744 = vmatprep.subr.mxu1 %v9364_v0 }
 0xb46   :  { %3748 = vmatpush1.msra.mxu0 %v8298_v56  ;;  %5745 = vmatpush3.msra.mxu1 %v8305_v57 }
 0xb47   :  { %3749 = vmatprep.subr.mxu0 %v8302_v47  ;;  %5746 = vmatprep.subr.mxu1 %v9364_v0 }
 0xb48   :  { %3750 = vmatpush1.msra.mxu0 %v9704_v37  ;;  %5747 = vmatpush3.msra.mxu1 %v9705_v39 }
 0xb49   :  { %3751 = vmatprep.subr.mxu0 %v9706_v40  ;;  %5748 = vmatprep.subr.mxu1 %v9364_v0 }
 0xb4a   :  { %3752 = vmatpush1.msra.mxu0 %v9707_v55  ;;  %3785 = vmatprep.mubr.f32.mxu0 %v9364_v0 }
 0xb4b   :  { %5749 = vmatpush3.msra.mxu1 %v9708_v49  ;;  %5750 = vmatprep.mubr.msk.f32.mxu1 %vm6425_vm1, %v9364_v0 }
 0xb4c   :  { %3887 = vmatprep.subr.mxu0 %v8673_v32  ;;  %5753 = vmatprep.subr.mxu1 %v9364_v0 }
 0xbeb   :  { %v3621_v38 = vpop.f32.mrf.mxu0  ;;  %v3692_v9 = vpop.f32.mrf.mxu1 }
 0xbec   :  { %v3699_v6 = vadd.f32 %v3621_v38, %v1823_v1  ;;  %v3713_v59 = vadd.f32 %v8436_v58, %v3692_v9  ;;  %v8689_v9 = vld [vmem:[#allocation9 + $0x168] sm:$0xff] }
 0xbed   :  { %v5717_v53 = vpop.f32.mrf.mxu1  ;;  %v3623_v52 = vpop.f32.mrf.mxu0 }
 0xbee   :  { %v4556_v63 = vmul.f32 -1.442695, %v3699_v6  ;;  %v3706_v15 = vadd.f32 %v3623_v52, %v1825_v54  ;;  %v8692_v52 = vld [vmem:[#allocation9 + $0x178] sm:$0xff]  ;;  %v8702_v54 = vld [vmem:[#allocation9 + $0x160] sm:$0xff] }
 0xbf0   :  { %6015 = vpow2.f32 %v4556_v63  ;;  %v4557_v43 = vmul.f32 -1.442695, %v3706_v15  ;;  %v8705_v15 = vld [vmem:[#allocation9 + $0x140] sm:$0xff] }
 0xbf2   :  { %6017 = vpow2.f32 %v4557_v43  ;;  %v8709_v43 = vld [vmem:[#allocation9 + $0x138] sm:$0xff] }
 0xbfd   :  { %v6016_v35 = vpop.eup %6015 }
 0xbfe   :  { %v3703_v8 = vadd.f32 1.0, %v6016_v35  ;;  %v8712_v35 = vld [vmem:[#allocation9 + $0x148] sm:$0xff] }
 0xbff   :  { %v6018_v61 = vpop.eup %6017 }
 0xc00   :  { %6019 = vrcp.f32 %v3703_v8  ;;  %v3710_v46 = vadd.f32 1.0, %v6018_v61  ;;  %v8715_v8 = vld [vmem:[#allocation9 + $0x128] sm:$0xff]  ;;  %v8719_v61 = vld [vmem:[#allocation9 + $0x120] sm:$0xff] }
 0xc02   :  { %6021 = vrcp.f32 %v3710_v46  ;;  %v8723_v46 = vld [vmem:[#allocation9 + $0x110] sm:$0xff] }
 0xc0d   :  { %v6020_v13 = vpop.eup %6019 }
 0xc0e   :  { %v3714_v48 = vmul.f32 %v6020_v13, %v3713_v59  ;;  %v8727_v59 = vld [vmem:[#allocation9 + $0x108] sm:$0xff] }
 0xc0f   :  { %v6022_v25 = vpop.eup %6021  ;;  %v8831_v13 = vld [vmem:[#allocation9 + $0xe8] sm:$0xff] }
 0xc10   :  { %v3715_v45 = vadd.f32 %v3714_v48, %v1894_v51  ;;  %v3717_v1 = vsub.f32 1.0, %v6022_v25  ;;  %v3719_v53 = vmul.f32 %v6022_v25, %v8604_v17  ;;  %v8699_v17 = vld [vmem:[#allocation9 + $0x150] sm:$0xff]  ;;  %v8838_v51 = vld [vmem:[#allocation9 + $0xc0] sm:$0xff]  ;;  %v8848_v25 = vld [vmem:[#allocation9 + $0xa8] sm:$0xff] }
 0xc11   :  { %v8841_v48 = vld [vmem:[#allocation9 + $0xd0] sm:$0xff] }
 0xc12   :  { %6023 = vtanh.f32 %v3715_v45  ;;  %v8844_v45 = vld [vmem:[#allocation9 + $0xb0] sm:$0xff] }
 0xc1f   :  { %v6024_v38 = vpop.eup %6023 }
 0xc20   :  { %v3718_v6 = vmul.f32 %v6024_v38, %v3717_v1  ;;  %v8851_v1 = vld [vmem:[#allocation9 + $0xb8] sm:$0xff] }
 0xc21   :  { %v8854_v38 = vld [vmem:[#allocation9 + $0x98] sm:$0xff] }
 0xc22   :  { %v8685_v63 = vadd.f32 %v3719_v53, %v3718_v6  ;;  %v8858_v6 = vld [vmem:[#allocation9 + $0x90] sm:$0xff]  ;;  %v8861_v53 = vld [vmem:[#allocation9 + $0xa0] sm:$0xff] }
 0xc24   :  { %3786 = vmatmul.mubr.f32.vlgmr.msra.gmra.mxu0 %v8685_v63  ;;  %5751 = vmatmul.mubr.f32.vlgmr.msra.gmra.mxu1 %v8685_v63 }
 0xc25   :  { %3888 = vmatpush1.msra.mxu0 %v8689_v9  ;;  %5754 = vmatpush3.msra.mxu1 %v8692_v52 }
 0xc26   :  { %3889 = vmatprep.subr.mxu0 %v8695_v19  ;;  %5755 = vmatprep.subr.mxu1 %v9364_v0 }
 0xc27   :  { %3890 = vmatpush1.msra.mxu0 %v8699_v17  ;;  %5756 = vmatpush3.msra.mxu1 %v8702_v54 }
 0xc28   :  { %3891 = vmatprep.subr.mxu0 %v8705_v15  ;;  %5757 = vmatprep.subr.mxu1 %v9364_v0 }
 0xc29   :  { %3892 = vmatpush1.msra.mxu0 %v8709_v43  ;;  %5758 = vmatpush3.msra.mxu1 %v8712_v35 }
 0xc2a   :  { %3893 = vmatprep.subr.mxu0 %v8715_v8  ;;  %5759 = vmatprep.subr.mxu1 %v9364_v0 }
 0xc2b   :  { %3894 = vmatpush1.msra.mxu0 %v8719_v61  ;;  %5760 = vmatpush3.msra.mxu1 %v8205_v21  ;;  %v9713_v21 = vld [vmem:[#allocation28_spill] sm:$0xff] }
 0xc2c   :  { %3895 = vmatprep.subr.mxu0 %v8723_v46  ;;  %5761 = vmatprep.subr.mxu1 %v9364_v0 }
 0xc2d   :  { %3896 = vmatpush1.msra.mxu0 %v8727_v59  ;;  %5762 = vmatpush3.msra.mxu1 %v8215_v41 }
 0xc2e   :  { %3897 = vmatprep.subr.mxu0 %v8212_v42  ;;  %5763 = vmatprep.subr.mxu1 %v9364_v0  ;;  %v2133_v42 = vadd.f32 %v9713_v21, %v9709_v11  ;;  %v8868_v21 = vld [vmem:[#allocation9 + $0x78] sm:$0xff] }
 0xc2f   :  { %3898 = vmatpush1.msra.mxu0 %v8218_v34  ;;  %5764 = vmatpush3.msra.mxu1 %v8225_v2 }
 0xc30   :  { %3899 = vmatprep.subr.mxu0 %v8222_v44  ;;  %5765 = vmatprep.subr.mxu1 %v9364_v0 }
 0xc31   :  { %3900 = vmatpush1.msra.mxu0 %v8228_v18  ;;  %5766 = vmatpush3.msra.mxu1 %v8235_v31  ;;  %v9714_v31 = vld [vmem:[#allocation29_spill] sm:$0xff] }
 0xc32   :  { %3901 = vmatprep.subr.mxu0 %v8232_v26  ;;  %5767 = vmatprep.subr.mxu1 %v9364_v0 }
 0xc33   :  { %3902 = vmatpush1.msra.mxu0 %v8238_v62  ;;  %5768 = vmatpush3.msra.mxu1 %v8245_v28  ;;  %v2135_v62 = vadd.f32 %v9714_v31, %v9691_v36  ;;  %v8894_v31 = vld [vmem:[#allocation9 + $0x38] sm:$0xff] }
 0xc34   :  { %3903 = vmatprep.subr.mxu0 %v8242_v4  ;;  %5769 = vmatprep.subr.mxu1 %v9364_v0 }
 0xc35   :  { %3904 = vmatpush1.msra.mxu0 %v8248_v30  ;;  %5770 = vmatpush3.msra.mxu1 %v8255_v3 }
 0xc36   :  { %3905 = vmatprep.subr.mxu0 %v8252_v50  ;;  %5771 = vmatprep.subr.mxu1 %v9364_v0 }
 0xc37   :  { %3906 = vmatpush1.msra.mxu0 %v8258_v10  ;;  %5772 = vmatpush3.msra.mxu1 %v8265_v22 }
 0xc38   :  { %3907 = vmatprep.subr.mxu0 %v8262_v24  ;;  %5773 = vmatprep.subr.mxu1 %v9364_v0 }
 0xc39   :  { %3908 = vmatpush1.msra.mxu0 %v8268_v27  ;;  %5774 = vmatpush3.msra.mxu1 %v8275_v5  ;;  %v9715_v27 = vld [vmem:[#allocation26_spill] sm:$0xff] }
 0xc3a   :  { %3909 = vmatprep.subr.mxu0 %v8272_v14  ;;  %5775 = vmatprep.subr.mxu1 %v9364_v0  ;;  %v2204_v14 = vadd.f32 %v9715_v27, %v8440_v60 }
 0xc3b   :  { %3910 = vmatpush1.msra.mxu0 %v8278_v7  ;;  %5776 = vmatpush3.msra.mxu1 %v8285_v23 }
 0xc3c   :  { %3911 = vmatprep.subr.mxu0 %v8282_v16  ;;  %5777 = vmatprep.subr.mxu1 %v9364_v0 }
 0xc3d   :  { %3912 = vmatpush1.msra.mxu0 %v8288_v20  ;;  %5778 = vmatpush3.msra.mxu1 %v8295_v33 }
 0xc3e   :  { %3913 = vmatprep.subr.mxu0 %v8292_v29  ;;  %5779 = vmatprep.subr.mxu1 %v9364_v0 }
 0xc3f   :  { %3914 = vmatpush1.msra.mxu0 %v8298_v56  ;;  %5780 = vmatpush3.msra.mxu1 %v8305_v57  ;;  %v8811_v57 = vld [vmem:[#allocation9 + $0x118] sm:$0xff] }
 0xc40   :  { %3915 = vmatprep.subr.mxu0 %v8302_v47  ;;  %5781 = vmatprep.subr.mxu1 %v9364_v0  ;;  %v8805_v47 = vld [vmem:[#allocation9 + $0x130] sm:$0xff] }
 0xc41   :  { %3916 = vmatpush1.msra.mxu0 %v9704_v37  ;;  %5782 = vmatpush3.msra.mxu1 %v9705_v39  ;;  %v8814_v37 = vld [vmem:[#allocation9 + $0xf8] sm:$0xff]  ;;  %v8818_v39 = vld [vmem:[#allocation9 + $0xf0] sm:$0xff] }
 0xc42   :  { %3917 = vmatprep.subr.mxu0 %v9706_v40  ;;  %5783 = vmatprep.subr.mxu1 %v9364_v0  ;;  %v8821_v40 = vld [vmem:[#allocation9 + $0x100] sm:$0xff] }
 0xc43   :  { %3918 = vmatpush1.msra.mxu0 %v9707_v55  ;;  %3951 = vmatprep.mubr.f32.mxu0 %v9364_v0  ;;  %v8824_v55 = vld [vmem:[#allocation9 + $0xe0] sm:$0xff] }
 0xc44   :  { %5784 = vmatpush3.msra.mxu1 %v9708_v49  ;;  %5785 = vmatprep.mubr.msk.f32.mxu1 %vm6425_vm1, %v9364_v0  ;;  %v8828_v49 = vld [vmem:[#allocation9 + $0xd8] sm:$0xff] }
 0xc45   :  { %4053 = vmatprep.subr.mxu0 %v8673_v32  ;;  %5788 = vmatprep.subr.mxu1 %v9364_v0 }
 0xce4   :  { %v3787_v41 = vpop.f32.mrf.mxu0  ;;  %v3858_v34 = vpop.f32.mrf.mxu1 }
 0xce5   :  { %v3865_v44 = vadd.f32 %v3787_v41, %v2133_v42  ;;  %v3879_v24 = vadd.f32 %v8436_v58, %v3858_v34  ;;  %v8871_v42 = vld [vmem:[#allocation9 + $0x88] sm:$0xff]  ;;  %v8878_v34 = vld [vmem:[#allocation9 + $0x60] sm:$0xff] }
 0xce6   :  { %v5752_v2 = vpop.f32.mrf.mxu1  ;;  %v3789_v26 = vpop.f32.mrf.mxu0  ;;  %v8874_v41 = vld [vmem:[#allocation9 + $0x68] sm:$0xff] }
 0xce7   :  { %v4558_v18 = vmul.f32 -1.442695, %v3865_v44  ;;  %v3872_v4 = vadd.f32 %v3789_v26, %v2135_v62  ;;  %v8881_v44 = vld [vmem:[#allocation9 + $0x70] sm:$0xff]  ;;  %v8891_v26 = vld [vmem:[#allocation9 + $0x58] sm:$0xff] }
 0xce8   :  { %v8884_v2 = vld [vmem:[#allocation9 + $0x50] sm:$0xff] }
 0xce9   :  { %6025 = vpow2.f32 %v4558_v18  ;;  %v4559_v28 = vmul.f32 -1.442695, %v3872_v4  ;;  %v8888_v18 = vld [vmem:[#allocation9 + $0x48] sm:$0xff]  ;;  %v8898_v62 = vld [vmem:[#allocation9 + $0x30] sm:$0xff]  ;;  %v8901_v4 = vld [vmem:[#allocation9 + $0x40] sm:$0xff] }
 0xceb   :  { %6027 = vpow2.f32 %v4559_v28  ;;  %v8904_v28 = vld [vmem:[#allocation9 + $0x20] sm:$0xff] }
 0xcf6   :  { %v6026_v30 = vpop.eup %6025 }
 0xcf7   :  { %v3869_v50 = vadd.f32 1.0, %v6026_v30  ;;  %v8908_v30 = vld [vmem:[#allocation9 + $0x18] sm:$0xff] }
 0xcf8   :  { %v6028_v3 = vpop.eup %6027  ;;  %9716 = vst [vmem:[#allocation65_spill] sm:$0xff] %v8908_v30 }
 0xcf9   :  { %6029 = vrcp.f32 %v3869_v50  ;;  %v3876_v10 = vadd.f32 1.0, %v6028_v3  ;;  %v8911_v50 = vld [vmem:[#allocation9 + $0x28] sm:$0xff] }
 0xcfa   :  { %9717 = vst [vmem:[#allocation66_spill] sm:$0xff] %v8911_v50  ;;  %v8914_v3 = vld [vmem:[#allocation9 + $0x8] sm:$0xff] }
 0xcfb   :  { %6031 = vrcp.f32 %v3876_v10  ;;  %9718 = vst [vmem:[#allocation67_spill] sm:$0xff] %v8914_v3  ;;  %v8918_v10 = vld [vmem:[#allocation9] sm:$0xff] }
 0xcfc   :  { %9719 = vst [vmem:[#allocation69_spill] sm:$0xff] %v8918_v10 }
 0xd06   :  { %v6030_v22 = vpop.eup %6029 }
 0xd07   :  { %v3880_v5 = vmul.f32 %v6030_v22, %v3879_v24  ;;  %v8922_v24 = vld [vmem:[#allocation9 + $0x10] sm:$0xff]  ;;  %v9721_v22 = vld [vmem:[#allocation56_spill] sm:$0xff] }
 0xd08   :  { %v6032_v16 = vpop.eup %6031  ;;  %9720 = vst [vmem:[#allocation70_spill] sm:$0xff] %v8922_v24  ;;  %v2443_v27 = vadd.f32 %v9721_v22, %v9709_v11 }
 0xd09   :  { %v3881_v7 = vadd.f32 %v3880_v5, %v2204_v14  ;;  %v3883_v23 = vsub.f32 1.0, %v6032_v16  ;;  %v3885_v33 = vmul.f32 %v6032_v16, %v8685_v63  ;;  %v8864_v63 = vld [vmem:[#allocation9 + $0x80] sm:$0xff] }
 0xd0b   :  { %6033 = vtanh.f32 %v3881_v7 }
 0xd18   :  { %v6034_v20 = vpop.eup %6033 }
 0xd19   :  { %v3884_v29 = vmul.f32 %v6034_v20, %v3883_v23 }
 0xd1b   :  { %v8788_v56 = vadd.f32 %v3885_v33, %v3884_v29  ;;  %v9722_v29 = vld [vmem:[#allocation57_spill] sm:$0xff] }
 0xd1c   :  { %v2445_v33 = vadd.f32 %v9722_v29, %v9691_v36 }
 0xd1d   :  { %3952 = vmatmul.mubr.f32.vlgmr.msra.gmra.mxu0 %v8788_v56  ;;  %5786 = vmatmul.mubr.f32.vlgmr.msra.gmra.mxu1 %v8788_v56 }
 0xd1e   :  { %4054 = vmatpush1.msra.mxu0 %v8689_v9  ;;  %5789 = vmatpush3.msra.mxu1 %v8692_v52 }
 0xd1f   :  { %4055 = vmatprep.subr.mxu0 %v8695_v19  ;;  %5790 = vmatprep.subr.mxu1 %v9364_v0 }
 0xd20   :  { %4056 = vmatpush1.msra.mxu0 %v8699_v17  ;;  %5791 = vmatpush3.msra.mxu1 %v8702_v54 }
 0xd21   :  { %4057 = vmatprep.subr.mxu0 %v8705_v15  ;;  %5792 = vmatprep.subr.mxu1 %v9364_v0 }
 0xd22   :  { %4058 = vmatpush1.msra.mxu0 %v8709_v43  ;;  %5793 = vmatpush3.msra.mxu1 %v8712_v35 }
 0xd23   :  { %4059 = vmatprep.subr.mxu0 %v8715_v8  ;;  %5794 = vmatprep.subr.mxu1 %v9364_v0 }
 0xd24   :  { %4060 = vmatpush1.msra.mxu0 %v8719_v61  ;;  %5795 = vmatpush3.msra.mxu1 %v8805_v47 }
 0xd25   :  { %4061 = vmatprep.subr.mxu0 %v8723_v46  ;;  %5796 = vmatprep.subr.mxu1 %v9364_v0 }
 0xd26   :  { %4062 = vmatpush1.msra.mxu0 %v8727_v59  ;;  %5797 = vmatpush3.msra.mxu1 %v8811_v57 }
 0xd27   :  { %4063 = vmatprep.subr.mxu0 %v8814_v37  ;;  %5798 = vmatprep.subr.mxu1 %v9364_v0 }
 0xd28   :  { %4064 = vmatpush1.msra.mxu0 %v8818_v39  ;;  %5799 = vmatpush3.msra.mxu1 %v8821_v40 }
 0xd29   :  { %4065 = vmatprep.subr.mxu0 %v8824_v55  ;;  %5800 = vmatprep.subr.mxu1 %v9364_v0 }
 0xd2a   :  { %4066 = vmatpush1.msra.mxu0 %v8828_v49  ;;  %5801 = vmatpush3.msra.mxu1 %v8831_v13 }
 0xd2b   :  { %4067 = vmatprep.subr.mxu0 %v8834_v12  ;;  %5802 = vmatprep.subr.mxu1 %v9364_v0 }
 0xd2c   :  { %4068 = vmatpush1.msra.mxu0 %v8838_v51  ;;  %5803 = vmatpush3.msra.mxu1 %v8841_v48 }
 0xd2d   :  { %4069 = vmatprep.subr.mxu0 %v8844_v45  ;;  %5804 = vmatprep.subr.mxu1 %v9364_v0 }
 0xd2e   :  { %4070 = vmatpush1.msra.mxu0 %v8848_v25  ;;  %5805 = vmatpush3.msra.mxu1 %v8851_v1 }
 0xd2f   :  { %4071 = vmatprep.subr.mxu0 %v8854_v38  ;;  %5806 = vmatprep.subr.mxu1 %v9364_v0 }
 0xd30   :  { %4072 = vmatpush1.msra.mxu0 %v8858_v6  ;;  %5807 = vmatpush3.msra.mxu1 %v8861_v53 }
 0xd31   :  { %4073 = vmatprep.subr.mxu0 %v8864_v63  ;;  %5808 = vmatprep.subr.mxu1 %v9364_v0 }
 0xd32   :  { %4074 = vmatpush1.msra.mxu0 %v8868_v21  ;;  %5809 = vmatpush3.msra.mxu1 %v8871_v42 }
 0xd33   :  { %4075 = vmatprep.subr.mxu0 %v8874_v41  ;;  %5810 = vmatprep.subr.mxu1 %v9364_v0 }
 0xd34   :  { %4076 = vmatpush1.msra.mxu0 %v8878_v34  ;;  %5811 = vmatpush3.msra.mxu1 %v8881_v44 }
 0xd35   :  { %4077 = vmatprep.subr.mxu0 %v8884_v2  ;;  %5812 = vmatprep.subr.mxu1 %v9364_v0 }
 0xd36   :  { %4078 = vmatpush1.msra.mxu0 %v8888_v18  ;;  %5813 = vmatpush3.msra.mxu1 %v8891_v26 }
 0xd37   :  { %4079 = vmatprep.subr.mxu0 %v8894_v31  ;;  %5814 = vmatprep.subr.mxu1 %v9364_v0 }
 0xd38   :  { %4080 = vmatpush1.msra.mxu0 %v8898_v62  ;;  %5815 = vmatpush3.msra.mxu1 %v8901_v4 }
 0xd39   :  { %4081 = vmatprep.subr.mxu0 %v8904_v28  ;;  %5816 = vmatprep.subr.mxu1 %v9364_v0 }
 0xd3a   :  { %4082 = vmatpush1.msra.mxu0 %v8908_v30  ;;  %5817 = vmatpush3.msra.mxu1 %v8911_v50 }
 0xd3b   :  { %4083 = vmatprep.subr.mxu0 %v8914_v3  ;;  %5818 = vmatprep.subr.mxu1 %v9364_v0 }
 0xd3c   :  { %4084 = vmatpush1.msra.mxu0 %v8918_v10  ;;  %4117 = vmatprep.mubr.f32.mxu0 %v9364_v0 }
 0xd3d   :  { %5819 = vmatpush3.msra.mxu1 %v8922_v24  ;;  %5820 = vmatprep.mubr.msk.f32.mxu1 %vm6425_vm1, %v9364_v0 }
 0xd3e   :  { %4219 = vmatprep.subr.mxu0 %v8673_v32  ;;  %5823 = vmatprep.subr.mxu1 %v9364_v0 }
 0xddd   :  { %v3953_v14 = vpop.f32.mrf.mxu0  ;;  %v4024_v5 = vpop.f32.mrf.mxu1 }
 0xdde   :  { %v4031_v7 = vadd.f32 %v3953_v14, %v2443_v27  ;;  %v4045_v22 = vadd.f32 %v8436_v58, %v4024_v5  ;;  %v9723_v27 = vld [vmem:[#allocation54_spill] sm:$0xff]  ;;  %v9724_v58 = vld [vmem:[#allocation65_spill] sm:$0xff]  ;;  %v4391_v5 = vld [vmem:[#allocation10 + $0x18] sm:$0xff] }
 0xddf   :  { %v5787_v16 = vpop.f32.mrf.mxu1  ;;  %v3955_v20 = vpop.f32.mrf.mxu0  ;;  %v2514_v14 = vadd.f32 %v9723_v27, %v8440_v60  ;;  %v9733_v27 = vld [vmem:[#allocation62_spill] sm:$0xff] }
 0xde0   :  { %v4560_v23 = vmul.f32 -1.442695, %v4031_v7  ;;  %v4038_v24 = vadd.f32 %v3955_v20, %v2445_v33  ;;  %v4390_v33 = vld [vmem:[#allocation10 + $0x10] sm:$0xff] }
 0xde2   :  { %6035 = vpow2.f32 %v4560_v23  ;;  %v4561_v10 = vmul.f32 -1.442695, %v4038_v24 }
 0xde4   :  { %6037 = vpow2.f32 %v4561_v10 }
 0xdef   :  { %v6036_v3 = vpop.eup %6035 }
 0xdf0   :  { %v4035_v32 = vadd.f32 1.0, %v6036_v3 }
 0xdf1   :  { %v6038_v50 = vpop.eup %6037 }
 0xdf2   :  { %6039 = vrcp.f32 %v4035_v32  ;;  %v4042_v30 = vadd.f32 1.0, %v6038_v50  ;;  %v4392_v50 = vld [vmem:[#allocation10 + $0x20] sm:$0xff]  ;;  %v4389_v32 = vld [vmem:[#allocation10 + $0x8] sm:$0xff] }
 0xdf4   :  { %6041 = vrcp.f32 %v4042_v30  ;;  %v4393_v30 = vld [vmem:[#allocation10 + $0x28] sm:$0xff] }
 0xdff   :  { %v6040_v11 = vpop.eup %6039 }
 0xe00   :  { %v4046_v7 = vmul.f32 %v6040_v11, %v4045_v22  ;;  %v9725_v11 = vld [vmem:[#allocation66_spill] sm:$0xff]  ;;  %v4388_v22 = vld [vmem:[#allocation10] sm:$0xff] }
 0xe01   :  { %v6042_v29 = vpop.eup %6041 }
 0xe02   :  { %v4047_v16 = vadd.f32 %v4046_v7, %v2514_v14  ;;  %v4049_v23 = vsub.f32 1.0, %v6042_v29  ;;  %v4051_v10 = vmul.f32 %v6042_v29, %v8788_v56  ;;  %v9731_v56 = vld [vmem:[#allocation61_spill] sm:$0xff] }
 0xe04   :  { %6043 = vtanh.f32 %v4047_v16 }
 0xe11   :  { %v6044_v20 = vpop.eup %6043 }
 0xe12   :  { %v4050_v24 = vmul.f32 %v6044_v20, %v4049_v23 }
 0xe14   :  { %v8937_v3 = vadd.f32 %v4051_v10, %v4050_v24  ;;  %v9734_v10 = vld [vmem:[#allocation63_spill] sm:$0xff] }
 0xe16   :  { %4118 = vmatmul.mubr.f32.vlgmr.msra.gmra.mxu0 %v8937_v3  ;;  %5821 = vmatmul.mubr.f32.vlgmr.msra.gmra.mxu1 %v8937_v3 }
 0xe17   :  { %4220 = vmatpush1.msra.mxu0 %v8689_v9  ;;  %5824 = vmatpush3.msra.mxu1 %v8692_v52  ;;  %v9726_v9 = vld [vmem:[#allocation67_spill] sm:$0xff]  ;;  %v9727_v52 = vld [vmem:[#allocation69_spill] sm:$0xff] }
 0xe18   :  { %4221 = vmatprep.subr.mxu0 %v8695_v19  ;;  %5825 = vmatprep.subr.mxu1 %v9364_v0  ;;  %v9728_v19 = vld [vmem:[#allocation70_spill] sm:$0xff] }
 0xe19   :  { %4222 = vmatpush1.msra.mxu0 %v8699_v17  ;;  %5826 = vmatpush3.msra.mxu1 %v8702_v54  ;;  %v9729_v17 = vld [vmem:[#allocation30_spill] sm:$0xff]  ;;  %v9730_v54 = vld [vmem:[#allocation76_spill] sm:$0xff] }
 0xe1a   :  { %4223 = vmatprep.subr.mxu0 %v8705_v15  ;;  %5827 = vmatprep.subr.mxu1 %v9364_v0  ;;  %v2753_v15 = vadd.f32 %v9730_v54, %v9729_v17  ;;  %v2922_v14 = vadd.f32 %v9733_v27, %v9729_v17 }
 0xe1b   :  { %4224 = vmatpush1.msra.mxu0 %v8709_v43  ;;  %5828 = vmatpush3.msra.mxu1 %v8712_v35 }
 0xe1c   :  { %4225 = vmatprep.subr.mxu0 %v8715_v8  ;;  %5829 = vmatprep.subr.mxu1 %v9364_v0 }
 0xe1d   :  { %4226 = vmatpush1.msra.mxu0 %v8719_v61  ;;  %5830 = vmatpush3.msra.mxu1 %v8805_v47  ;;  %v2755_v47 = vadd.f32 %v9731_v56, %v9691_v36 }
 0xe1e   :  { %4227 = vmatprep.subr.mxu0 %v8723_v46  ;;  %5831 = vmatprep.subr.mxu1 %v9364_v0 }
 0xe1f   :  { %4228 = vmatpush1.msra.mxu0 %v8727_v59  ;;  %5832 = vmatpush3.msra.mxu1 %v8811_v57 }
 0xe20   :  { %4229 = vmatprep.subr.mxu0 %v8814_v37  ;;  %5833 = vmatprep.subr.mxu1 %v9364_v0 }
 0xe21   :  { %4230 = vmatpush1.msra.mxu0 %v8818_v39  ;;  %5834 = vmatpush3.msra.mxu1 %v8821_v40 }
 0xe22   :  { %4231 = vmatprep.subr.mxu0 %v8824_v55  ;;  %5835 = vmatprep.subr.mxu1 %v9364_v0 }
 0xe23   :  { %4232 = vmatpush1.msra.mxu0 %v8828_v49  ;;  %5836 = vmatpush3.msra.mxu1 %v8831_v13  ;;  %v9014_v13 = vld [vmem:[%s9070_s9] ss:$0 sm:$0xff]  ;;  %s6426_s9 = smov [#allocation13]  }
 0xe24   :  { %4233 = vmatprep.subr.mxu0 %v8834_v12  ;;  %5837 = vmatprep.subr.mxu1 %v9364_v0  ;;  %s4497_s14 = sshll.u32 %s6426_s9, 4  ;;  %s4498_s14 = int_to_ptr.vmem [resolvable:$true] %s4497_s14 }
 0xe25   :  { %4234 = vmatpush1.msra.mxu0 %v8838_v51  ;;  %5838 = vmatpush3.msra.mxu1 %v8841_v48  ;;  %v9732_v48 = vld [vmem:[#allocation32_spill] sm:$0xff]  ;;  %s6366_s2 = scalar_lea.vmem %s4498_s14, 256  ;;  %p6371_p7 = scmp.lt.s32.totalorder %s4498_s14, %s4498_s14 }
 0xe26   :  { %4235 = vmatprep.subr.mxu0 %v8844_v45  ;;  %5839 = vmatprep.subr.mxu1 %v9364_v0  ;;  %v2824_v45 = vadd.f32 %v9732_v48, %v8440_v60  ;;  %p6367_p6 = scmp.ne.s32.totalorder %s4498_s14, %s6366_s2  ;;  %p6372_p8 = scmp.lt.s32.totalorder %s6366_s2, %s6366_s2 }
 0xe27   :  { %4236 = vmatpush1.msra.mxu0 %v8848_v25  ;;  %5840 = vmatpush3.msra.mxu1 %v8851_v1 }
 0xe28   :  { %4237 = vmatprep.subr.mxu0 %v8854_v38  ;;  %5841 = vmatprep.subr.mxu1 %v9364_v0  ;;  %p6373_p9 = por %p6372_p8, %p6371_p7 }
 0xe29   :  { %4238 = vmatpush1.msra.mxu0 %v8858_v6  ;;  %5842 = vmatpush3.msra.mxu1 %v8861_v53 }
 0xe2a   :  { %4239 = vmatprep.subr.mxu0 %v8864_v63  ;;  %5843 = vmatprep.subr.mxu1 %v9364_v0  ;;  %p6374_p10 = pnand %p6373_p9, %p6367_p6 }
 0xe2b   :  { %4240 = vmatpush1.msra.mxu0 %v8868_v21  ;;  %5844 = vmatpush3.msra.mxu1 %v8871_v42 }
 0xe2c   :  { %4241 = vmatprep.subr.mxu0 %v8874_v41  ;;  %5845 = vmatprep.subr.mxu1 %v9364_v0  ;;  %v4403_v41 = vld [vmem:[#allocation10 + $0x78] sm:$0xff] }
 0xe2d   :  { %4242 = vmatpush1.msra.mxu0 %v8878_v34  ;;  %5846 = vmatpush3.msra.mxu1 %v8881_v44  ;;  %v4402_v34 = vld [vmem:[#allocation10 + $0x70] sm:$0xff]  ;;  %v4401_v44 = vld [vmem:[#allocation10 + $0x68] sm:$0xff] }
 0xe2e   :  { %4243 = vmatprep.subr.mxu0 %v8884_v2  ;;  %5847 = vmatprep.subr.mxu1 %v9364_v0  ;;  %v4400_v2 = vld [vmem:[#allocation10 + $0x60] sm:$0xff] }
 0xe2f   :  { %4244 = vmatpush1.msra.mxu0 %v8888_v18  ;;  %5848 = vmatpush3.msra.mxu1 %v8891_v26  ;;  %v4399_v18 = vld [vmem:[#allocation10 + $0x58] sm:$0xff]  ;;  %v4398_v26 = vld [vmem:[#allocation10 + $0x50] sm:$0xff] }
 0xe30   :  { %4245 = vmatprep.subr.mxu0 %v8894_v31  ;;  %5849 = vmatprep.subr.mxu1 %v9364_v0  ;;  %v4397_v31 = vld [vmem:[#allocation10 + $0x48] sm:$0xff] }
 0xe31   :  { %4246 = vmatpush1.msra.mxu0 %v8898_v62  ;;  %5850 = vmatpush3.msra.mxu1 %v8901_v4  ;;  %v4396_v62 = vld [vmem:[#allocation10 + $0x40] sm:$0xff]  ;;  %v4395_v4 = vld [vmem:[#allocation10 + $0x38] sm:$0xff] }
 0xe32   :  { %4247 = vmatprep.subr.mxu0 %v8904_v28  ;;  %5851 = vmatprep.subr.mxu1 %v9364_v0  ;;  %v4394_v28 = vld [vmem:[#allocation10 + $0x30] sm:$0xff] }
 0xe33   :  { %4248 = vmatpush1.msra.mxu0 %v9724_v58  ;;  %5852 = vmatpush3.msra.mxu1 %v9725_v11 }
 0xe34   :  { %4249 = vmatprep.subr.mxu0 %v9726_v9  ;;  %5853 = vmatprep.subr.mxu1 %v9364_v0 }
 0xe35   :  { %4250 = vmatpush1.msra.mxu0 %v9727_v52  ;;  %4283 = vmatprep.mubr.f32.mxu0 %v9364_v0 }
 0xe36   :  { %5854 = vmatpush3.msra.mxu1 %v9728_v19  ;;  %5855 = vmatprep.mubr.msk.f32.mxu1 %vm6425_vm1, %v9364_v0 }
 0xe37   :  { %5858 = vmatprep.subr.mxu0 %v9364_v0 }
 0xed6   :  { %v4119_v43 = vpop.f32.mrf.mxu0  ;;  %v4190_v35 = vpop.f32.mrf.mxu1 }
 0xed7   :  { %v4197_v8 = vadd.f32 %v4119_v43, %v2753_v15  ;;  %v4211_v12 = vadd.f32 %v9014_v13, %v4190_v35  ;;  %v9735_v15 = vld [vmem:[#allocation60_spill] sm:$0xff] }
 0xed8   :  { %v5822_v61 = vpop.f32.mrf.mxu1  ;;  %v4121_v59 = vpop.f32.mrf.mxu0  ;;  %v2993_v43 = vadd.f32 %v9735_v15, %v8440_v60 }
 0xed9   :  { %v4562_v46 = vmul.f32 -1.442695, %v4197_v8  ;;  %v4204_v57 = vadd.f32 %v4121_v59, %v2755_v47 }
 0xedb   :  { %6045 = vpow2.f32 %v4562_v46  ;;  %v4563_v37 = vmul.f32 -1.442695, %v4204_v57 }
 0xedd   :  { %6047 = vpow2.f32 %v4563_v37 }
 0xee8   :  { %v6046_v39 = vpop.eup %6045 }
 0xee9   :  { %v4201_v40 = vadd.f32 1.0, %v6046_v39 }
 0xeea   :  { %v6048_v55 = vpop.eup %6047 }
 0xeeb   :  { %6049 = vrcp.f32 %v4201_v40  ;;  %v4208_v49 = vadd.f32 1.0, %v6048_v55 }
 0xeed   :  { %6051 = vrcp.f32 %v4208_v49 }
 0xef8   :  { %v6050_v51 = vpop.eup %6049 }
 0xef9   :  { %v4212_v25 = vmul.f32 %v6050_v51, %v4211_v12 }
 0xefa   :  { %v6052_v38 = vpop.eup %6051 }
 0xefb   :  { %v4213_v1 = vadd.f32 %v4212_v25, %v2824_v45  ;;  %v4215_v6 = vsub.f32 1.0, %v6052_v38  ;;  %v4217_v21 = vmul.f32 %v6052_v38, %v8937_v3  ;;  %v2924_v3 = vadd.f32 %v9734_v10, %v9691_v36 }
 0xefd   :  { %6053 = vtanh.f32 %v4213_v1 }
 0xf0a   :  { %v6054_v53 = vpop.eup %6053 }
 0xf0b   :  { %v4216_v63 = vmul.f32 %v6054_v53, %v4215_v6 }
 0xf0d   :  { %v9020_v42 = vadd.f32 %v4217_v21, %v4216_v63 }
 0xf0f   :  { %4284 = vmatmul.mubr.f32.vlgmr.msra.gmra.mxu0 %v9020_v42  ;;  %5856 = vmatmul.mubr.f32.vlgmr.msra.gmra.mxu1 %v9020_v42 }
 0xf10   :  { %5890 = vmatprep.mubr.msk.f32.mxu0 %vm6425_vm1, %v9364_v0  ;;  %5859 = vmatpush3.msra.mxu0 %v4403_v41 }
 0xf11   :  { %5860 = vmatprep.subr.mxu0 %v9364_v0 }
 0xf12   :  { %5861 = vmatpush3.msra.mxu0 %v4402_v34 }
 0xf13   :  { %5862 = vmatprep.subr.mxu0 %v9364_v0 }
 0xf14   :  { %5863 = vmatpush3.msra.mxu0 %v4401_v44 }
 0xf15   :  { %5864 = vmatprep.subr.mxu0 %v9364_v0 }
 0xf16   :  { %5865 = vmatpush3.msra.mxu0 %v4400_v2 }
 0xf17   :  { %5866 = vmatprep.subr.mxu0 %v9364_v0 }
 0xf18   :  { %5867 = vmatpush3.msra.mxu0 %v4399_v18 }
 0xf19   :  { %5868 = vmatprep.subr.mxu0 %v9364_v0 }
 0xf1a   :  { %5869 = vmatpush3.msra.mxu0 %v4398_v26 }
 0xf1b   :  { %5870 = vmatprep.subr.mxu0 %v9364_v0 }
 0xf1c   :  { %5871 = vmatpush3.msra.mxu0 %v4397_v31 }
 0xf1d   :  { %5872 = vmatprep.subr.mxu0 %v9364_v0 }
 0xf1e   :  { %5873 = vmatpush3.msra.mxu0 %v4396_v62 }
 0xf1f   :  { %5874 = vmatprep.subr.mxu0 %v9364_v0 }
 0xf20   :  { %5875 = vmatpush3.msra.mxu0 %v4395_v4 }
 0xf21   :  { %5876 = vmatprep.subr.mxu0 %v9364_v0 }
 0xf22   :  { %5877 = vmatpush3.msra.mxu0 %v4394_v28 }
 0xf23   :  { %5878 = vmatprep.subr.mxu0 %v9364_v0 }
 0xf24   :  { %5879 = vmatpush3.msra.mxu0 %v4393_v30 }
 0xf25   :  { %5880 = vmatprep.subr.mxu0 %v9364_v0 }
 0xf26   :  { %5881 = vmatpush3.msra.mxu0 %v4392_v50 }
 0xf27   :  { %5882 = vmatprep.subr.mxu0 %v9364_v0 }
 0xf28   :  { %5883 = vmatpush3.msra.mxu0 %v4391_v5 }
 0xf29   :  { %5884 = vmatprep.subr.mxu0 %v9364_v0 }
 0xf2a   :  { %5885 = vmatpush3.msra.mxu0 %v4390_v33 }
 0xf2b   :  { %5886 = vmatprep.subr.mxu0 %v9364_v0 }
 0xf2c   :  { %5887 = vmatpush3.msra.mxu0 %v4389_v32 }
 0xf2d   :  { %5888 = vmatprep.subr.mxu0 %v9364_v0 }
 0xf2e   :  { %5889 = vmatpush3.msra.mxu0 %v4388_v22 }
 0xfcf   :  { %v4285_v7 = vpop.f32.mrf.mxu0  ;;  %v4356_v16 = vpop.f32.mrf.mxu1 }
 0xfd0   :  { %v4363_v29 = vadd.f32 %v4285_v7, %v2922_v14  ;;  %v4377_v17 = vadd.f32 %v9014_v13, %v4356_v16 }
 0xfd1   :  { %v5857_v23 = vpop.f32.mrf.mxu1  ;;  %v4287_v24 = vpop.f32.mrf.mxu0 }
 0xfd2   :  { %v4564_v20 = vmul.f32 -1.442695, %v4363_v29  ;;  %v4370_v58 = vadd.f32 %v4287_v24, %v2924_v3 }
 0xfd4   :  { %6055 = vpow2.f32 %v4564_v20  ;;  %v4565_v11 = vmul.f32 -1.442695, %v4370_v58 }
 0xfd6   :  { %6057 = vpow2.f32 %v4565_v11 }
 0xfe1   :  { %v6056_v9 = vpop.eup %6055 }
 0xfe2   :  { %v4367_v52 = vadd.f32 1.0, %v6056_v9 }
 0xfe3   :  { %v6058_v0 = vpop.eup %6057 }
 0xfe4   :  { %6059 = vrcp.f32 %v4367_v52  ;;  %v4374_v19 = vadd.f32 1.0, %v6058_v0 }
 0xfe6   :  { %6061 = vrcp.f32 %v4374_v19 }
 0xff1   :  { %v6060_v54 = vpop.eup %6059 }
 0xff2   :  { %v4378_v35 = vmul.f32 %v6060_v54, %v4377_v17 }
 0xff3   :  { %v6062_v36 = vpop.eup %6061 }
 0xff4   :  { %v4379_v8 = vadd.f32 %v4378_v35, %v2993_v43  ;;  %v4381_v61 = vsub.f32 1.0, %v6062_v36  ;;  %v4383_v56 = vmul.f32 %v6062_v36, %v9020_v42 }
 0xff6   :  { %6063 = vtanh.f32 %v4379_v8 }
0x1003   :  { %v6064_v46 = vpop.eup %6063 }
0x1004   :  { %v4382_v59 = vmul.f32 %v6064_v46, %v4381_v61 }
0x1006   :  { %v4384_v47 = vadd.f32 %v4383_v56, %v4382_v59 }
0x1008   :  { %v4387_v57 = vmax.f32 %v4384_v47, 0.0  ;;  %4386 = vst [vmem:[#allocation13 + $0x8] sm:$0xff] %v4384_v47 }
0x100a   :  { %5891 = vmatmul.mubr.f32.vlgmr.msra.gmra.mxu0 %v4387_v57 }
0x100b   :  { %6377 = shalt.err (!%p6374_p10)
}
0x100c   :  { %4503 = dma.vmem_to_hbm [thread:$0]  %s4498_s14, 256, %s9074_s13, [#allocation14], %s6422_s3, %s6422_s3, %s6423_s27  }
0x100d   :  { %v4566_v60 = vld [vmem:[%s9072_s11] ss:$0 sm:$0xff]  ;;  %s6427_s18 = smov [#allocation12]  }
0x100e   :  { %s4488_s0 = sshll.u32 %s6427_s18, 4  ;;  %s4489_s0 = int_to_ptr.vmem [resolvable:$true] %s4488_s0 }
0x100f   :  { %s6386_s19 = scalar_lea.vmem %s4489_s0, 128  ;;  %p6391_p12 = scmp.lt.s32.totalorder %s4489_s0, %s4489_s0 }
0x1010   :  { %p6387_p11 = scmp.ne.s32.totalorder %s4489_s0, %s6386_s19  ;;  %p6392_p13 = scmp.lt.s32.totalorder %s6386_s19, %s6386_s19 }
0x1012   :  { %p6393_p0 = por %p6392_p13, %p6391_p12 }
0x1014   :  { %p6394_p1 = pnand %p6393_p0, %p6387_p11 }
0x10ca   :  { %v4477_v37 = vpop.f32.mrf.mxu0 }
0x10cb   :  { %v4478_v39 = vadd.f32 %v4566_v60, %v4477_v37 }
0x10cc   :  { %v5892_v40 = vpop.f32.mrf.mxu0 }
0x10cd   :  { %4481 = vst [vmem:[#allocation12] sm:$0xff] %v4478_v39 }
0x10ce   :  { %6397 = shalt.err (!%p6394_p1)
}
0x10cf   :  { %4491 = dma.vmem_to_hbm [thread:$0]  %s4489_s0, 128, %s9073_s12, [#allocation6]  }
0x10d0   :  { %6412 = dma.done.wait [#allocation6], 128  }
0x10d1   :  { %6413 = vsyncadd [#allocation6], 4294967168 }
0x10d2   :  { %6414 = dma.done.wait [#allocation14], 256  }
0x10d3   :  { %6415 = vsyncadd [#allocation14], 4294967040 }
0x10d4   :  { %4510 = vsyncpa [#allocation5], 1 }
0x10d5   :  { %4511 = vsyncpa [#allocation8], 1 }
0x10d6   :  { %4512 = vsyncpa [#allocation11], 1 }
0x10d7   :  { %4513 = vsyncpa [#allocation6], 1 }
0x10d8   :  { %4514 = vsyncpa [#allocation14], 1 }

</bundles_post_ra>
